<compile_context>
chip_gen: v7x
topology: tpu7x:2x2x1
jax: 0.10.0
libtpu: 0.0.40
codegen_flags: <defaults>
</compile_context>

<pallas_src>
import jax
import jax.numpy as jnp
from jax.experimental import pallas as pl
from jax.experimental.pallas import tpu as pltpu


# ---------------------------------------------------------------------------
# Pallas kernels
# ---------------------------------------------------------------------------

def _mm_kernel(a_ref, b_ref, o_ref):
    # Single-K-step matmul block: no accumulator scratch needed.
    o_ref[...] = jnp.dot(a_ref[...], b_ref[...],
                         preferred_element_type=jnp.float32)


def _mm_tanh_kernel(a_ref, b_ref, o_ref):
    # Matmul with tanh fused into the epilogue.
    o_ref[...] = jnp.tanh(jnp.dot(a_ref[...], b_ref[...],
                                  preferred_element_type=jnp.float32))


def _bn_relu_cn_kernel(x_ref, g_ref, b_ref, o_ref):
    # x: (Ct, N) channels-first.  BatchNorm over N (training-mode batch stats,
    # biased variance, eps=1e-5) + affine + ReLU, fused.  Output in o_ref.dtype.
    x = x_ref[...]
    inv_n = 1.0 / x.shape[1]
    mean = jnp.sum(x, axis=1, keepdims=True) * inv_n
    xc = x - mean
    var = jnp.sum(xc * xc, axis=1, keepdims=True) * inv_n
    scale = g_ref[...] * jax.lax.rsqrt(var + 1e-5)
    o_ref[...] = jnp.maximum(xc * scale + b_ref[...], 0.0).astype(o_ref.dtype)


def _bn_relu_phased_kernel(x_ref, g_ref, b_ref, o_ref):
    # x: (P, Ct, M) phased channels-first.  Per-channel stats over (P, M) are
    # identical to stats over the interleaved (Ct, B, 2H, 2W) image.
    x = x_ref[...]
    inv_n = 1.0 / (x.shape[0] * x.shape[2])
    s = jnp.sum(x, axis=2, keepdims=True)            # lane reduce (XLU)
    mean = jnp.sum(s, axis=0, keepdims=True) * inv_n  # 4-way elementwise add
    xc = x - mean
    s2 = jnp.sum(xc * xc, axis=2, keepdims=True)
    var = jnp.sum(s2, axis=0, keepdims=True) * inv_n
    scale = g_ref[...] * jax.lax.rsqrt(var + 1e-5)
    o_ref[...] = jnp.maximum(xc * scale + b_ref[...], 0.0).astype(o_ref.dtype)


# ---------------------------------------------------------------------------
# Pallas call wrappers
# ---------------------------------------------------------------------------

def pallas_matmul_wide(a, b, tn=2048):
    """(M,K)@(K,N) with tiny M and wide N; grid over N only, single K step."""
    M, K = a.shape
    _, N = b.shape
    tn = min(tn, N)
    if N % tn:
        tn = N
    return pl.pallas_call(
        _mm_kernel,
        out_shape=jax.ShapeDtypeStruct((M, N), jnp.float32),
        grid_spec=pltpu.PrefetchScalarGridSpec(
            num_scalar_prefetch=0,
            grid=(N // tn,),
            in_specs=[pl.BlockSpec((M, K), lambda j: (0, 0)),
                      pl.BlockSpec((K, tn), lambda j: (0, j))],
            out_specs=pl.BlockSpec((M, tn), lambda j: (0, j)),
        ),
        compiler_params=pltpu.CompilerParams(
            dimension_semantics=("parallel",)),
    )(a, b)


def pallas_phased_matmul(w_ph, patches, act_tanh=False, tm=512):
    """Per-phase out^T = W_phase @ patches_phase.

    w_ph:    (P, Cout, Kc) bf16  precomputed sub-kernel weights
    patches: (P, Kc,  M)   bf16  per-phase im2col, channels-first
    returns  (P, Cout, M)  f32   (optionally with tanh fused into the epilogue)

    Grid = (phase, M tiles), both parallel; K fits in one block so there is no
    accumulator scratch and no "arbitrary" axis.
    """
    P, Cout, Kc = w_ph.shape
    M = patches.shape[2]
    tm = min(tm, M)
    if M % tm:
        tm = M
    kernel = _mm_tanh_kernel if act_tanh else _mm_kernel
    return pl.pallas_call(
        kernel,
        out_shape=jax.ShapeDtypeStruct((P, Cout, M), jnp.float32),
        grid_spec=pltpu.PrefetchScalarGridSpec(
            num_scalar_prefetch=0,
            grid=(P, M // tm),
            in_specs=[
                pl.BlockSpec((None, Cout, Kc), lambda ph, m: (ph, 0, 0)),
                pl.BlockSpec((None, Kc, tm), lambda ph, m: (ph, 0, m)),
            ],
            out_specs=pl.BlockSpec((None, Cout, tm), lambda ph, m: (ph, 0, m)),
        ),
        compiler_params=pltpu.CompilerParams(
            dimension_semantics=("parallel", "parallel")),
    )(w_ph, patches)


def _channel_tile(c):
    # >= 2 parallel channel tiles whenever the sublane constraint allows it.
    return c // 2 if (c % 16 == 0 and c >= 16) else c


def pallas_bn_relu_cn(x_cm, gamma, beta, out_dtype=jnp.bfloat16):
    """x_cm: (C, N) f32 channels-first; gamma/beta: (C, 1).  Fused BN + ReLU."""
    C, N = x_cm.shape
    tc = _channel_tile(C)
    return pl.pallas_call(
        _bn_relu_cn_kernel,
        out_shape=jax.ShapeDtypeStruct((C, N), out_dtype),
        grid_spec=pltpu.PrefetchScalarGridSpec(
            num_scalar_prefetch=0,
            grid=(C // tc,),
            in_specs=[pl.BlockSpec((tc, N), lambda c: (c, 0)),
                      pl.BlockSpec((tc, 1), lambda c: (c, 0)),
                      pl.BlockSpec((tc, 1), lambda c: (c, 0))],
            out_specs=pl.BlockSpec((tc, N), lambda c: (c, 0)),
        ),
        compiler_params=pltpu.CompilerParams(
            dimension_semantics=("parallel",)),
    )(x_cm, gamma, beta)


def pallas_bn_relu_phased(y_ph, gamma, beta, out_dtype=jnp.bfloat16):
    """y_ph: (P, C, M) f32 phased output; gamma/beta: (1, C, 1).  Fused BN+ReLU."""
    P, C, M = y_ph.shape
    tc = _channel_tile(C)
    return pl.pallas_call(
        _bn_relu_phased_kernel,
        out_shape=jax.ShapeDtypeStruct((P, C, M), out_dtype),
        grid_spec=pltpu.PrefetchScalarGridSpec(
            num_scalar_prefetch=0,
            grid=(C // tc,),
            in_specs=[pl.BlockSpec((P, tc, M), lambda c: (0, c, 0)),
                      pl.BlockSpec((1, tc, 1), lambda c: (0, c, 0)),
                      pl.BlockSpec((1, tc, 1), lambda c: (0, c, 0))],
            out_specs=pl.BlockSpec((P, tc, M), lambda c: (0, c, 0)),
        ),
        compiler_params=pltpu.CompilerParams(
            dimension_semantics=("parallel",)),
    )(y_ph, gamma, beta)


# ---------------------------------------------------------------------------
# Sub-pixel (phase) decomposition of stride-2 / K=4 / pad=1 ConvTranspose2d
# ---------------------------------------------------------------------------
# 1-D identity (per spatial dim), xp = input padded by 1 on each side:
#   even outputs: y[2m]   = xp[m+1]*w[1] + xp[m+0]*w[3]
#   odd  outputs: y[2m+1] = xp[m+2]*w[0] + xp[m+1]*w[2]
# Each entry of _TAPS[parity] is (kernel_tap_index, padded_input_offset).
_TAPS = (((1, 1), (3, 0)),
         ((0, 2), (2, 1)))


def _phase_weights(w):
    """(Cin, Cout, 4, 4) PyTorch ConvTranspose2d weight -> (4, Cout, 4*Cin) bf16."""
    phases = []
    for py in (0, 1):
        for px in (0, 1):
            taps = []
            for ty in (0, 1):
                for tx in (0, 1):
                    ky = _TAPS[py][ty][0]
                    kx = _TAPS[px][tx][0]
                    taps.append(w[:, :, ky, kx])             # (Cin, Cout)
            phases.append(jnp.concatenate(taps, axis=0).T)    # (Cout, 4*Cin)
    return jnp.stack(phases, axis=0).astype(jnp.bfloat16)


def _phase_patches(x_cf):
    """(Cin, B, H, W) activation -> per-phase im2col (4, 4*Cin, B*H*W) bf16."""
    Cin, B, H, W = x_cf.shape
    xp = jnp.pad(x_cf.astype(jnp.bfloat16), ((0, 0), (0, 0), (1, 1), (1, 1)))
    M = B * H * W
    phases = []
    for py in (0, 1):
        for px in (0, 1):
            taps = []
            for ty in (0, 1):
                for tx in (0, 1):
                    oy = _TAPS[py][ty][1]
                    ox = _TAPS[px][tx][1]
                    taps.append(xp[:, :, oy:oy + H, ox:ox + W].reshape(Cin, M))
            phases.append(jnp.concatenate(taps, axis=0))      # (4*Cin, M)
    return jnp.stack(phases, axis=0)                          # (4, 4*Cin, M)


def _interleave_phases(y_ph, B, H, W):
    """(4, Cout, B*H*W) per-phase output -> (Cout, B, 2H, 2W)."""
    Cout = y_ph.shape[1]
    y = y_ph.reshape(2, 2, Cout, B, H, W)      # (py, px, co, b, m, n)
    y = y.transpose(2, 3, 4, 0, 5, 1)          # (co, b, m, py, n, px)
    return y.reshape(Cout, B, 2 * H, 2 * W)


# ---------------------------------------------------------------------------
# Parameters
# ---------------------------------------------------------------------------

def init_params(key, latent_dim, label_dim, img_size, channels):
    """Raw parameters in PyTorch layout (ConvTranspose2d weight = (Cin,Cout,K,K))."""
    ks = jax.random.split(key, 7)
    c1, c2, c3, c4 = img_size * 8, img_size * 4, img_size * 2, img_size
    p = {
        "emb_w": jax.random.normal(ks[0], (latent_dim, label_dim), jnp.float32) * 0.1,
        "emb_b": jax.random.normal(ks[1], (latent_dim,), jnp.float32) * 0.1,
        "w1": jax.random.normal(ks[2], (latent_dim, c1, 4, 4), jnp.float32) * 0.05,
        "w2": jax.random.normal(ks[3], (c1, c2, 4, 4), jnp.float32) * 0.05,
        "w3": jax.random.normal(ks[4], (c2, c3, 4, 4), jnp.float32) * 0.05,
        "w4": jax.random.normal(ks[5], (c3, c4, 4, 4), jnp.float32) * 0.05,
        "w5": jax.random.normal(ks[6], (c4, channels, 4, 4), jnp.float32) * 0.05,
    }
    for i, c in enumerate((c1, c2, c3, c4), start=1):
        p[f"g{i}"] = jnp.ones((c,), jnp.float32)
        p[f"b{i}"] = jnp.zeros((c,), jnp.float32)
    return p


def prepare_params(raw):
    """One-time repack of weights into matmul layout (hoisted out of forward)."""
    latent, c1 = raw["w1"].shape[0], raw["w1"].shape[1]
    prepared = {
        "emb_w_t": raw["emb_w"].T,                       # (label_dim, latent)
        "emb_b": raw["emb_b"],
        "w1m": raw["w1"].reshape(latent, c1 * 16),       # conv1 is tiny: keep f32
        "w2p": _phase_weights(raw["w2"]),
        "w3p": _phase_weights(raw["w3"]),
        "w4p": _phase_weights(raw["w4"]),
        "w5p": _phase_weights(raw["w5"]),
        # conv1 BN params in (C, 1); conv2..4 BN params in phased (1, C, 1).
        "g1": raw["g1"].reshape(-1, 1),
        "b1": raw["b1"].reshape(-1, 1),
    }
    for i in (2, 3, 4):
        prepared[f"g{i}"] = raw[f"g{i}"].reshape(1, -1, 1)
        prepared[f"b{i}"] = raw[f"b{i}"].reshape(1, -1, 1)
    return prepared


# ---------------------------------------------------------------------------
# Generator forward (Pallas)
# ---------------------------------------------------------------------------

@jax.jit
def generator_forward(noise, labels, p):
    B = noise.shape[0]

    # label embedding + modulation: tiny (B x 8 x 16) -> plain XLA fusion.
    # TODO(synk): left in XLA on purpose (too small to benefit from a kernel).
    emb = jnp.dot(labels, p["emb_w_t"]) + p["emb_b"][None, :]
    x = noise * emb                                           # (B, latent)

    # conv1: ConvTranspose2d(latent, c1, 4, 1, 0) on a 1x1 input is a pure matmul
    # (B, latent) @ (latent, c1*16) with the wide dim on lanes.
    c1 = p["g1"].shape[0]
    y = pallas_matmul_wide(x, p["w1m"])                       # (B, c1*16) f32
    y = y.reshape(B, c1, 4, 4).transpose(1, 0, 2, 3)          # channels-first
    y = pallas_bn_relu_cn(y.reshape(c1, -1), p["g1"], p["b1"])  # (c1, B*16) bf16
    x_cf = y.reshape(c1, B, 4, 4)

    # conv2..conv4: phase-decomposed stride-2 transposed conv, BN+ReLU fused on
    # the phased layout (bf16 out), then a bf16 phase interleave in XLA.
    for wk, gk, bk in (("w2p", "g2", "b2"),
                       ("w3p", "g3", "b3"),
                       ("w4p", "g4", "b4")):
        Cin, _, H, W = x_cf.shape
        patches = _phase_patches(x_cf)                        # (4, 4*Cin, B*H*W) bf16
        y_ph = pallas_phased_matmul(p[wk], patches)           # (4, Cout, B*H*W) f32
        y_bn = pallas_bn_relu_phased(y_ph, p[gk], p[bk])      # (4, Cout, B*H*W) bf16
        x_cf = _interleave_phases(y_bn, B, H, W)              # (Cout, B, 2H, 2W) bf16

    # conv5 with tanh fused into the matmul epilogue (f32 out, matches PyTorch)
    Cin, _, H, W = x_cf.shape
    patches = _phase_patches(x_cf)
    y_ph = pallas_phased_matmul(p["w5p"], patches, act_tanh=True)
    y_cf = _interleave_phases(y_ph, B, H, W)                  # (channels, B, 64, 64)
    return y_cf.transpose(1, 0, 2, 3)                         # NCHW


# ---------------------------------------------------------------------------
# Pure-JAX reference (f32, high precision) for a correctness cross-check
# ---------------------------------------------------------------------------

def _ref_conv_transpose(x, w, stride, padding):
    # x: NCHW, w: (Cin, Cout, K, K) PyTorch ConvTranspose2d layout (bias=False)
    K = w.shape[2]
    w_conv = jnp.flip(w, (2, 3)).transpose(1, 0, 2, 3)        # (Cout, Cin, K, K)
    pad = K - 1 - padding
    return jax.lax.conv_general_dilated(
        x, w_conv, window_strides=(1, 1),
        padding=[(pad, pad), (pad, pad)],
        lhs_dilation=(stride, stride),
        dimension_numbers=("NCHW", "OIHW", "NCHW"),
        precision=jax.lax.Precision.HIGHEST,
        preferred_element_type=jnp.float32)


def _ref_bn_relu(x, g, b):
    mean = x.mean(axis=(0, 2, 3), keepdims=True)
    var = ((x - mean) ** 2).mean(axis=(0, 2, 3), keepdims=True)
    xn = (x - mean) * jax.lax.rsqrt(var + 1e-5)
    return jnp.maximum(xn * g.reshape(1, -1, 1, 1) + b.reshape(1, -1, 1, 1), 0.0)


def reference_forward(noise, labels, raw):
    emb = jnp.dot(labels, raw["emb_w"].T) + raw["emb_b"][None, :]
    x = (noise * emb)[:, :, None, None]
    x = _ref_bn_relu(_ref_conv_transpose(x, raw["w1"], 1, 0), raw["g1"], raw["b1"])
    x = _ref_bn_relu(_ref_conv_transpose(x, raw["w2"], 2, 1), raw["g2"], raw["b2"])
    x = _ref_bn_relu(_ref_conv_transpose(x, raw["w3"], 2, 1), raw["g3"], raw["b3"])
    x = _ref_bn_relu(_ref_conv_transpose(x, raw["w4"], 2, 1), raw["g4"], raw["b4"])
    return jnp.tanh(_ref_conv_transpose(x, raw["w5"], 2, 1))


# ---------------------------------------------------------------------------

if __name__ == "__main__":
    # Small config: latent_dim=16, label_dim=8, img_size=16 (channel multiplier),
    # channels=3, batch=2.  Output is (2, 3, 64, 64).
    latent_dim, label_dim, img_size, channels, batch = 16, 8, 16, 3, 2

    key = jax.random.PRNGKey(0)
    k_params, k_noise, k_labels = jax.random.split(key, 3)

    raw = init_params(k_params, latent_dim, label_dim, img_size, channels)
    params = prepare_params(raw)   # one-time weight repack (not per-forward)

    noise = jax.random.normal(k_noise, (batch, latent_dim), jnp.float32)
    labels = jax.random.normal(k_labels, (batch, label_dim), jnp.float32)

    out = generator_forward(noise, labels, params)
    out = jax.block_until_ready(out)

    assert out.shape == (batch, channels, 64, 64), out.shape
    assert bool(jnp.all(jnp.isfinite(out)))
    assert bool(jnp.all(jnp.abs(out) <= 1.0 + 1e-6))          # tanh range

    # Cross-check against the pure-JAX f32 reference (bf16 MXU operands -> loose tol).
    ref = jax.block_until_ready(jax.jit(reference_forward)(noise, labels, raw))
    assert float(jnp.max(jnp.abs(out - ref))) < 0.15

    print("KERNEL_OK")
</pallas_src>

<mosaic_0001>
module attributes {stable_mosaic.version = 11 : i64} {
  func.func @_mm_kernel(%arg0: i32, %arg1: memref<2x16xf32, #tpu.memory_space<vmem>>, %arg2: memref<16x2048xf32, #tpu.memory_space<vmem>>, %arg3: memref<2x2048xf32, #tpu.memory_space<vmem>>) attributes {dimension_semantics = [#tpu.dimension_semantics<parallel>], iteration_bounds = array<i64: 1>, scalar_prefetch = 0 : i64, scratch_operands = 0 : i64, tpu.core_type = #tpu.core_type<tc>, window_params = [{pipeline_mode = #tpu.pipeline_mode<synchronous>, transform_indices = @transform_0, window_bounds = array<i64: 2, 16>}, {transform_indices = @transform_1, window_bounds = array<i64: 16, 2048>}, {transform_indices = @transform_2, window_bounds = array<i64: 2, 2048>}]} {
    %c0 = arith.constant 0 : index
    %c0_0 = arith.constant 0 : index
    %0 = vector.load %arg1[%c0, %c0_0] : memref<2x16xf32, #tpu.memory_space<vmem>>, vector<2x16xf32>
    %c0_1 = arith.constant 0 : index
    %c0_2 = arith.constant 0 : index
    %1 = vector.load %arg2[%c0_1, %c0_2] : memref<16x2048xf32, #tpu.memory_space<vmem>>, vector<16x2048xf32>
    %cst = arith.constant dense<0.000000e+00> : vector<2x2048xf32>
    %2 = tpu.matmul %0, %1, %cst {dimension_numbers = #tpu.dot_dimension_numbers<[1], [0], [0], [1], [0, 0, 1, 1], [], []>} : vector<2x16xf32>, vector<16x2048xf32>, vector<2x2048xf32> -> vector<2x2048xf32>
    %c0_3 = arith.constant 0 : index
    %c0_4 = arith.constant 0 : index
    %3 = vector.load %arg3[%c0_3, %c0_4] : memref<2x2048xf32, #tpu.memory_space<vmem>>, vector<2x2048xf32>
    tpu.vector_store %arg3[%c0_3, %c0_4], %2 {strides = array<i32>} : memref<2x2048xf32, #tpu.memory_space<vmem>>, vector<2x2048xf32>,
    return
  }
  func.func @transform_0(%arg0: i32) -> (i32, i32) {
    %c0_i32 = arith.constant 0 : i32
    %c0_i32_0 = arith.constant 0 : i32
    %c0_i32_1 = arith.constant 0 : i32
    return %c0_i32, %c0_i32_0 : i32, i32
  }
  func.func @transform_1(%arg0: i32) -> (i32, i32) {
    %c0_i32 = arith.constant 0 : i32
    %c0_i32_0 = arith.constant 0 : i32
    return %c0_i32, %arg0 : i32, i32
  }
  func.func @transform_2(%arg0: i32) -> (i32, i32) {
    %c0_i32 = arith.constant 0 : i32
    %c0_i32_0 = arith.constant 0 : i32
    return %c0_i32, %arg0 : i32, i32
  }
}

module attributes {stable_mosaic.version = 11 : i64} {
  func.func @_bn_relu_cn_kernel(%arg0: i32, %arg1: memref<64x32xf32, #tpu.memory_space<vmem>>, %arg2: memref<64x1xf32, #tpu.memory_space<vmem>>, %arg3: memref<64x1xf32, #tpu.memory_space<vmem>>, %arg4: memref<64x32xbf16, #tpu.memory_space<vmem>>) attributes {dimension_semantics = [#tpu.dimension_semantics<parallel>], iteration_bounds = array<i64: 2>, scalar_prefetch = 0 : i64, scratch_operands = 0 : i64, tpu.core_type = #tpu.core_type<tc>, window_params = [{transform_indices = @transform_0, window_bounds = array<i64: 64, 32>}, {transform_indices = @transform_1, window_bounds = array<i64: 64, 1>}, {transform_indices = @transform_2, window_bounds = array<i64: 64, 1>}, {transform_indices = @transform_3, window_bounds = array<i64: 64, 32>}]} {
    %c0 = arith.constant 0 : index
    %c0_0 = arith.constant 0 : index
    %0 = vector.load %arg1[%c0, %c0_0] : memref<64x32xf32, #tpu.memory_space<vmem>>, vector<64x32xf32>
    %cst = arith.constant dense<0.000000e+00> : vector<64xf32>
    %1 = vector.multi_reduction <add>, %0, %cst [1] : vector<64x32xf32> to vector<64xf32>
    %2 = vector.shape_cast %1 : vector<64xf32> to vector<64x1xf32>
    %cst_1 = arith.constant 3.125000e-02 : f32
    %3 = vector.broadcast %cst_1 : f32 to vector<64x1xf32>
    %4 = arith.mulf %2, %3 : vector<64x1xf32>
    %5 = vector.broadcast %4 : vector<64x1xf32> to vector<64x32xf32>
    %6 = arith.subf %0, %5 : vector<64x32xf32>
    %7 = arith.mulf %6, %6 : vector<64x32xf32>
    %cst_2 = arith.constant dense<0.000000e+00> : vector<64xf32>
    %8 = vector.multi_reduction <add>, %7, %cst_2 [1] : vector<64x32xf32> to vector<64xf32>
    %9 = vector.shape_cast %8 : vector<64xf32> to vector<64x1xf32>
    %cst_3 = arith.constant 3.125000e-02 : f32
    %10 = vector.broadcast %cst_3 : f32 to vector<64x1xf32>
    %11 = arith.mulf %9, %10 : vector<64x1xf32>
    %c0_4 = arith.constant 0 : index
    %c0_5 = arith.constant 0 : index
    %12 = vector.load %arg2[%c0_4, %c0_5] : memref<64x1xf32, #tpu.memory_space<vmem>>, vector<64x1xf32>
    %cst_6 = arith.constant 9.99999974E-6 : f32
    %13 = vector.broadcast %cst_6 : f32 to vector<64x1xf32>
    %14 = arith.addf %11, %13 : vector<64x1xf32>
    %15 = math.rsqrt %14 : vector<64x1xf32>
    %16 = arith.mulf %12, %15 : vector<64x1xf32>
    %17 = vector.broadcast %16 : vector<64x1xf32> to vector<64x32xf32>
    %18 = arith.mulf %6, %17 : vector<64x32xf32>
    %c0_7 = arith.constant 0 : index
    %c0_8 = arith.constant 0 : index
    %19 = vector.load %arg3[%c0_7, %c0_8] : memref<64x1xf32, #tpu.memory_space<vmem>>, vector<64x1xf32>
    %20 = vector.broadcast %19 : vector<64x1xf32> to vector<64x32xf32>
    %21 = arith.addf %18, %20 : vector<64x32xf32>
    %cst_9 = arith.constant 0.000000e+00 : f32
    %22 = vector.broadcast %cst_9 : f32 to vector<64x32xf32>
    %23 = arith.maximumf %21, %22 : vector<64x32xf32>
    %24 = arith.truncf %23 : vector<64x32xf32> to vector<64x32xbf16>
    %c0_10 = arith.constant 0 : index
    %c0_11 = arith.constant 0 : index
    %25 = vector.load %arg4[%c0_10, %c0_11] : memref<64x32xbf16, #tpu.memory_space<vmem>>, vector<64x32xbf16>
    tpu.vector_store %arg4[%c0_10, %c0_11], %24 {strides = array<i32>} : memref<64x32xbf16, #tpu.memory_space<vmem>>, vector<64x32xbf16>,
    return
  }
  func.func @transform_0(%arg0: i32) -> (i32, i32) {
    %c0_i32 = arith.constant 0 : i32
    %c0_i32_0 = arith.constant 0 : i32
    return %arg0, %c0_i32 : i32, i32
  }
  func.func @transform_1(%arg0: i32) -> (i32, i32) {
    %c0_i32 = arith.constant 0 : i32
    %c0_i32_0 = arith.constant 0 : i32
    return %arg0, %c0_i32 : i32, i32
  }
  func.func @transform_2(%arg0: i32) -> (i32, i32) {
    %c0_i32 = arith.constant 0 : i32
    %c0_i32_0 = arith.constant 0 : i32
    return %arg0, %c0_i32 : i32, i32
  }
  func.func @transform_3(%arg0: i32) -> (i32, i32) {
    %c0_i32 = arith.constant 0 : i32
    %c0_i32_0 = arith.constant 0 : i32
    return %arg0, %c0_i32 : i32, i32
  }
}

module attributes {stable_mosaic.version = 11 : i64} {
  func.func @_mm_kernel(%arg0: i32, %arg1: i32, %arg2: memref<1x64x512xbf16, #tpu.memory_space<vmem>>, %arg3: memref<1x512x32xbf16, #tpu.memory_space<vmem>>, %arg4: memref<1x64x32xf32, #tpu.memory_space<vmem>>) attributes {dimension_semantics = [#tpu.dimension_semantics<parallel>, #tpu.dimension_semantics<parallel>], iteration_bounds = array<i64: 4, 1>, scalar_prefetch = 0 : i64, scratch_operands = 0 : i64, tpu.core_type = #tpu.core_type<tc>, window_params = [{transform_indices = @transform_0, window_bounds = array<i64: 1, 64, 512>}, {transform_indices = @transform_1, window_bounds = array<i64: 1, 512, 32>}, {transform_indices = @transform_2, window_bounds = array<i64: 1, 64, 32>}]} {
    %c0 = arith.constant 0 : index
    %c0_0 = arith.constant 0 : index
    %c0_1 = arith.constant 0 : index
    %0 = vector.load %arg2[%c0, %c0_0, %c0_1] : memref<1x64x512xbf16, #tpu.memory_space<vmem>>, vector<1x64x512xbf16>
    %1 = vector.shape_cast %0 : vector<1x64x512xbf16> to vector<64x512xbf16>
    %c0_2 = arith.constant 0 : index
    %c0_3 = arith.constant 0 : index
    %c0_4 = arith.constant 0 : index
    %2 = vector.load %arg3[%c0_2, %c0_3, %c0_4] : memref<1x512x32xbf16, #tpu.memory_space<vmem>>, vector<1x512x32xbf16>
    %3 = vector.shape_cast %2 : vector<1x512x32xbf16> to vector<512x32xbf16>
    %cst = arith.constant dense<0.000000e+00> : vector<64x32xf32>
    %4 = tpu.matmul %1, %3, %cst {dimension_numbers = #tpu.dot_dimension_numbers<[1], [0], [0], [1], [0, 0, 1, 1], [], []>} : vector<64x512xbf16>, vector<512x32xbf16>, vector<64x32xf32> -> vector<64x32xf32>
    %c0_5 = arith.constant 0 : index
    %c0_6 = arith.constant 0 : index
    %c0_7 = arith.constant 0 : index
    %5 = vector.load %arg4[%c0_5, %c0_6, %c0_7] : memref<1x64x32xf32, #tpu.memory_space<vmem>>, vector<1x64x32xf32>
    %6 = vector.shape_cast %5 : vector<1x64x32xf32> to vector<64x32xf32>
    %7 = vector.shape_cast %4 : vector<64x32xf32> to vector<1x64x32xf32>
    tpu.vector_store %arg4[%c0_5, %c0_6, %c0_7], %7 {strides = array<i32>} : memref<1x64x32xf32, #tpu.memory_space<vmem>>, vector<1x64x32xf32>,
    return
  }
  func.func @transform_0(%arg0: i32, %arg1: i32) -> (i32, i32, i32) {
    %c0_i32 = arith.constant 0 : i32
    %c0_i32_0 = arith.constant 0 : i32
    %c0_i32_1 = arith.constant 0 : i32
    return %arg0, %c0_i32, %c0_i32_0 : i32, i32, i32
  }
  func.func @transform_1(%arg0: i32, %arg1: i32) -> (i32, i32, i32) {
    %c0_i32 = arith.constant 0 : i32
    %c0_i32_0 = arith.constant 0 : i32
    return %arg0, %c0_i32, %arg1 : i32, i32, i32
  }
  func.func @transform_2(%arg0: i32, %arg1: i32) -> (i32, i32, i32) {
    %c0_i32 = arith.constant 0 : i32
    %c0_i32_0 = arith.constant 0 : i32
    return %arg0, %c0_i32, %arg1 : i32, i32, i32
  }
}

module attributes {stable_mosaic.version = 11 : i64} {
  func.func @_bn_relu_phased_kernel(%arg0: i32, %arg1: memref<4x32x32xf32, #tpu.memory_space<vmem>>, %arg2: memref<1x32x1xf32, #tpu.memory_space<vmem>>, %arg3: memref<1x32x1xf32, #tpu.memory_space<vmem>>, %arg4: memref<4x32x32xbf16, #tpu.memory_space<vmem>>) attributes {dimension_semantics = [#tpu.dimension_semantics<parallel>], iteration_bounds = array<i64: 2>, scalar_prefetch = 0 : i64, scratch_operands = 0 : i64, tpu.core_type = #tpu.core_type<tc>, window_params = [{transform_indices = @transform_0, window_bounds = array<i64: 4, 32, 32>}, {transform_indices = @transform_1, window_bounds = array<i64: 1, 32, 1>}, {transform_indices = @transform_2, window_bounds = array<i64: 1, 32, 1>}, {transform_indices = @transform_3, window_bounds = array<i64: 4, 32, 32>}]} {
    %c0 = arith.constant 0 : index
    %c0_0 = arith.constant 0 : index
    %c0_1 = arith.constant 0 : index
    %0 = vector.load %arg1[%c0, %c0_0, %c0_1] : memref<4x32x32xf32, #tpu.memory_space<vmem>>, vector<4x32x32xf32>
    %cst = arith.constant dense<0.000000e+00> : vector<4x32xf32>
    %1 = vector.multi_reduction <add>, %0, %cst [2] : vector<4x32x32xf32> to vector<4x32xf32>
    %2 = vector.shape_cast %1 : vector<4x32xf32> to vector<4x32x1xf32>
    %cst_2 = arith.constant dense<0.000000e+00> : vector<32x1xf32>
    %3 = vector.multi_reduction <add>, %2, %cst_2 [0] : vector<4x32x1xf32> to vector<32x1xf32>
    %4 = vector.shape_cast %3 : vector<32x1xf32> to vector<1x32x1xf32>
    %cst_3 = arith.constant 7.812500e-03 : f32
    %5 = vector.broadcast %cst_3 : f32 to vector<1x32x1xf32>
    %6 = arith.mulf %4, %5 : vector<1x32x1xf32>
    %7 = vector.broadcast %6 : vector<1x32x1xf32> to vector<4x32x32xf32>
    %8 = arith.subf %0, %7 : vector<4x32x32xf32>
    %9 = arith.mulf %8, %8 : vector<4x32x32xf32>
    %cst_4 = arith.constant dense<0.000000e+00> : vector<4x32xf32>
    %10 = vector.multi_reduction <add>, %9, %cst_4 [2] : vector<4x32x32xf32> to vector<4x32xf32>
    %11 = vector.shape_cast %10 : vector<4x32xf32> to vector<4x32x1xf32>
    %cst_5 = arith.constant dense<0.000000e+00> : vector<32x1xf32>
    %12 = vector.multi_reduction <add>, %11, %cst_5 [0] : vector<4x32x1xf32> to vector<32x1xf32>
    %13 = vector.shape_cast %12 : vector<32x1xf32> to vector<1x32x1xf32>
    %cst_6 = arith.constant 7.812500e-03 : f32
    %14 = vector.broadcast %cst_6 : f32 to vector<1x32x1xf32>
    %15 = arith.mulf %13, %14 : vector<1x32x1xf32>
    %c0_7 = arith.constant 0 : index
    %c0_8 = arith.constant 0 : index
    %c0_9 = arith.constant 0 : index
    %16 = vector.load %arg2[%c0_7, %c0_8, %c0_9] : memref<1x32x1xf32, #tpu.memory_space<vmem>>, vector<1x32x1xf32>
    %cst_10 = arith.constant 9.99999974E-6 : f32
    %17 = vector.broadcast %cst_10 : f32 to vector<1x32x1xf32>
    %18 = arith.addf %15, %17 : vector<1x32x1xf32>
    %19 = math.rsqrt %18 : vector<1x32x1xf32>
    %20 = arith.mulf %16, %19 : vector<1x32x1xf32>
    %21 = vector.broadcast %20 : vector<1x32x1xf32> to vector<4x32x32xf32>
    %22 = arith.mulf %8, %21 : vector<4x32x32xf32>
    %c0_11 = arith.constant 0 : index
    %c0_12 = arith.constant 0 : index
    %c0_13 = arith.constant 0 : index
    %23 = vector.load %arg3[%c0_11, %c0_12, %c0_13] : memref<1x32x1xf32, #tpu.memory_space<vmem>>, vector<1x32x1xf32>
    %24 = vector.broadcast %23 : vector<1x32x1xf32> to vector<4x32x32xf32>
    %25 = arith.addf %22, %24 : vector<4x32x32xf32>
    %cst_14 = arith.constant 0.000000e+00 : f32
    %26 = vector.broadcast %cst_14 : f32 to vector<4x32x32xf32>
    %27 = arith.maximumf %25, %26 : vector<4x32x32xf32>
    %28 = arith.truncf %27 : vector<4x32x32xf32> to vector<4x32x32xbf16>
    %c0_15 = arith.constant 0 : index
    %c0_16 = arith.constant 0 : index
    %c0_17 = arith.constant 0 : index
    %29 = vector.load %arg4[%c0_15, %c0_16, %c0_17] : memref<4x32x32xbf16, #tpu.memory_space<vmem>>, vector<4x32x32xbf16>
    tpu.vector_store %arg4[%c0_15, %c0_16, %c0_17], %28 {strides = array<i32>} : memref<4x32x32xbf16, #tpu.memory_space<vmem>>, vector<4x32x32xbf16>,
    return
  }
  func.func @transform_0(%arg0: i32) -> (i32, i32, i32) {
    %c0_i32 = arith.constant 0 : i32
    %c0_i32_0 = arith.constant 0 : i32
    %c0_i32_1 = arith.constant 0 : i32
    return %c0_i32, %arg0, %c0_i32_0 : i32, i32, i32
  }
  func.func @transform_1(%arg0: i32) -> (i32, i32, i32) {
    %c0_i32 = arith.constant 0 : i32
    %c0_i32_0 = arith.constant 0 : i32
    %c0_i32_1 = arith.constant 0 : i32
    return %c0_i32, %arg0, %c0_i32_0 : i32, i32, i32
  }
  func.func @transform_2(%arg0: i32) -> (i32, i32, i32) {
    %c0_i32 = arith.constant 0 : i32
    %c0_i32_0 = arith.constant 0 : i32
    %c0_i32_1 = arith.constant 0 : i32
    return %c0_i32, %arg0, %c0_i32_0 : i32, i32, i32
  }
  func.func @transform_3(%arg0: i32) -> (i32, i32, i32) {
    %c0_i32 = arith.constant 0 : i32
    %c0_i32_0 = arith.constant 0 : i32
    %c0_i32_1 = arith.constant 0 : i32
    return %c0_i32, %arg0, %c0_i32_0 : i32, i32, i32
  }
}

module attributes {stable_mosaic.version = 11 : i64} {
  func.func @_bn_relu_phased_kernel(%arg0: i32, %arg1: memref<4x16x128xf32, #tpu.memory_space<vmem>>, %arg2: memref<1x16x1xf32, #tpu.memory_space<vmem>>, %arg3: memref<1x16x1xf32, #tpu.memory_space<vmem>>, %arg4: memref<4x16x128xbf16, #tpu.memory_space<vmem>>) attributes {dimension_semantics = [#tpu.dimension_semantics<parallel>], iteration_bounds = array<i64: 2>, scalar_prefetch = 0 : i64, scratch_operands = 0 : i64, tpu.core_type = #tpu.core_type<tc>, window_params = [{transform_indices = @transform_0, window_bounds = array<i64: 4, 16, 128>}, {transform_indices = @transform_1, window_bounds = array<i64: 1, 16, 1>}, {transform_indices = @transform_2, window_bounds = array<i64: 1, 16, 1>}, {transform_indices = @transform_3, window_bounds = array<i64: 4, 16, 128>}]} {
    %c0 = arith.constant 0 : index
    %c0_0 = arith.constant 0 : index
    %c0_1 = arith.constant 0 : index
    %0 = vector.load %arg1[%c0, %c0_0, %c0_1] : memref<4x16x128xf32, #tpu.memory_space<vmem>>, vector<4x16x128xf32>
    %cst = arith.constant dense<0.000000e+00> : vector<4x16xf32>
    %1 = vector.multi_reduction <add>, %0, %cst [2] : vector<4x16x128xf32> to vector<4x16xf32>
    %2 = vector.shape_cast %1 : vector<4x16xf32> to vector<4x16x1xf32>
    %cst_2 = arith.constant dense<0.000000e+00> : vector<16x1xf32>
    %3 = vector.multi_reduction <add>, %2, %cst_2 [0] : vector<4x16x1xf32> to vector<16x1xf32>
    %4 = vector.shape_cast %3 : vector<16x1xf32> to vector<1x16x1xf32>
    %cst_3 = arith.constant 0.001953125 : f32
    %5 = vector.broadcast %cst_3 : f32 to vector<1x16x1xf32>
    %6 = arith.mulf %4, %5 : vector<1x16x1xf32>
    %7 = vector.broadcast %6 : vector<1x16x1xf32> to vector<4x16x128xf32>
    %8 = arith.subf %0, %7 : vector<4x16x128xf32>
    %9 = arith.mulf %8, %8 : vector<4x16x128xf32>
    %cst_4 = arith.constant dense<0.000000e+00> : vector<4x16xf32>
    %10 = vector.multi_reduction <add>, %9, %cst_4 [2] : vector<4x16x128xf32> to vector<4x16xf32>
    %11 = vector.shape_cast %10 : vector<4x16xf32> to vector<4x16x1xf32>
    %cst_5 = arith.constant dense<0.000000e+00> : vector<16x1xf32>
    %12 = vector.multi_reduction <add>, %11, %cst_5 [0] : vector<4x16x1xf32> to vector<16x1xf32>
    %13 = vector.shape_cast %12 : vector<16x1xf32> to vector<1x16x1xf32>
    %cst_6 = arith.constant 0.001953125 : f32
    %14 = vector.broadcast %cst_6 : f32 to vector<1x16x1xf32>
    %15 = arith.mulf %13, %14 : vector<1x16x1xf32>
    %c0_7 = arith.constant 0 : index
    %c0_8 = arith.constant 0 : index
    %c0_9 = arith.constant 0 : index
    %16 = vector.load %arg2[%c0_7, %c0_8, %c0_9] : memref<1x16x1xf32, #tpu.memory_space<vmem>>, vector<1x16x1xf32>
    %cst_10 = arith.constant 9.99999974E-6 : f32
    %17 = vector.broadcast %cst_10 : f32 to vector<1x16x1xf32>
    %18 = arith.addf %15, %17 : vector<1x16x1xf32>
    %19 = math.rsqrt %18 : vector<1x16x1xf32>
    %20 = arith.mulf %16, %19 : vector<1x16x1xf32>
    %21 = vector.broadcast %20 : vector<1x16x1xf32> to vector<4x16x128xf32>
    %22 = arith.mulf %8, %21 : vector<4x16x128xf32>
    %c0_11 = arith.constant 0 : index
    %c0_12 = arith.constant 0 : index
    %c0_13 = arith.constant 0 : index
    %23 = vector.load %arg3[%c0_11, %c0_12, %c0_13] : memref<1x16x1xf32, #tpu.memory_space<vmem>>, vector<1x16x1xf32>
    %24 = vector.broadcast %23 : vector<1x16x1xf32> to vector<4x16x128xf32>
    %25 = arith.addf %22, %24 : vector<4x16x128xf32>
    %cst_14 = arith.constant 0.000000e+00 : f32
    %26 = vector.broadcast %cst_14 : f32 to vector<4x16x128xf32>
    %27 = arith.maximumf %25, %26 : vector<4x16x128xf32>
    %28 = arith.truncf %27 : vector<4x16x128xf32> to vector<4x16x128xbf16>
    %c0_15 = arith.constant 0 : index
    %c0_16 = arith.constant 0 : index
    %c0_17 = arith.constant 0 : index
    %29 = vector.load %arg4[%c0_15, %c0_16, %c0_17] : memref<4x16x128xbf16, #tpu.memory_space<vmem>>, vector<4x16x128xbf16>
    tpu.vector_store %arg4[%c0_15, %c0_16, %c0_17], %28 {strides = array<i32>} : memref<4x16x128xbf16, #tpu.memory_space<vmem>>, vector<4x16x128xbf16>,
    return
  }
  func.func @transform_0(%arg0: i32) -> (i32, i32, i32) {
    %c0_i32 = arith.constant 0 : i32
    %c0_i32_0 = arith.constant 0 : i32
    %c0_i32_1 = arith.constant 0 : i32
    return %c0_i32, %arg0, %c0_i32_0 : i32, i32, i32
  }
  func.func @transform_1(%arg0: i32) -> (i32, i32, i32) {
    %c0_i32 = arith.constant 0 : i32
    %c0_i32_0 = arith.constant 0 : i32
    %c0_i32_1 = arith.constant 0 : i32
    return %c0_i32, %arg0, %c0_i32_0 : i32, i32, i32
  }
  func.func @transform_2(%arg0: i32) -> (i32, i32, i32) {
    %c0_i32 = arith.constant 0 : i32
    %c0_i32_0 = arith.constant 0 : i32
    %c0_i32_1 = arith.constant 0 : i32
    return %c0_i32, %arg0, %c0_i32_0 : i32, i32, i32
  }
  func.func @transform_3(%arg0: i32) -> (i32, i32, i32) {
    %c0_i32 = arith.constant 0 : i32
    %c0_i32_0 = arith.constant 0 : i32
    %c0_i32_1 = arith.constant 0 : i32
    return %c0_i32, %arg0, %c0_i32_0 : i32, i32, i32
  }
}

module attributes {stable_mosaic.version = 11 : i64} {
  func.func @_mm_kernel(%arg0: i32, %arg1: i32, %arg2: memref<1x32x256xbf16, #tpu.memory_space<vmem>>, %arg3: memref<1x256x128xbf16, #tpu.memory_space<vmem>>, %arg4: memref<1x32x128xf32, #tpu.memory_space<vmem>>) attributes {dimension_semantics = [#tpu.dimension_semantics<parallel>, #tpu.dimension_semantics<parallel>], iteration_bounds = array<i64: 4, 1>, scalar_prefetch = 0 : i64, scratch_operands = 0 : i64, tpu.core_type = #tpu.core_type<tc>, window_params = [{transform_indices = @transform_0, window_bounds = array<i64: 1, 32, 256>}, {transform_indices = @transform_1, window_bounds = array<i64: 1, 256, 128>}, {transform_indices = @transform_2, window_bounds = array<i64: 1, 32, 128>}]} {
    %c0 = arith.constant 0 : index
    %c0_0 = arith.constant 0 : index
    %c0_1 = arith.constant 0 : index
    %0 = vector.load %arg2[%c0, %c0_0, %c0_1] : memref<1x32x256xbf16, #tpu.memory_space<vmem>>, vector<1x32x256xbf16>
    %1 = vector.shape_cast %0 : vector<1x32x256xbf16> to vector<32x256xbf16>
    %c0_2 = arith.constant 0 : index
    %c0_3 = arith.constant 0 : index
    %c0_4 = arith.constant 0 : index
    %2 = vector.load %arg3[%c0_2, %c0_3, %c0_4] : memref<1x256x128xbf16, #tpu.memory_space<vmem>>, vector<1x256x128xbf16>
    %3 = vector.shape_cast %2 : vector<1x256x128xbf16> to vector<256x128xbf16>
    %cst = arith.constant dense<0.000000e+00> : vector<32x128xf32>
    %4 = tpu.matmul %1, %3, %cst {dimension_numbers = #tpu.dot_dimension_numbers<[1], [0], [0], [1], [0, 0, 1, 1], [], []>} : vector<32x256xbf16>, vector<256x128xbf16>, vector<32x128xf32> -> vector<32x128xf32>
    %c0_5 = arith.constant 0 : index
    %c0_6 = arith.constant 0 : index
    %c0_7 = arith.constant 0 : index
    %5 = vector.load %arg4[%c0_5, %c0_6, %c0_7] : memref<1x32x128xf32, #tpu.memory_space<vmem>>, vector<1x32x128xf32>
    %6 = vector.shape_cast %5 : vector<1x32x128xf32> to vector<32x128xf32>
    %7 = vector.shape_cast %4 : vector<32x128xf32> to vector<1x32x128xf32>
    tpu.vector_store %arg4[%c0_5, %c0_6, %c0_7], %7 {strides = array<i32>} : memref<1x32x128xf32, #tpu.memory_space<vmem>>, vector<1x32x128xf32>,
    return
  }
  func.func @transform_0(%arg0: i32, %arg1: i32) -> (i32, i32, i32) {
    %c0_i32 = arith.constant 0 : i32
    %c0_i32_0 = arith.constant 0 : i32
    %c0_i32_1 = arith.constant 0 : i32
    return %arg0, %c0_i32, %c0_i32_0 : i32, i32, i32
  }
  func.func @transform_1(%arg0: i32, %arg1: i32) -> (i32, i32, i32) {
    %c0_i32 = arith.constant 0 : i32
    %c0_i32_0 = arith.constant 0 : i32
    return %arg0, %c0_i32, %arg1 : i32, i32, i32
  }
  func.func @transform_2(%arg0: i32, %arg1: i32) -> (i32, i32, i32) {
    %c0_i32 = arith.constant 0 : i32
    %c0_i32_0 = arith.constant 0 : i32
    return %arg0, %c0_i32, %arg1 : i32, i32, i32
  }
}

module attributes {stable_mosaic.version = 11 : i64} {
  func.func @_mm_kernel(%arg0: i32, %arg1: i32, %arg2: memref<1x16x128xbf16, #tpu.memory_space<vmem>>, %arg3: memref<1x128x512xbf16, #tpu.memory_space<vmem>>, %arg4: memref<1x16x512xf32, #tpu.memory_space<vmem>>) attributes {dimension_semantics = [#tpu.dimension_semantics<parallel>, #tpu.dimension_semantics<parallel>], iteration_bounds = array<i64: 4, 1>, scalar_prefetch = 0 : i64, scratch_operands = 0 : i64, tpu.core_type = #tpu.core_type<tc>, window_params = [{transform_indices = @transform_0, window_bounds = array<i64: 1, 16, 128>}, {transform_indices = @transform_1, window_bounds = array<i64: 1, 128, 512>}, {transform_indices = @transform_2, window_bounds = array<i64: 1, 16, 512>}]} {
    %c0 = arith.constant 0 : index
    %c0_0 = arith.constant 0 : index
    %c0_1 = arith.constant 0 : index
    %0 = vector.load %arg2[%c0, %c0_0, %c0_1] : memref<1x16x128xbf16, #tpu.memory_space<vmem>>, vector<1x16x128xbf16>
    %1 = vector.shape_cast %0 : vector<1x16x128xbf16> to vector<16x128xbf16>
    %c0_2 = arith.constant 0 : index
    %c0_3 = arith.constant 0 : index
    %c0_4 = arith.constant 0 : index
    %2 = vector.load %arg3[%c0_2, %c0_3, %c0_4] : memref<1x128x512xbf16, #tpu.memory_space<vmem>>, vector<1x128x512xbf16>
    %3 = vector.shape_cast %2 : vector<1x128x512xbf16> to vector<128x512xbf16>
    %cst = arith.constant dense<0.000000e+00> : vector<16x512xf32>
    %4 = tpu.matmul %1, %3, %cst {dimension_numbers = #tpu.dot_dimension_numbers<[1], [0], [0], [1], [0, 0, 1, 1], [], []>} : vector<16x128xbf16>, vector<128x512xbf16>, vector<16x512xf32> -> vector<16x512xf32>
    %c0_5 = arith.constant 0 : index
    %c0_6 = arith.constant 0 : index
    %c0_7 = arith.constant 0 : index
    %5 = vector.load %arg4[%c0_5, %c0_6, %c0_7] : memref<1x16x512xf32, #tpu.memory_space<vmem>>, vector<1x16x512xf32>
    %6 = vector.shape_cast %5 : vector<1x16x512xf32> to vector<16x512xf32>
    %7 = vector.shape_cast %4 : vector<16x512xf32> to vector<1x16x512xf32>
    tpu.vector_store %arg4[%c0_5, %c0_6, %c0_7], %7 {strides = array<i32>} : memref<1x16x512xf32, #tpu.memory_space<vmem>>, vector<1x16x512xf32>,
    return
  }
  func.func @transform_0(%arg0: i32, %arg1: i32) -> (i32, i32, i32) {
    %c0_i32 = arith.constant 0 : i32
    %c0_i32_0 = arith.constant 0 : i32
    %c0_i32_1 = arith.constant 0 : i32
    return %arg0, %c0_i32, %c0_i32_0 : i32, i32, i32
  }
  func.func @transform_1(%arg0: i32, %arg1: i32) -> (i32, i32, i32) {
    %c0_i32 = arith.constant 0 : i32
    %c0_i32_0 = arith.constant 0 : i32
    return %arg0, %c0_i32, %arg1 : i32, i32, i32
  }
  func.func @transform_2(%arg0: i32, %arg1: i32) -> (i32, i32, i32) {
    %c0_i32 = arith.constant 0 : i32
    %c0_i32_0 = arith.constant 0 : i32
    return %arg0, %c0_i32, %arg1 : i32, i32, i32
  }
}

module attributes {stable_mosaic.version = 11 : i64} {
  func.func @_bn_relu_phased_kernel(%arg0: i32, %arg1: memref<4x8x512xf32, #tpu.memory_space<vmem>>, %arg2: memref<1x8x1xf32, #tpu.memory_space<vmem>>, %arg3: memref<1x8x1xf32, #tpu.memory_space<vmem>>, %arg4: memref<4x8x512xbf16, #tpu.memory_space<vmem>>) attributes {dimension_semantics = [#tpu.dimension_semantics<parallel>], iteration_bounds = array<i64: 2>, scalar_prefetch = 0 : i64, scratch_operands = 0 : i64, tpu.core_type = #tpu.core_type<tc>, window_params = [{transform_indices = @transform_0, window_bounds = array<i64: 4, 8, 512>}, {transform_indices = @transform_1, window_bounds = array<i64: 1, 8, 1>}, {transform_indices = @transform_2, window_bounds = array<i64: 1, 8, 1>}, {transform_indices = @transform_3, window_bounds = array<i64: 4, 8, 512>}]} {
    %c0 = arith.constant 0 : index
    %c0_0 = arith.constant 0 : index
    %c0_1 = arith.constant 0 : index
    %0 = vector.load %arg1[%c0, %c0_0, %c0_1] : memref<4x8x512xf32, #tpu.memory_space<vmem>>, vector<4x8x512xf32>
    %cst = arith.constant dense<0.000000e+00> : vector<4x8xf32>
    %1 = vector.multi_reduction <add>, %0, %cst [2] : vector<4x8x512xf32> to vector<4x8xf32>
    %2 = vector.shape_cast %1 : vector<4x8xf32> to vector<4x8x1xf32>
    %cst_2 = arith.constant dense<0.000000e+00> : vector<8x1xf32>
    %3 = vector.multi_reduction <add>, %2, %cst_2 [0] : vector<4x8x1xf32> to vector<8x1xf32>
    %4 = vector.shape_cast %3 : vector<8x1xf32> to vector<1x8x1xf32>
    %cst_3 = arith.constant 4.8828125E-4 : f32
    %5 = vector.broadcast %cst_3 : f32 to vector<1x8x1xf32>
    %6 = arith.mulf %4, %5 : vector<1x8x1xf32>
    %7 = vector.broadcast %6 : vector<1x8x1xf32> to vector<4x8x512xf32>
    %8 = arith.subf %0, %7 : vector<4x8x512xf32>
    %9 = arith.mulf %8, %8 : vector<4x8x512xf32>
    %cst_4 = arith.constant dense<0.000000e+00> : vector<4x8xf32>
    %10 = vector.multi_reduction <add>, %9, %cst_4 [2] : vector<4x8x512xf32> to vector<4x8xf32>
    %11 = vector.shape_cast %10 : vector<4x8xf32> to vector<4x8x1xf32>
    %cst_5 = arith.constant dense<0.000000e+00> : vector<8x1xf32>
    %12 = vector.multi_reduction <add>, %11, %cst_5 [0] : vector<4x8x1xf32> to vector<8x1xf32>
    %13 = vector.shape_cast %12 : vector<8x1xf32> to vector<1x8x1xf32>
    %cst_6 = arith.constant 4.8828125E-4 : f32
    %14 = vector.broadcast %cst_6 : f32 to vector<1x8x1xf32>
    %15 = arith.mulf %13, %14 : vector<1x8x1xf32>
    %c0_7 = arith.constant 0 : index
    %c0_8 = arith.constant 0 : index
    %c0_9 = arith.constant 0 : index
    %16 = vector.load %arg2[%c0_7, %c0_8, %c0_9] : memref<1x8x1xf32, #tpu.memory_space<vmem>>, vector<1x8x1xf32>
    %cst_10 = arith.constant 9.99999974E-6 : f32
    %17 = vector.broadcast %cst_10 : f32 to vector<1x8x1xf32>
    %18 = arith.addf %15, %17 : vector<1x8x1xf32>
    %19 = math.rsqrt %18 : vector<1x8x1xf32>
    %20 = arith.mulf %16, %19 : vector<1x8x1xf32>
    %21 = vector.broadcast %20 : vector<1x8x1xf32> to vector<4x8x512xf32>
    %22 = arith.mulf %8, %21 : vector<4x8x512xf32>
    %c0_11 = arith.constant 0 : index
    %c0_12 = arith.constant 0 : index
    %c0_13 = arith.constant 0 : index
    %23 = vector.load %arg3[%c0_11, %c0_12, %c0_13] : memref<1x8x1xf32, #tpu.memory_space<vmem>>, vector<1x8x1xf32>
    %24 = vector.broadcast %23 : vector<1x8x1xf32> to vector<4x8x512xf32>
    %25 = arith.addf %22, %24 : vector<4x8x512xf32>
    %cst_14 = arith.constant 0.000000e+00 : f32
    %26 = vector.broadcast %cst_14 : f32 to vector<4x8x512xf32>
    %27 = arith.maximumf %25, %26 : vector<4x8x512xf32>
    %28 = arith.truncf %27 : vector<4x8x512xf32> to vector<4x8x512xbf16>
    %c0_15 = arith.constant 0 : index
    %c0_16 = arith.constant 0 : index
    %c0_17 = arith.constant 0 : index
    %29 = vector.load %arg4[%c0_15, %c0_16, %c0_17] : memref<4x8x512xbf16, #tpu.memory_space<vmem>>, vector<4x8x512xbf16>
    tpu.vector_store %arg4[%c0_15, %c0_16, %c0_17], %28 {strides = array<i32>} : memref<4x8x512xbf16, #tpu.memory_space<vmem>>, vector<4x8x512xbf16>,
    return
  }
  func.func @transform_0(%arg0: i32) -> (i32, i32, i32) {
    %c0_i32 = arith.constant 0 : i32
    %c0_i32_0 = arith.constant 0 : i32
    %c0_i32_1 = arith.constant 0 : i32
    return %c0_i32, %arg0, %c0_i32_0 : i32, i32, i32
  }
  func.func @transform_1(%arg0: i32) -> (i32, i32, i32) {
    %c0_i32 = arith.constant 0 : i32
    %c0_i32_0 = arith.constant 0 : i32
    %c0_i32_1 = arith.constant 0 : i32
    return %c0_i32, %arg0, %c0_i32_0 : i32, i32, i32
  }
  func.func @transform_2(%arg0: i32) -> (i32, i32, i32) {
    %c0_i32 = arith.constant 0 : i32
    %c0_i32_0 = arith.constant 0 : i32
    %c0_i32_1 = arith.constant 0 : i32
    return %c0_i32, %arg0, %c0_i32_0 : i32, i32, i32
  }
  func.func @transform_3(%arg0: i32) -> (i32, i32, i32) {
    %c0_i32 = arith.constant 0 : i32
    %c0_i32_0 = arith.constant 0 : i32
    %c0_i32_1 = arith.constant 0 : i32
    return %c0_i32, %arg0, %c0_i32_0 : i32, i32, i32
  }
}

module attributes {stable_mosaic.version = 11 : i64} {
  func.func @_mm_tanh_kernel(%arg0: i32, %arg1: i32, %arg2: memref<1x3x64xbf16, #tpu.memory_space<vmem>>, %arg3: memref<1x64x512xbf16, #tpu.memory_space<vmem>>, %arg4: memref<1x3x512xf32, #tpu.memory_space<vmem>>) attributes {dimension_semantics = [#tpu.dimension_semantics<parallel>, #tpu.dimension_semantics<parallel>], iteration_bounds = array<i64: 4, 4>, scalar_prefetch = 0 : i64, scratch_operands = 0 : i64, tpu.core_type = #tpu.core_type<tc>, window_params = [{transform_indices = @transform_0, window_bounds = array<i64: 1, 3, 64>}, {transform_indices = @transform_1, window_bounds = array<i64: 1, 64, 512>}, {transform_indices = @transform_2, window_bounds = array<i64: 1, 3, 512>}]} {
    %c0 = arith.constant 0 : index
    %c0_0 = arith.constant 0 : index
    %c0_1 = arith.constant 0 : index
    %0 = vector.load %arg2[%c0, %c0_0, %c0_1] : memref<1x3x64xbf16, #tpu.memory_space<vmem>>, vector<1x3x64xbf16>
    %1 = vector.shape_cast %0 : vector<1x3x64xbf16> to vector<3x64xbf16>
    %c0_2 = arith.constant 0 : index
    %c0_3 = arith.constant 0 : index
    %c0_4 = arith.constant 0 : index
    %2 = vector.load %arg3[%c0_2, %c0_3, %c0_4] : memref<1x64x512xbf16, #tpu.memory_space<vmem>>, vector<1x64x512xbf16>
    %3 = vector.shape_cast %2 : vector<1x64x512xbf16> to vector<64x512xbf16>
    %cst = arith.constant dense<0.000000e+00> : vector<3x512xf32>
    %4 = tpu.matmul %1, %3, %cst {dimension_numbers = #tpu.dot_dimension_numbers<[1], [0], [0], [1], [0, 0, 1, 1], [], []>} : vector<3x64xbf16>, vector<64x512xbf16>, vector<3x512xf32> -> vector<3x512xf32>
    %5 = math.tanh %4 : vector<3x512xf32>
    %c0_5 = arith.constant 0 : index
    %c0_6 = arith.constant 0 : index
    %c0_7 = arith.constant 0 : index
    %6 = vector.load %arg4[%c0_5, %c0_6, %c0_7] : memref<1x3x512xf32, #tpu.memory_space<vmem>>, vector<1x3x512xf32>
    %7 = vector.shape_cast %6 : vector<1x3x512xf32> to vector<3x512xf32>
    %8 = vector.shape_cast %5 : vector<3x512xf32> to vector<1x3x512xf32>
    tpu.vector_store %arg4[%c0_5, %c0_6, %c0_7], %8 {strides = array<i32>} : memref<1x3x512xf32, #tpu.memory_space<vmem>>, vector<1x3x512xf32>,
    return
  }
  func.func @transform_0(%arg0: i32, %arg1: i32) -> (i32, i32, i32) {
    %c0_i32 = arith.constant 0 : i32
    %c0_i32_0 = arith.constant 0 : i32
    %c0_i32_1 = arith.constant 0 : i32
    return %arg0, %c0_i32, %c0_i32_0 : i32, i32, i32
  }
  func.func @transform_1(%arg0: i32, %arg1: i32) -> (i32, i32, i32) {
    %c0_i32 = arith.constant 0 : i32
    %c0_i32_0 = arith.constant 0 : i32
    return %arg0, %c0_i32, %arg1 : i32, i32, i32
  }
  func.func @transform_2(%arg0: i32, %arg1: i32) -> (i32, i32, i32) {
    %c0_i32 = arith.constant 0 : i32
    %c0_i32_0 = arith.constant 0 : i32
    return %arg0, %c0_i32, %arg1 : i32, i32, i32
  }
}

</mosaic_0001>

<bundles_post_ra>
// kernel: generator_forward.9
= control target key start
LH: loop header
LB: loop body
LE: loop exit
PB: predicated region body
PF: predicated region fallthrough
CT: control target
= control target key end

     0   :  { %7 = vsyncpa [#allocation3], 0  ;;  %s796_s9 = smov [#allocation2]   ;;  %s869_s0 = inlined_call_operand.vmem [shape: f32[2,16], index: 0, kind: input, shape index: {}]   ;;  %s870_s1 = inlined_call_operand.hbm [shape: f32[16,2048], index: 1, kind: input, shape index: {}]   ;;  %s871_s2 = inlined_call_operand.vmem [shape: f32[2,2048], index: 2, kind: output, shape index: {}]  }
   0x1   :  { %s15_s10 = sshll.u32 %s796_s9, 4  ;;  %s772_s13 = scalar_lea.hbm %s870_s1, 4096  ;;  %s16_s10 = int_to_ptr.vmem [resolvable:$true] %s15_s10 }
   0x2   :  { %p773_p0 = scmp.ne.s32.totalorder %s870_s1, %s772_s13  ;;  %p776_p1 = scmp.lt.u32.totalorder %s772_s13, %s870_s1 }
   0x4   :  { %p778_p2 = pnand %p776_p1, %p773_p0 }
   0x6   :  { %781 = shalt.err (!%p778_p2)
}
   0x7   :  { %s782_s18 = scalar_lea.vmem %s16_s10, 4096  ;;  %p787_p4 = scmp.lt.s32.totalorder %s16_s10, %s16_s10 }
   0x8   :  { %p783_p3 = scmp.ne.s32.totalorder %s16_s10, %s782_s18  ;;  %p788_p5 = scmp.lt.s32.totalorder %s782_s18, %s782_s18 }
   0xa   :  { %p789_p6 = por %p788_p5, %p787_p4 }
   0xc   :  { %p790_p7 = pnand %p789_p6, %p783_p3 }
   0xe   :  { %793 = shalt.err (!%p790_p7)
}
   0xf   :  { %s797_s19 = smov 2048   ;;  %s798_s20 = smov 128  }
  0x10   :  { %21 = dma.hbm_to_vmem [thread:$0]  %s870_s1, 4096, %s16_s10, [#allocation3], %s797_s19, %s797_s19, %s798_s20  }
  0x11   :  { %794 = dma.done.wait [#allocation3], 4096  }
  0x12   :  { %795 = vsyncadd [#allocation3], 4294963200  ;;  %v799_v0 = vmov 0.0   ;;  %v27_v1 = vld [vmem:[#allocation2 + $0x8] sm:$0xff]  ;;  %v29_v3 = vld [vmem:[#allocation2 + $0x18] sm:$0xff]  ;;  %vm58_vm0 = vcmask 130048   ;;  %v651_v52 = vlaneseq }
  0x13   :  { %126 = vmatprep.mubr.f32.mxu0 %v799_v0  ;;  %197 = vmatprep.mubr.f32.mxu1 %v799_v0  ;;  %v43_v2 = vld [vmem:[#allocation2 + $0x88] sm:$0xff]  ;;  %v45_v5 = vld [vmem:[#allocation2 + $0x98] sm:$0xff]  ;;  %v26_v6 = vld [vmem:[#allocation2] sm:$0xff]  ;;  %v800_v50 = vmov 1983009808  }
  0x14   :  { %v735_v4 = vpack.c.bf16 %v43_v2, %v27_v1  ;;  %v42_v7 = vld [vmem:[#allocation2 + $0x80] sm:$0xff]  ;;  %v739_v8 = vpack.c.bf16 %v45_v5, %v29_v3  ;;  %v28_v10 = vld [vmem:[#allocation2 + $0x10] sm:$0xff]  ;;  %v31_v14 = vld [vmem:[#allocation2 + $0x28] sm:$0xff]  ;;  %v649_v51 = vunpack.c.l.s4 %v800_v50  ;;  %v652_v54 = vshrl.u32 %v651_v52, 7 }
  0x15   :  { %v737_v9 = vpack.c.bf16 %v42_v7, %v26_v6  ;;  %v44_v11 = vld [vmem:[#allocation2 + $0x90] sm:$0xff]  ;;  %v47_v15 = vld [vmem:[#allocation2 + $0xa8] sm:$0xff]  ;;  %v33_v16 = vld [vmem:[#allocation2 + $0x38] sm:$0xff] }
  0x16   :  { %v833_v12 = vld [vmem:[%s869_s0] sm:$0x3]  ;;  %736 = vmatprep.subr.bf16.mxu0 %v735_v4  ;;  %v741_v13 = vpack.c.bf16 %v44_v11, %v28_v10  ;;  %740 = vmatprep.subr.bf16.mxu1 %v739_v8  ;;  %v743_v17 = vpack.c.bf16 %v47_v15, %v31_v14  ;;  %v49_v18 = vld [vmem:[#allocation2 + $0xb8] sm:$0xff]  ;;  %v30_v19 = vld [vmem:[#allocation2 + $0x20] sm:$0xff]  ;;  %v650_v53 = vunpack.c.0.s8 %v649_v51 }
  0x17   :  { %738 = vmatpush1.bf16.msra.mxu0 %v737_v9  ;;  %v46_v20 = vld [vmem:[#allocation2 + $0xa0] sm:$0xff]  ;;  %v747_v21 = vpack.c.bf16 %v49_v18, %v33_v16  ;;  %v32_v23 = vld [vmem:[#allocation2 + $0x30] sm:$0xff]  ;;  %v35_v25 = vld [vmem:[#allocation2 + $0x48] sm:$0xff] }
  0x18   :  { %742 = vmatpush1.bf16.msra.mxu1 %v741_v13  ;;  %v745_v22 = vpack.c.bf16 %v46_v20, %v30_v19  ;;  %v48_v24 = vld [vmem:[#allocation2 + $0xb0] sm:$0xff]  ;;  %744 = vmatprep.subr.bf16.mxu0 %v743_v17  ;;  %v51_v27 = vld [vmem:[#allocation2 + $0xc8] sm:$0xff]  ;;  %v37_v28 = vld [vmem:[#allocation2 + $0x58] sm:$0xff]  ;;  %v653_v56 = vsub.s32 %v650_v53, %v652_v54 }
  0x19   :  { %v749_v26 = vpack.c.bf16 %v48_v24, %v32_v23  ;;  %v53_v29 = vld [vmem:[#allocation2 + $0xd8] sm:$0xff]  ;;  %748 = vmatprep.subr.bf16.mxu1 %v747_v21  ;;  %v751_v30 = vpack.c.bf16 %v51_v27, %v35_v25  ;;  %v34_v32 = vld [vmem:[#allocation2 + $0x40] sm:$0xff]  ;;  %v36_v34 = vld [vmem:[#allocation2 + $0x50] sm:$0xff] }
  0x1a   :  { %727 = vmatmul.mubr.msk.f32.vlgmr.msra.gmra.mrb[0].mxu0 %vm58_vm0, %v833_v12  ;;  %v755_v31 = vpack.c.bf16 %v53_v29, %v37_v28  ;;  %v50_v33 = vld [vmem:[#allocation2 + $0xc0] sm:$0xff]  ;;  %v52_v36 = vld [vmem:[#allocation2 + $0xd0] sm:$0xff]  ;;  %v39_v37 = vld [vmem:[#allocation2 + $0x68] sm:$0xff] }
  0x1b   :  { %728 = vmatmul.mubr.msk.f32.vlgmr.msra.gmra.mrb[0].mxu1 %vm58_vm0, %v833_v12  ;;  %746 = vmatpush1.bf16.msra.mxu0 %v745_v22  ;;  %v753_v35 = vpack.c.bf16 %v50_v33, %v34_v32  ;;  %v55_v38 = vld [vmem:[#allocation2 + $0xe8] sm:$0xff]  ;;  %v757_v39 = vpack.c.bf16 %v52_v36, %v36_v34  ;;  %v41_v40 = vld [vmem:[#allocation2 + $0x78] sm:$0xff]  ;;  %v38_v42 = vld [vmem:[#allocation2 + $0x60] sm:$0xff] }
  0x1c   :  { %750 = vmatpush1.bf16.msra.mxu1 %v749_v26  ;;  %268 = vmatprep.mubr.f32.mxu0 %v799_v0  ;;  %v57_v41 = vld [vmem:[#allocation2 + $0xf8] sm:$0xff]  ;;  %v759_v43 = vpack.c.bf16 %v55_v38, %v39_v37  ;;  %v54_v44 = vld [vmem:[#allocation2 + $0xe0] sm:$0xff]  ;;  %v40_v45 = vld [vmem:[#allocation2 + $0x70] sm:$0xff] }
  0x1d   :  { %339 = vmatprep.mubr.f32.mxu1 %v799_v0  ;;  %752 = vmatprep.subr.bf16.mxu0 %v751_v30  ;;  %v56_v46 = vld [vmem:[#allocation2 + $0xf0] sm:$0xff]  ;;  %v763_v47 = vpack.c.bf16 %v57_v41, %v41_v40  ;;  %v761_v48 = vpack.c.bf16 %v54_v44, %v38_v42 }
  0x1e   :  { %729 = vmatmul.mubr.msk.f32.vlgmr.msra.gmra.mrb[2].mxu0 %vm58_vm0, %v833_v12  ;;  %756 = vmatprep.subr.bf16.mxu1 %v755_v31  ;;  %v765_v49 = vpack.c.bf16 %v56_v46, %v40_v45 }
  0x1f   :  { %730 = vmatmul.mubr.msk.f32.vlgmr.msra.gmra.mrb[2].mxu1 %vm58_vm0, %v833_v12  ;;  %754 = vmatpush1.bf16.msra.mxu0 %v753_v35 }
  0x20   :  { %758 = vmatpush1.bf16.msra.mxu1 %v757_v39  ;;  %410 = vmatprep.mubr.f32.mxu0 %v799_v0 }
  0x21   :  { %481 = vmatprep.mubr.f32.mxu1 %v799_v0  ;;  %760 = vmatprep.subr.bf16.mxu0 %v759_v43 }
  0x22   :  { %731 = vmatmul.mubr.msk.f32.vlgmr.msra.gmra.mrb[4].mxu0 %vm58_vm0, %v833_v12  ;;  %764 = vmatprep.subr.bf16.mxu1 %v763_v47 }
  0x23   :  { %732 = vmatmul.mubr.msk.f32.vlgmr.msra.gmra.mrb[4].mxu1 %vm58_vm0, %v833_v12  ;;  %762 = vmatpush1.bf16.msra.mxu0 %v761_v48 }
  0x24   :  { %766 = vmatpush1.bf16.msra.mxu1 %v765_v49  ;;  %552 = vmatprep.mubr.f32.mxu0 %v799_v0 }
  0x25   :  { %623 = vmatprep.mubr.f32.mxu1 %v799_v0 }
  0x26   :  { %733 = vmatmul.mubr.msk.f32.vlgmr.msra.gmra.mrb[6].mxu0 %vm58_vm0, %v833_v12 }
  0x27   :  { %734 = vmatmul.mubr.msk.f32.vlgmr.msra.gmra.mrb[6].mxu1 %vm58_vm0, %v833_v12 }
  0xed   :  { %v128_v55 = vpop.f32.mrb[0].mxu0 }
  0xee   :  { %v199_v57 = vpop.f32.mrb[0].mxu1  ;;  %v130_v58 = vpop.f32.mrb[1].mxu0 }
  0xef   :  { %v646_v59 = vcombine.low %v128_v55, %v130_v58  ;;  %v201_v60 = vpop.f32.mrb[1].mxu1 }
  0xf0   :  { %v647_v61 = vcombine.low %v199_v57, %v201_v60 }
  0xf1   :  { %v654_v62 = vrot.slane %v646_v59, %v653_v56  ;;  %v270_v63 = vpop.f32.mrb[2].mxu0 }
  0xf2   :  { %v661_v0 = vrot.slane %v647_v61, %v653_v56  ;;  %v341_v1 = vpop.f32.mrb[2].mxu1  ;;  %v272_v2 = vpop.f32.mrb[3].mxu0 }
  0xf3   :  { %v663_v3 = vcombine.low %v270_v63, %v272_v2  ;;  %v343_v4 = vpop.f32.mrb[3].mxu1 }
  0xf4   :  { %v662_v5 = vcombine.low %v654_v62, %v661_v0  ;;  %v664_v6 = vcombine.low %v341_v1, %v343_v4 }
  0xf5   :  { %v671_v7 = vrot.slane %v663_v3, %v653_v56  ;;  %v412_v8 = vpop.f32.mrb[4].mxu0 }
  0xf6   :  { %718 = vst [vmem:[%s871_s2] sm:$0xff] %v662_v5  ;;  %v678_v9 = vrot.slane %v664_v6, %v653_v56  ;;  %v483_v10 = vpop.f32.mrb[4].mxu1  ;;  %v414_v11 = vpop.f32.mrb[5].mxu0 }
  0xf7   :  { %v680_v12 = vcombine.low %v412_v8, %v414_v11  ;;  %v485_v13 = vpop.f32.mrb[5].mxu1 }
  0xf8   :  { %v679_v14 = vcombine.low %v671_v7, %v678_v9  ;;  %v681_v15 = vcombine.low %v483_v10, %v485_v13 }
  0xf9   :  { %v688_v16 = vrot.slane %v680_v12, %v653_v56  ;;  %v554_v17 = vpop.f32.mrb[6].mxu0 }
  0xfa   :  { %719 = vst [vmem:[%s871_s2 + $0x8] sm:$0xff] %v679_v14  ;;  %v695_v18 = vrot.slane %v681_v15, %v653_v56  ;;  %v625_v19 = vpop.f32.mrb[6].mxu1  ;;  %v556_v20 = vpop.f32.mrb[7].mxu0 }
  0xfb   :  { %v697_v21 = vcombine.low %v554_v17, %v556_v20  ;;  %v627_v22 = vpop.f32.mrb[7].mxu1 }
  0xfc   :  { %v696_v23 = vcombine.low %v688_v16, %v695_v18  ;;  %v698_v24 = vcombine.low %v625_v19, %v627_v22 }
  0xfd   :  { %v705_v25 = vrot.slane %v697_v21, %v653_v56 }
  0xfe   :  { %720 = vst [vmem:[%s871_s2 + $0x10] sm:$0xff] %v696_v23  ;;  %v712_v26 = vrot.slane %v698_v24, %v653_v56 }
 0x100   :  { %v713_v27 = vcombine.low %v705_v25, %v712_v26 }
 0x102   :  { %721 = vst [vmem:[%s871_s2 + $0x18] sm:$0xff] %v713_v27 }
 0x103   :  { %726 = vsyncpa [#allocation3], 1 }

// kernel: generator_forward.10
= control target key start
LH: loop header
LB: loop body
LE: loop exit
PB: predicated region body
PF: predicated region fallthrough
CT: control target
= control target key end

     0   :  { %s659_s12 = smov 0   ;;  %s785_s0 = inlined_call_operand.vmem [shape: f32[128,32], index: 0, kind: input, shape index: {}]   ;;  %s786_s1 = inlined_call_operand.vmem [shape: f32[128,1], index: 1, kind: input, shape index: {}]   ;;  %s787_s2 = inlined_call_operand.vmem [shape: f32[128,1], index: 2, kind: input, shape index: {}]   ;;  %s788_s3 = inlined_call_operand.vmem [shape: bf16[128,32], index: 3, kind: output, shape index: {}]  }
   0x1 LB: > { %s572_s13 = sadd.s32 4294967295, %s636_s12   ;;  %p576_p0 = scmp.ge.s32.totalorder %s636_s12, 1  ;;  %s636_s12 = sphi %s659_s12, %s13_s12  }
   0x2   : > { %p160_p1 = scmp.lt.s32.totalorder %s636_s12, 3 }
   0x4   : > { %p161_p2 = pnand %p576_p0, %p160_p1 }
   0x5   : > { %s577_s14 = sshll.u32 (!%p161_p2), %s572_s13, 3  ;;  %vm226_vm0 = vcmask (!%p161_p2), 261120   ;;  %v638_v56 = vmov (!%p161_p2), 0   ;;  %vm483_vm1 = vcmask (!%p161_p2), 257024  }
   0x6   : > { %164 = sbr.rel (%p161_p2) target bundleno = 493 (0x1ed), region = 32  ;;  %p195_p3 = scmp.lt.s32.totalorder (!%p161_p2), %s577_s14, 15  ;;  %612 = vset.pattern.permute.xlu1 (!%p161_p2), %v638_v56  ;;  %613 = vset.pattern.permute.xlu0 (!%p161_p2), %v638_v56 }
   0xd   : > { %s790_s14 = smov (!%p195_p3, %s577_s14), 15 }
   0xe   : > { %s670_s15 = sshll.u32 %s790_s14, 3  ;;  %s584_s25 = sshll.u32 %s790_s14, 2 }
   0xf   : > { %s198_s18 = scalar_lea.vmem %s785_s0, %s670_s15  ;;  %s728_s21 = scalar_lea.vmem %s787_s2, %s670_s15 }
  0x10   : > { %v218_v0 = vld [vmem:[%s198_s18] sm:$0xff]  ;;  %v219_v1 = vld [vmem:[%s198_s18 + $0x8] sm:$0xff]  ;;  %v220_v2 = vld [vmem:[%s198_s18 + $0x10] sm:$0xff]  ;;  %s740_s24 = scalar_lea.vmem %s786_s1, %s670_s15  ;;  %s758_s28 = scalar_lea.vmem %s788_s3, %s584_s25 }
  0x11   : > { %v227_v3 = vsel %vm226_vm0, %v218_v0, 0.0  ;;  %v233_v4 = vsel %vm226_vm0, %v220_v2, 0.0  ;;  %v221_v5 = vld [vmem:[%s198_s18 + $0x18] sm:$0xff]  ;;  %v230_v6 = vsel %vm226_vm0, %v219_v1, 0.0  ;;  %v222_v8 = vld [vmem:[%s198_s18 + $0x20] sm:$0xff]  ;;  %v223_v9 = vld [vmem:[%s198_s18 + $0x28] sm:$0xff] }
  0x12   : > { %228 = vadd.xlane.f32.xlu0 %v227_v3  ;;  %234 = vadd.xlane.f32.xlu1 %v233_v4  ;;  %v236_v7 = vsel %vm226_vm0, %v221_v5, 0.0  ;;  %v239_v10 = vsel %vm226_vm0, %v222_v8, 0.0  ;;  %v242_v11 = vsel %vm226_vm0, %v223_v9, 0.0  ;;  %v224_v12 = vld [vmem:[%s198_s18 + $0x30] sm:$0xff]  ;;  %v225_v13 = vld [vmem:[%s198_s18 + $0x38] sm:$0xff]  ;;  %v387_v57 = vld [vmem:[%s728_s21] sm:$0xff] }
  0x13   : > { %v245_v14 = vsel %vm226_vm0, %v224_v12, 0.0  ;;  %v248_v15 = vsel %vm226_vm0, %v225_v13, 0.0  ;;  %v388_v58 = vld [vmem:[%s728_s21 + $0x8] sm:$0xff]  ;;  %v389_v59 = vld [vmem:[%s728_s21 + $0x10] sm:$0xff]  ;;  %v390_v60 = vld [vmem:[%s728_s21 + $0x18] sm:$0xff] }
  0x14   : > { %v391_v61 = vld [vmem:[%s728_s21 + $0x20] sm:$0xff]  ;;  %v392_v62 = vld [vmem:[%s728_s21 + $0x28] sm:$0xff]  ;;  %v393_v56 = vld [vmem:[%s728_s21 + $0x30] sm:$0xff] }
  0x16   : > { %231 = vadd.xlane.f32.xlu0 %v230_v6  ;;  %237 = vadd.xlane.f32.xlu1 %v236_v7 }
  0x1a   : > { %240 = vadd.xlane.f32.xlu0 %v239_v10  ;;  %243 = vadd.xlane.f32.xlu1 %v242_v11 }
  0x1e   : > { %246 = vadd.xlane.f32.xlu0 %v245_v14  ;;  %249 = vadd.xlane.f32.xlu1 %v248_v15  ;;  %v307_v15 = vld [vmem:[%s740_s24] sm:$0xff] }
  0x9f   : > { %v229_v16 = vpop.xlane.xlu0 %228  ;;  %v235_v17 = vpop.xlane.xlu1 %234 }
  0xa0   : > { %v251_v18 = vmul.f32 0.03125, %v229_v16  ;;  %v253_v19 = vmul.f32 0.03125, %v235_v17 }
  0xa2   : > { %v684_v20 = vsub.f32 %v218_v0, %v251_v18  ;;  %v686_v21 = vsub.f32 %v220_v2, %v253_v19 }
  0xa3   : > { %v232_v22 = vpop.xlane.xlu0 %231  ;;  %v238_v23 = vpop.xlane.xlu1 %237 }
  0xa4   : > { %v252_v24 = vmul.f32 0.03125, %v232_v22  ;;  %v267_v25 = vmul.f32 %v684_v20, %v684_v20  ;;  %v254_v26 = vmul.f32 0.03125, %v238_v23  ;;  %v269_v27 = vmul.f32 %v686_v21, %v686_v21  ;;  %v308_v23 = vld [vmem:[%s740_s24 + $0x8] sm:$0xff] }
  0xa6   : > { %v692_v28 = vsub.f32 %v219_v1, %v252_v24  ;;  %v275_v29 = vsel %vm226_vm0, %v267_v25, 0.0  ;;  %v695_v30 = vsub.f32 %v221_v5, %v254_v26  ;;  %v281_v31 = vsel %vm226_vm0, %v269_v27, 0.0  ;;  %v309_v27 = vld [vmem:[%s740_s24 + $0x10] sm:$0xff] }
  0xa7   : > { %276 = vadd.xlane.f32.xlu0 %v275_v29  ;;  %v241_v32 = vpop.xlane.xlu0 %240  ;;  %v244_v33 = vpop.xlane.xlu1 %243  ;;  %v394_v29 = vld [vmem:[%s728_s21 + $0x38] sm:$0xff] }
  0xa8   : > { %v268_v34 = vmul.f32 %v692_v28, %v692_v28  ;;  %v255_v35 = vmul.f32 0.03125, %v241_v32  ;;  %v256_v36 = vmul.f32 0.03125, %v244_v33  ;;  %v270_v37 = vmul.f32 %v695_v30, %v695_v30 }
  0xaa   : > { %v278_v38 = vsel %vm226_vm0, %v268_v34, 0.0  ;;  %v703_v39 = vsub.f32 %v222_v8, %v255_v35  ;;  %v705_v40 = vsub.f32 %v223_v9, %v256_v36  ;;  %v284_v41 = vsel %vm226_vm0, %v270_v37, 0.0  ;;  %v310_v37 = vld [vmem:[%s740_s24 + $0x18] sm:$0xff] }
  0xab   : > { %279 = vadd.xlane.f32.xlu1 %v278_v38  ;;  %282 = vadd.xlane.f32.xlu0 %v281_v31  ;;  %v247_v42 = vpop.xlane.xlu0 %246  ;;  %v250_v43 = vpop.xlane.xlu1 %249 }
  0xac   : > { %v271_v44 = vmul.f32 %v703_v39, %v703_v39  ;;  %v257_v45 = vmul.f32 0.03125, %v247_v42  ;;  %v258_v46 = vmul.f32 0.03125, %v250_v43  ;;  %v272_v47 = vmul.f32 %v705_v40, %v705_v40  ;;  %v311_v43 = vld [vmem:[%s740_s24 + $0x20] sm:$0xff] }
  0xae   : > { %v287_v48 = vsel %vm226_vm0, %v271_v44, 0.0  ;;  %v713_v49 = vsub.f32 %v224_v12, %v257_v45  ;;  %v715_v50 = vsub.f32 %v225_v13, %v258_v46  ;;  %v290_v51 = vsel %vm226_vm0, %v272_v47, 0.0  ;;  %v312_v46 = vld [vmem:[%s740_s24 + $0x28] sm:$0xff] }
  0xaf   : > { %285 = vadd.xlane.f32.xlu1 %v284_v41  ;;  %288 = vadd.xlane.f32.xlu0 %v287_v48 }
  0xb0   : > { %v273_v52 = vmul.f32 %v713_v49, %v713_v49  ;;  %v274_v53 = vmul.f32 %v715_v50, %v715_v50 }
  0xb2   : > { %v293_v54 = vsel %vm226_vm0, %v273_v52, 0.0  ;;  %v296_v55 = vsel %vm226_vm0, %v274_v53, 0.0 }
  0xb3   : > { %291 = vadd.xlane.f32.xlu1 %v290_v51  ;;  %294 = vadd.xlane.f32.xlu0 %v293_v54  ;;  %v313_v51 = vld [vmem:[%s740_s24 + $0x30] sm:$0xff]  ;;  %v314_v54 = vld [vmem:[%s740_s24 + $0x38] sm:$0xff] }
  0xb7   : > { %297 = vadd.xlane.f32.xlu1 %v296_v55 }
  0xc8   : > { %397 = vperm.xlu1 %612, %v387_v57  }
  0xc9   : > { %402 = vperm.xlu0 %613, %v388_v58  }
  0xcc   : > { %407 = vperm.xlu1 %612, %v389_v59  }
  0xcd   : > { %412 = vperm.xlu0 %613, %v390_v60  }
  0xd0   : > { %417 = vperm.xlu1 %612, %v391_v61  }
  0xd1   : > { %422 = vperm.xlu0 %613, %v392_v62  }
 0x134   : > { %v277_v63 = vpop.xlane.xlu0 %276 }
 0x135   : > { %v299_v0 = vmul.f32 0.03125, %v277_v63 }
 0x137   : > { %v315_v1 = vadd.f32 1e-05, %v299_v0 }
 0x138   : > { %v280_v2 = vpop.xlane.xlu1 %279  ;;  %v283_v3 = vpop.xlane.xlu0 %282 }
 0x139   : > { %614 = vrsqrt.f32 %v315_v1  ;;  %v300_v4 = vmul.f32 0.03125, %v280_v2  ;;  %v301_v5 = vmul.f32 0.03125, %v283_v3 }
 0x13b   : > { %v316_v6 = vadd.f32 1e-05, %v300_v4  ;;  %v317_v7 = vadd.f32 1e-05, %v301_v5 }
 0x13c   : > { %v286_v8 = vpop.xlane.xlu1 %285  ;;  %v289_v9 = vpop.xlane.xlu0 %288 }
 0x13d   : > { %616 = vrsqrt.f32 %v316_v6  ;;  %v302_v10 = vmul.f32 0.03125, %v286_v8  ;;  %v303_v11 = vmul.f32 0.03125, %v289_v9 }
 0x13e   : > { %618 = vrsqrt.f32 %v317_v7 }
 0x13f   : > { %v318_v12 = vadd.f32 1e-05, %v302_v10  ;;  %v319_v14 = vadd.f32 1e-05, %v303_v11 }
 0x140   : > { %v292_v13 = vpop.xlane.xlu1 %291  ;;  %v295_v17 = vpop.xlane.xlu0 %294 }
 0x141   : > { %620 = vrsqrt.f32 %v318_v12  ;;  %v304_v16 = vmul.f32 0.03125, %v292_v13  ;;  %v305_v24 = vmul.f32 0.03125, %v295_v17 }
 0x142   : > { %622 = vrsqrt.f32 %v319_v14 }
 0x143   : > { %v615_v18 = vpop.eup %614  ;;  %v320_v22 = vadd.f32 1e-05, %v304_v16  ;;  %v321_v33 = vadd.f32 1e-05, %v305_v24 }
 0x144   : > { %v331_v19 = vmul.f32 %v615_v18, %v307_v15  ;;  %v298_v25 = vpop.xlane.xlu1 %297 }
 0x145   : > { %624 = vrsqrt.f32 %v320_v22  ;;  %v306_v34 = vmul.f32 0.03125, %v298_v25 }
 0x146   : > { %341 = vperm.xlu0 %613, %v331_v19   ;;  %626 = vrsqrt.f32 %v321_v33 }
 0x147   : > { %v617_v26 = vpop.eup %616  ;;  %v322_v38 = vadd.f32 1e-05, %v306_v34 }
 0x148   : > { %v619_v31 = vpop.eup %618  ;;  %v332_v32 = vmul.f32 %v617_v26, %v308_v23  ;;  %v403_v57 = vpop.permute.xlu0 %402 }
 0x149   : > { %v333_v35 = vmul.f32 %v619_v31, %v309_v27  ;;  %628 = vrsqrt.f32 %v322_v38  ;;  %v398_v58 = vpop.permute.xlu1 %397 }
 0x14a   : > { %346 = vperm.xlu1 %612, %v332_v32   ;;  %432 = vperm.xlu0 %613, %v394_v29  }
 0x14b   : > { %v621_v36 = vpop.eup %620 }
 0x14c   : > { %v334_v41 = vmul.f32 %v621_v36, %v310_v37  ;;  %v623_v42 = vpop.eup %622  ;;  %v413_v59 = vpop.permute.xlu0 %412 }
 0x14d   : > { %v335_v44 = vmul.f32 %v623_v42, %v311_v43  ;;  %v408_v60 = vpop.permute.xlu1 %407 }
 0x14e   : > { %351 = vperm.xlu1 %612, %v333_v35  }
 0x14f   : > { %v625_v45 = vpop.eup %624 }
 0x150   : > { %v336_v47 = vmul.f32 %v625_v45, %v312_v46  ;;  %v627_v48 = vpop.eup %626  ;;  %v423_v61 = vpop.permute.xlu0 %422 }
 0x151   : > { %v337_v52 = vmul.f32 %v627_v48, %v313_v51  ;;  %v418_v62 = vpop.permute.xlu1 %417 }
 0x152   : > { %356 = vperm.xlu1 %612, %v334_v41  }
 0x153   : > { %v629_v53 = vpop.eup %628 }
 0x154   : > { %v338_v55 = vmul.f32 %v629_v53, %v314_v54 }
 0x156   : > { %361 = vperm.xlu1 %612, %v335_v44  }
 0x15a   : > { %366 = vperm.xlu1 %612, %v336_v47  }
 0x15e   : > { %371 = vperm.xlu1 %612, %v337_v52  }
 0x162   : > { %376 = vperm.xlu1 %612, %v338_v55  }
 0x166   : > { %427 = vperm.xlu1 %612, %v393_v56  }
 0x1c5   : > { %v342_v63 = vpop.permute.xlu0 %341 }
 0x1c6   : > { %v379_v0 = vmul.f32 %v342_v63, %v684_v20 }
 0x1c8   : > { %v435_v1 = vadd.f32 %v398_v58, %v379_v0 }
 0x1c9   : > { %v347_v2 = vpop.permute.xlu1 %346  ;;  %v433_v31 = vpop.permute.xlu0 %432 }
 0x1ca   : > { %v443_v3 = vmax.f32 %v435_v1, 0.0  ;;  %v380_v4 = vmul.f32 %v347_v2, %v692_v28 }
 0x1cc   : > { %v595_v5 = vpack.c.bf16 %v443_v3, %v443_v3  ;;  %v436_v6 = vadd.f32 %v403_v57, %v380_v4 }
 0x1cd   : > { %v352_v7 = vpop.permute.xlu1 %351 }
 0x1ce   : > { %484 = vst.msk [vmem:[%s758_s28] sm:$0xf] %vm483_vm1, %v595_v5  ;;  %v444_v20 = vmax.f32 %v436_v6, 0.0  ;;  %v381_v8 = vmul.f32 %v352_v7, %v686_v21 }
 0x1d0   : > { %v596_v9 = vpack.c.bf16 %v444_v20, %v444_v20  ;;  %v437_v28 = vadd.f32 %v408_v60, %v381_v8 }
 0x1d1   : > { %v357_v10 = vpop.permute.xlu1 %356 }
 0x1d2   : > { %485 = vst.msk [vmem:[%s758_s28 + $0x4] sm:$0xf] %vm483_vm1, %v596_v9  ;;  %v445_v11 = vmax.f32 %v437_v28, 0.0  ;;  %v382_v12 = vmul.f32 %v357_v10, %v695_v30 }
 0x1d4   : > { %v597_v13 = vpack.c.bf16 %v445_v11, %v445_v11  ;;  %v438_v14 = vadd.f32 %v413_v59, %v382_v12 }
 0x1d5   : > { %v362_v15 = vpop.permute.xlu1 %361 }
 0x1d6   : > { %486 = vst.msk [vmem:[%s758_s28 + $0x8] sm:$0xf] %vm483_vm1, %v597_v13  ;;  %v446_v16 = vmax.f32 %v438_v14, 0.0  ;;  %v383_v17 = vmul.f32 %v362_v15, %v703_v39 }
 0x1d8   : > { %v598_v21 = vpack.c.bf16 %v446_v16, %v446_v16  ;;  %v439_v18 = vadd.f32 %v418_v62, %v383_v17 }
 0x1d9   : > { %v367_v19 = vpop.permute.xlu1 %366 }
 0x1da   : > { %487 = vst.msk [vmem:[%s758_s28 + $0xc] sm:$0xf] %vm483_vm1, %v598_v21  ;;  %v447_v22 = vmax.f32 %v439_v18, 0.0  ;;  %v384_v23 = vmul.f32 %v367_v19, %v705_v40 }
 0x1dc   : > { %v599_v24 = vpack.c.bf16 %v447_v22, %v447_v22  ;;  %v440_v30 = vadd.f32 %v423_v61, %v384_v23 }
 0x1dd   : > { %v372_v25 = vpop.permute.xlu1 %371 }
 0x1de   : > { %488 = vst.msk [vmem:[%s758_s28 + $0x10] sm:$0xf] %vm483_vm1, %v599_v24  ;;  %v448_v26 = vmax.f32 %v440_v30, 0.0  ;;  %v385_v32 = vmul.f32 %v372_v25, %v713_v49 }
 0x1e0   : > { %v600_v27 = vpack.c.bf16 %v448_v26, %v448_v26 }
 0x1e1   : > { %v377_v29 = vpop.permute.xlu1 %376 }
 0x1e2   : > { %489 = vst.msk [vmem:[%s758_s28 + $0x14] sm:$0xf] %vm483_vm1, %v600_v27  ;;  %v386_v39 = vmul.f32 %v377_v29, %v715_v50 }
 0x1e4   : > { %v442_v33 = vadd.f32 %v433_v31, %v386_v39 }
 0x1e5   : > { %v428_v34 = vpop.permute.xlu1 %427 }
 0x1e6   : > { %v450_v40 = vmax.f32 %v442_v33, 0.0  ;;  %v441_v35 = vadd.f32 %v428_v34, %v385_v32 }
 0x1e8   : > { %v602_v36 = vpack.c.bf16 %v450_v40, %v450_v40  ;;  %v449_v37 = vmax.f32 %v441_v35, 0.0 }
 0x1ea   : > { %491 = vst.msk [vmem:[%s758_s28 + $0x1c] sm:$0xf] %vm483_vm1, %v602_v36  ;;  %v601_v38 = vpack.c.bf16 %v449_v37, %v449_v37 }
 0x1ec   : > { %490 = vst.msk [vmem:[%s758_s28 + $0x18] sm:$0xf] %vm483_vm1, %v601_v38 }
 0x1ed PF: > { %s13_s12 = sadd.s32 1, %s636_s12  }
 0x1ee   : > { %p10_p4 = scmp.ge.s32.totalorder %s13_s12, 4  }
 0x1f0   :  { %12 = sbr.rel (!%p10_p4) target bundleno = 1 (0x1), region = 68 }

// kernel: generator_forward.11
= control target key start
LH: loop header
LB: loop body
LE: loop exit
PB: predicated region body
PF: predicated region fallthrough
CT: control target
= control target key end

     0   :  { %7 = vsyncpa [#allocation3], 0  ;;  %s1374_s0 = inlined_call_operand.hbm [shape: bf16[4,64,512], index: 0, kind: input, shape index: {}]   ;;  %s1375_s1 = inlined_call_operand.vmem [shape: bf16[4,512,32], index: 1, kind: input, shape index: {}]   ;;  %s1376_s2 = inlined_call_operand.vmem [shape: f32[4,64,32], index: 2, kind: output, shape index: {}]  }
   0x1   :  { %9 = vsyncpa [#allocation3 + $0x1], 0  ;;  %s1173_s9 = smov 0   ;;  %s1175_s10 = smov 0  }
   0x2   :  { %s1177_s11 = smov 0   ;;  %s1179_s12 = smov 0  }
   0x3   :  { %s1181_s13 = smov 0   ;;  %s1183_s14 = smov 0  }
   0x4 LB: > { %s814_s15 = sadd.s32 4294967295, %s1153_s14   ;;  %s27_s16 = sadd.s32 1, %s1149_s13  ;;  %s1153_s14 = sphi %s1183_s14, %s15_s14   ;;  %s1149_s13 = sphi %s1181_s13, %s1384_s13   ;;  %s1145_s12 = sphi %s1179_s12, %s1383_s12   ;;  %s1141_s11 = sphi %s1177_s11, %s1382_s11   ;;  %s1137_s10 = sphi %s1175_s10, %s1381_s10   ;;  %s1133_s9 = sphi %s1173_s9, %s1380_s9  }
   0x5   : > { %p29_p0 = scmp.ge.s32.totalorder %s27_s16, 4  ;;  %s34_s17 = sadd.s32 1, %s1141_s11 }
   0x6   : > { %p41_p1 = scmp.ne.s32.totalorder %s1141_s11, %s1137_s10  ;;  %p42_p2 = scmp.eq.s32.totalorder %s1153_s14, 0 }
   0x7   : > { %s1386_s16 = smov (%p29_p0, %s27_s16), 0  ;;  %p47_p4 = scmp.ne.s32.totalorder %s1137_s10, %s1133_s9 }
   0x8   : > { %p1209_p3 = por %p42_p2, %p41_p1  ;;  %s31_s19 = ssub.s32 %s1149_s13, %s1386_s16 }
   0x9   : > { %p48_p5 = scmp.eq.s32.totalorder %s814_s15, 0  ;;  %p32_p6 = scmp.eq.s32.totalorder %s31_s19, 0 }
   0xa   : > { %p966_p8 = scmp.lt.s32.totalorder %s1153_s14, 4  ;;  %s127_s22 = sand.u32 1, %s1141_s11  }
   0xb   : > { %p1216_p7 = por %p48_p5, %p47_p4  ;;  %s877_s23 = sshll.u32 %s1149_s13, 11 }
   0xc   : > { %s1222_s21 = scalar_select %p32_p6, %s1141_s11, %s34_s17  }
   0xd   : > { %s818_s24 = sshll.u32 %s127_s22, 7  ;;  %s1229_s27 = scalar_lea.hbm %s1374_s0, %s877_s23 }
   0xe   : > { %s131_s28 = scalar_lea.vmem [#allocation2], %s818_s24  ;;  %p1233_p9 = pnand %p966_p8, %p1209_p3 }
   0xf   : > { %s138_s29 = sshll.u32 %s131_s28, 4  ;;  %s1239_s3 = scalar_lea.sflag [#allocation3], %s127_s22  ;;  %s1237_s29 = int_to_ptr.vmem [resolvable:$true] %s138_s29 }
  0x10   : > { %s1073_s4 = scalar_lea.hbm %s1229_s27, 2048  ;;  %p1075_p11 = pneg %p1233_p9 }
  0x11   : > { %p1074_p10 = scmp.ne.s32.totalorder %s1229_s27, %s1073_s4  ;;  %s1078_s7 = scalar_lea.hbm %s1374_s0, 8192 }
  0x12   : > { %p1079_p0 = scmp.lt.u32.totalorder %s1229_s27, %s1374_s0  ;;  %p1080_p1 = scmp.lt.u32.totalorder %s1078_s7, %s1073_s4 }
  0x13   : > { %p1076_p12 = pnand %p1075_p11, %p1074_p10  ;;  %p1082_p3 = scmp.lt.u32.totalorder %s1073_s4, %s1229_s27 }
  0x14   : > { %p1081_p2 = por %p1080_p1, %p1079_p0 }
  0x15   : > { %p1077_p13 = pneg %p1076_p12 }
  0x16   : > { %p1083_p4 = por %p1082_p3, %p1081_p2 }
  0x18   : > { %p1084_p5 = pnand %p1083_p4, %p1077_p13 }
  0x1a   : > { %1087 = shalt.err (!%p1084_p5)
}
  0x1b   : > { %s1088_s15 = scalar_lea.vmem %s1237_s29, 2048  ;;  %s1155_s17 = smov [#allocation2]  }
  0x1c   : > { %p1089_p6 = scmp.ne.s32.totalorder %s1237_s29, %s1088_s15  ;;  %s1093_s18 = sshll.u32 %s1155_s17, 4  ;;  %s1094_s18 = int_to_ptr.vmem [resolvable:$false] %s1093_s18 }
  0x1d   : > { %s1095_s19 = scalar_lea.vmem %s1094_s18, 4096  ;;  %p1096_p12 = scmp.lt.s32.totalorder %s1237_s29, %s1094_s18 }
  0x1e   : > { %p1091_p8 = pnand %p1089_p6, %p1075_p11  ;;  %p1097_p0 = scmp.lt.s32.totalorder %s1095_s19, %s1088_s15 }
  0x20   : > { %p1092_p10 = pneg %p1091_p8  ;;  %p1098_p1 = por %p1097_p0, %p1096_p12 }
  0x22   : > { %p1099_p2 = pnand %p1098_p1, %p1092_p10 }
  0x24   : > { %1102 = shalt.err (!%p1099_p2)
}
  0x25   : > { %s1156_s22 = smov 256   ;;  %s1157_s23 = smov 16  }
  0x26   : > { %965 = dma.hbm_to_vmem [thread:$0]  (!%p1233_p9), %s1229_s27, 2048, %s1237_s29, %s1239_s3, %s1156_s22, %s1156_s22, %s1157_s23  }
  0x27   : > { %p821_p11 = scmp.ge.s32.totalorder %s1153_s14, 1  ;;  %p157_p13 = scmp.lt.s32.totalorder %s1153_s14, 5 }
  0x29   : > { %p158_p3 = pnand %p821_p11, %p157_p13 }
  0x2a   : > { %s163_s24 = sand.u32 (!%p158_p3), 1, %s1137_s10  }
  0x2b   : > { %161 = sbr.rel (%p158_p3) target bundleno = 335 (0x14f), region = 28  ;;  %s822_s25 = sshll.u32 (!%p158_p3), %s163_s24, 7 }
  0x2c   : > { %s164_s26 = scalar_lea.sflag (!%p158_p3), [#allocation3], %s163_s24  ;;  %s1270_s28 = scalar_lea.vmem (!%p158_p3), [#allocation2], %s822_s25 }
  0x32   : > { %1128 = dma.done.wait (%p1216_p7), %s164_s26, 2048  }
  0x33   : > { %1130 = vsyncadd (%p1216_p7), %s164_s26, 4294965248  ;;  %p199_p4 = scmp.lt.s32.totalorder %s1145_s12, 3  ;;  %v1049_v32 = vld [vmem:[%s1270_s28] ss:$16 sps:$4 sm:$0xff]   ;;  %v1051_v33 = vld [vmem:[%s1270_s28 + $0x4] ss:$16 sps:$4 sm:$0xff]  }
  0x34   : > { %v1052_v34 = vld [vmem:[%s1270_s28 + $0x8] ss:$16 sps:$4 sm:$0xff]   ;;  %v1054_v35 = vld [vmem:[%s1270_s28 + $0xc] ss:$16 sps:$4 sm:$0xff]   ;;  %600 = vmatprep.mubr.bf16.mxu0 %v1051_v33  ;;  %v1055_v36 = vld [vmem:[%s1270_s28 + $0x24] ss:$16 sps:$4 sm:$0xff]  }
  0x35   : > { %s1388_s12 = smov (!%p199_p4, %s1145_s12), 3  ;;  %665 = vmatprep.mubr.bf16.mxu1 %v1054_v35  ;;  %v1057_v37 = vld [vmem:[%s1270_s28 + $0x2c] ss:$16 sps:$4 sm:$0xff]   ;;  %v1059_v38 = vld [vmem:[%s1270_s28 + $0x20] ss:$16 sps:$4 sm:$0xff]   ;;  %vm698_vm0 = vcmask 261120  }
  0x36   : > { %s878_s27 = sshll.u32 %s1388_s12, 8  ;;  %v1060_v39 = vld [vmem:[%s1270_s28 + $0x28] ss:$16 sps:$4 sm:$0xff]   ;;  %v1061_v40 = vld [vmem:[%s1270_s28 + $0x44] ss:$16 sps:$4 sm:$0xff]   ;;  %s879_s20 = sshll.u32 %s1388_s12, 6 }
  0x37   : > { %s1284_s3 = scalar_lea.vmem %s1375_s1, %s878_s27  ;;  %v1063_v41 = vld [vmem:[%s1270_s28 + $0x4c] ss:$16 sps:$4 sm:$0xff]   ;;  %v1065_v42 = vld [vmem:[%s1270_s28 + $0x40] ss:$16 sps:$4 sm:$0xff]   ;;  %v1066_v43 = vld [vmem:[%s1270_s28 + $0x48] ss:$16 sps:$4 sm:$0xff]   ;;  %s1338_s6 = scalar_lea.vmem %s1376_s2, %s879_s20 }
  0x38   : > { %v1017_v0 = vld [vmem:[%s1284_s3 + $0x40] sm:$0xff]   ;;  %v1021_v4 = vld [vmem:[%s1284_s3 + $0x48] sm:$0xff]   ;;  %v1025_v8 = vld [vmem:[%s1284_s3 + $0x50] sm:$0xff]  }
  0x39   : > { %v1018_v1 = vld [vmem:[%s1284_s3 + $0xc0] sm:$0xff]   ;;  %880 = vmatprep.subr.bf16.mxu0 %v1017_v0  ;;  %v1022_v5 = vld [vmem:[%s1284_s3 + $0xc8] sm:$0xff]   ;;  %v1026_v9 = vld [vmem:[%s1284_s3 + $0xd0] sm:$0xff]  }
  0x3a   : > { %v1019_v2 = vld [vmem:[%s1284_s3] sm:$0xff]   ;;  %920 = vmatprep.subr.bf16.mxu1 %v1018_v1  ;;  %v1023_v6 = vld [vmem:[%s1284_s3 + $0x8] sm:$0xff]   ;;  %v1027_v10 = vld [vmem:[%s1284_s3 + $0x10] sm:$0xff]  }
  0x3b   : > { %v1020_v3 = vld [vmem:[%s1284_s3 + $0x80] sm:$0xff]   ;;  %881 = vmatpush3.bf16.msra.mxu0 %v1019_v2  ;;  %v1024_v7 = vld [vmem:[%s1284_s3 + $0x88] sm:$0xff]   ;;  %v1028_v11 = vld [vmem:[%s1284_s3 + $0x90] sm:$0xff]  }
  0x3c   : > { %921 = vmatpush3.bf16.msra.mxu1 %v1020_v3  ;;  %882 = vmatprep.subr.bf16.mxu0 %v1021_v4  ;;  %v1029_v12 = vld [vmem:[%s1284_s3 + $0x58] sm:$0xff]   ;;  %v1033_v16 = vld [vmem:[%s1284_s3 + $0x60] sm:$0xff]   ;;  %v1037_v20 = vld [vmem:[%s1284_s3 + $0x68] sm:$0xff]  }
  0x3d   : > { %922 = vmatprep.subr.bf16.mxu1 %v1022_v5  ;;  %v1030_v13 = vld [vmem:[%s1284_s3 + $0xd8] sm:$0xff]   ;;  %v1034_v17 = vld [vmem:[%s1284_s3 + $0xe0] sm:$0xff]   ;;  %v1038_v21 = vld [vmem:[%s1284_s3 + $0xe8] sm:$0xff]  }
  0x3e   : > { %v1031_v14 = vld [vmem:[%s1284_s3 + $0x18] sm:$0xff]   ;;  %v1035_v18 = vld [vmem:[%s1284_s3 + $0x20] sm:$0xff]   ;;  %v1039_v22 = vld [vmem:[%s1284_s3 + $0x28] sm:$0xff]  }
  0x3f   : > { %883 = vmatpush3.bf16.msra.mxu0 %v1023_v6  ;;  %v1032_v15 = vld [vmem:[%s1284_s3 + $0x98] sm:$0xff]   ;;  %v1036_v19 = vld [vmem:[%s1284_s3 + $0xa0] sm:$0xff]   ;;  %v1040_v23 = vld [vmem:[%s1284_s3 + $0xa8] sm:$0xff]  }
  0x40   : > { %923 = vmatpush3.bf16.msra.mxu1 %v1024_v7  ;;  %884 = vmatprep.subr.bf16.mxu0 %v1025_v8  ;;  %v1041_v24 = vld [vmem:[%s1284_s3 + $0x70] sm:$0xff]   ;;  %v1045_v28 = vld [vmem:[%s1284_s3 + $0x78] sm:$0xff]  }
  0x41   : > { %924 = vmatprep.subr.bf16.mxu1 %v1026_v9  ;;  %v1042_v25 = vld [vmem:[%s1284_s3 + $0xf0] sm:$0xff]   ;;  %v1046_v29 = vld [vmem:[%s1284_s3 + $0xf8] sm:$0xff]  }
  0x42   : > { %v1043_v26 = vld [vmem:[%s1284_s3 + $0x30] sm:$0xff]   ;;  %v1047_v30 = vld [vmem:[%s1284_s3 + $0x38] sm:$0xff]  }
  0x43   : > { %885 = vmatpush3.bf16.msra.mxu0 %v1027_v10  ;;  %v1044_v27 = vld [vmem:[%s1284_s3 + $0xb0] sm:$0xff]   ;;  %v1048_v31 = vld [vmem:[%s1284_s3 + $0xb8] sm:$0xff]  }
  0x44   : > { %925 = vmatpush3.bf16.msra.mxu1 %v1028_v11  ;;  %886 = vmatprep.subr.bf16.mxu0 %v1029_v12  ;;  %v1067_v44 = vld [vmem:[%s1270_s28 + $0x64] ss:$16 sps:$4 sm:$0xff]   ;;  %v1069_v45 = vld [vmem:[%s1270_s28 + $0x6c] ss:$16 sps:$4 sm:$0xff]   ;;  %v1071_v46 = vld [vmem:[%s1270_s28 + $0x60] ss:$16 sps:$4 sm:$0xff]  }
  0x45   : > { %926 = vmatprep.subr.bf16.mxu1 %v1030_v13  ;;  %v1072_v47 = vld [vmem:[%s1270_s28 + $0x68] ss:$16 sps:$4 sm:$0xff]  }
  0x47   : > { %887 = vmatpush3.bf16.msra.mxu0 %v1031_v14 }
  0x48   : > { %927 = vmatpush3.bf16.msra.mxu1 %v1032_v15  ;;  %888 = vmatprep.subr.bf16.mxu0 %v1033_v16 }
  0x49   : > { %928 = vmatprep.subr.bf16.mxu1 %v1034_v17 }
  0x4b   : > { %889 = vmatpush3.bf16.msra.mxu0 %v1035_v18 }
  0x4c   : > { %929 = vmatpush3.bf16.msra.mxu1 %v1036_v19  ;;  %890 = vmatprep.subr.bf16.mxu0 %v1037_v20 }
  0x4d   : > { %930 = vmatprep.subr.bf16.mxu1 %v1038_v21 }
  0x4f   : > { %891 = vmatpush3.bf16.msra.mxu0 %v1039_v22 }
  0x50   : > { %931 = vmatpush3.bf16.msra.mxu1 %v1040_v23  ;;  %892 = vmatprep.subr.bf16.mxu0 %v1041_v24 }
  0x51   : > { %932 = vmatprep.subr.bf16.mxu1 %v1042_v25 }
  0x53   : > { %893 = vmatpush3.bf16.msra.mxu0 %v1043_v26 }
  0x54   : > { %933 = vmatpush3.bf16.msra.mxu1 %v1044_v27  ;;  %894 = vmatprep.subr.bf16.mxu0 %v1045_v28 }
  0x55   : > { %934 = vmatprep.subr.bf16.mxu1 %v1046_v29 }
  0x57   : > { %895 = vmatpush3.bf16.msra.mxu0 %v1047_v30 }
  0x58   : > { %935 = vmatpush3.bf16.msra.mxu1 %v1048_v31 }
  0x5a   : > { %601 = vmatmul.mubr.bf16.vlgmr.msra.gmra.mrb[0].mxu0 %v1049_v32 }
  0x5b   : > { %666 = vmatmul.mubr.bf16.vlgmr.msra.gmra.mrb[0].mxu1 %v1052_v34  ;;  %608 = vmatprep.mubr.bf16.mxu0 %v1055_v36 }
  0x5c   : > { %673 = vmatprep.mubr.bf16.mxu1 %v1057_v37 }
  0x62   : > { %609 = vmatmul.mubr.bf16.gmra.mrb[4].mxu0 %v1059_v38 }
  0x63   : > { %674 = vmatmul.mubr.bf16.gmra.mrb[4].mxu1 %v1060_v39  ;;  %616 = vmatprep.mubr.bf16.mxu0 %v1061_v40 }
  0x64   : > { %681 = vmatprep.mubr.bf16.mxu1 %v1063_v41 }
  0x6a   : > { %617 = vmatmul.mubr.bf16.gmra.mrb[8].mxu0 %v1065_v42 }
  0x6b   : > { %682 = vmatmul.mubr.bf16.gmra.mrb[8].mxu1 %v1066_v43  ;;  %624 = vmatprep.mubr.bf16.mxu0 %v1067_v44 }
  0x6c   : > { %689 = vmatprep.mubr.bf16.mxu1 %v1069_v45 }
  0x72   : > { %625 = vmatmul.mubr.bf16.gmra.mrb[12].mxu0 %v1071_v46 }
  0x73   : > { %690 = vmatmul.mubr.bf16.gmra.mrb[12].mxu1 %v1072_v47 }
 0x12d   : > { %v896_v48 = vpop.f32.mrb[0].mxu0 }
 0x12e   : > { %v936_v49 = vpop.f32.mrb[0].mxu1  ;;  %v897_v50 = vpop.f32.mrb[1].mxu0 }
 0x12f   : > { %v898_v51 = vadd.f32 %v897_v50, %v896_v48  ;;  %v937_v52 = vpop.f32.mrb[1].mxu1  ;;  %v899_v53 = vpop.f32.mrb[2].mxu0 }
 0x130   : > { %v938_v54 = vadd.f32 %v937_v52, %v936_v49  ;;  %v939_v55 = vpop.f32.mrb[2].mxu1  ;;  %v900_v56 = vpop.f32.mrb[3].mxu0 }
 0x131   : > { %v901_v57 = vadd.f32 %v900_v56, %v899_v53  ;;  %v940_v58 = vpop.f32.mrb[3].mxu1 }
 0x132   : > { %v668_v59 = vadd.f32 %v938_v54, %v898_v51  ;;  %v941_v60 = vadd.f32 %v940_v58, %v939_v55 }
 0x134   : > { %699 = vst.msk [vmem:[%s1338_s6] sm:$0xff] %vm698_vm0, %v668_v59  ;;  %v671_v61 = vadd.f32 %v941_v60, %v901_v57 }
 0x135   : > { %v902_v62 = vpop.f32.mrb[4].mxu0 }
 0x136   : > { %700 = vst.msk [vmem:[%s1338_s6 + $0x8] sm:$0xff] %vm698_vm0, %v671_v61  ;;  %v942_v63 = vpop.f32.mrb[4].mxu1  ;;  %v903_v0 = vpop.f32.mrb[5].mxu0 }
 0x137   : > { %v904_v1 = vadd.f32 %v903_v0, %v902_v62  ;;  %v943_v2 = vpop.f32.mrb[5].mxu1  ;;  %v905_v3 = vpop.f32.mrb[6].mxu0 }
 0x138   : > { %v944_v4 = vadd.f32 %v943_v2, %v942_v63  ;;  %v945_v5 = vpop.f32.mrb[6].mxu1  ;;  %v906_v6 = vpop.f32.mrb[7].mxu0 }
 0x139   : > { %v907_v7 = vadd.f32 %v906_v6, %v905_v3  ;;  %v946_v8 = vpop.f32.mrb[7].mxu1 }
 0x13a   : > { %v676_v9 = vadd.f32 %v944_v4, %v904_v1  ;;  %v947_v10 = vadd.f32 %v946_v8, %v945_v5 }
 0x13c   : > { %701 = vst.msk [vmem:[%s1338_s6 + $0x10] sm:$0xff] %vm698_vm0, %v676_v9  ;;  %v679_v11 = vadd.f32 %v947_v10, %v907_v7 }
 0x13d   : > { %v908_v12 = vpop.f32.mrb[8].mxu0 }
 0x13e   : > { %702 = vst.msk [vmem:[%s1338_s6 + $0x18] sm:$0xff] %vm698_vm0, %v679_v11  ;;  %v948_v13 = vpop.f32.mrb[8].mxu1  ;;  %v909_v14 = vpop.f32.mrb[9].mxu0 }
 0x13f   : > { %v910_v15 = vadd.f32 %v909_v14, %v908_v12  ;;  %v949_v16 = vpop.f32.mrb[9].mxu1  ;;  %v911_v17 = vpop.f32.mrb[10].mxu0 }
 0x140   : > { %v950_v18 = vadd.f32 %v949_v16, %v948_v13  ;;  %v951_v19 = vpop.f32.mrb[10].mxu1  ;;  %v912_v20 = vpop.f32.mrb[11].mxu0 }
 0x141   : > { %v913_v21 = vadd.f32 %v912_v20, %v911_v17  ;;  %v952_v22 = vpop.f32.mrb[11].mxu1 }
 0x142   : > { %v684_v23 = vadd.f32 %v950_v18, %v910_v15  ;;  %v953_v24 = vadd.f32 %v952_v22, %v951_v19 }
 0x144   : > { %703 = vst.msk [vmem:[%s1338_s6 + $0x20] sm:$0xff] %vm698_vm0, %v684_v23  ;;  %v687_v25 = vadd.f32 %v953_v24, %v913_v21 }
 0x145   : > { %v914_v26 = vpop.f32.mrb[12].mxu0 }
 0x146   : > { %704 = vst.msk [vmem:[%s1338_s6 + $0x28] sm:$0xff] %vm698_vm0, %v687_v25  ;;  %v954_v27 = vpop.f32.mrb[12].mxu1  ;;  %v915_v28 = vpop.f32.mrb[13].mxu0 }
 0x147   : > { %v916_v29 = vadd.f32 %v915_v28, %v914_v26  ;;  %v955_v30 = vpop.f32.mrb[13].mxu1  ;;  %v917_v31 = vpop.f32.mrb[14].mxu0 }
 0x148   : > { %v956_v32 = vadd.f32 %v955_v30, %v954_v27  ;;  %v957_v33 = vpop.f32.mrb[14].mxu1  ;;  %v918_v34 = vpop.f32.mrb[15].mxu0 }
 0x149   : > { %v919_v35 = vadd.f32 %v918_v34, %v917_v31  ;;  %v958_v36 = vpop.f32.mrb[15].mxu1 }
 0x14a   : > { %v692_v37 = vadd.f32 %v956_v32, %v916_v29  ;;  %v959_v38 = vadd.f32 %v958_v36, %v957_v33 }
 0x14c   : > { %705 = vst.msk [vmem:[%s1338_s6 + $0x30] sm:$0xff] %vm698_vm0, %v692_v37  ;;  %v695_v39 = vadd.f32 %v959_v38, %v919_v35 }
 0x14e   : > { %706 = vst.msk [vmem:[%s1338_s6 + $0x38] sm:$0xff] %vm698_vm0, %v695_v39 }
 0x14f PF: > { %s15_s14 = sadd.s32 1, %s1153_s14   ;;  %s1380_s9 = smov %s1137_s10 }
 0x150   : > { %p12_p7 = scmp.ge.s32.totalorder %s15_s14, 6   ;;  %s1381_s10 = smov %s1141_s11 }
 0x151   : > { %s1382_s11 = smov %s1222_s21  ;;  %s1383_s12 = smov %s1149_s13 }
 0x152   : > { %s1384_s13 = smov %s1386_s16  ;;  %14 = sbr.rel (!%p12_p7) target bundleno = 4 (0x4), region = 71 }
 0x159   :  { %734 = vsyncpa [#allocation3], 1 }
 0x15a   :  { %736 = vsyncpa [#allocation3 + $0x1], 1 }

// kernel: generator_forward.12
= control target key start
LH: loop header
LB: loop body
LE: loop exit
PB: predicated region body
PF: predicated region fallthrough
CT: control target
= control target key end

     0   :  { %s994_s12 = smov 0   ;;  %s996_s13 = smov 0   ;;  %s1332_s0 = inlined_call_operand.vmem [shape: f32[4,64,32], index: 0, kind: input, shape index: {}]   ;;  %s1333_s1 = inlined_call_operand.vmem [shape: f32[1,64,1], index: 1, kind: input, shape index: {}]   ;;  %s1334_s2 = inlined_call_operand.vmem [shape: f32[1,64,1], index: 2, kind: input, shape index: {}]   ;;  %s1335_s3 = inlined_call_operand.vmem [shape: bf16[4,64,32], index: 3, kind: output, shape index: {}]  }
   0x1   :  { %s998_s14 = smov 0  }
   0x2 LB: > { %s1010_s15 = sadd.s32 4294967295, %s971_s14   ;;  %s1013_s16 = sadd.s32 1, %s971_s14   ;;  %s971_s14 = sphi %s998_s14, %s1339_s14   ;;  %s967_s13 = sphi %s996_s13, %s1338_s13   ;;  %s963_s12 = sphi %s994_s12, %s1337_s12  }
   0x3   : > { %s17_s17 = ssub.s32 %s971_s14, %s1013_s16  ;;  %s20_s18 = sadd.s32 1, %s967_s13 }
   0x4   : > { %p18_p0 = scmp.eq.s32.totalorder %s17_s17, 0  ;;  %p27_p1 = scmp.ne.s32.totalorder %s967_s13, %s963_s12 }
   0x5   : > { %p28_p2 = scmp.eq.s32.totalorder %s971_s14, 0  ;;  %p109_p3 = scmp.eq.s32.totalorder %s1010_s15, 1 }
   0x6   : > { %s1023_s19 = scalar_select %p18_p0, %s967_s13, %s20_s18  }
   0x7   : > { %p29_p4 = por %p28_p2, %p27_p1  ;;  %p1025_p5 = por %p109_p3, %p27_p1 }
   0x8   : > { %p864_p6 = scmp.ge.s32.totalorder %s971_s14, 2 }
   0xa   : > { %131 = sbr.rel (%p864_p6) target bundleno = 29 (0x1d), region = 16 }
  0x11   : > { %134 = sbr.rel (!%p29_p4) target bundleno = 29 (0x1d), region = 20  ;;  %s136_s21 = sand.u32 (%p29_p4), 1, %s967_s13  }
  0x12   : > { %s896_s22 = sshll.u32 (%p29_p4), %s971_s14, 5  ;;  %s865_s23 = sshll.u32 (%p29_p4), %s136_s21, 7 }
  0x13   : > { %s1035_s26 = scalar_lea.vmem (%p29_p4), %s1332_s0, %s896_s22  ;;  %s138_s27 = scalar_lea.vmem (%p29_p4), [#allocation2], %s865_s23 }
  0x14   : > { %v199_v0 = vld [vmem:[%s1035_s26] sm:$0xff] (%p29_p4)  ;;  %v201_v1 = vld [vmem:[%s1035_s26 + $0x8] sm:$0xff] (%p29_p4)  ;;  %v203_v2 = vld [vmem:[%s1035_s26 + $0x10] sm:$0xff] (%p29_p4) }
  0x15   : > { %200 = vst [vmem:[%s138_s27] sm:$0xff] (%p29_p4), %v199_v0  ;;  %202 = vst [vmem:[%s138_s27 + $0x8] sm:$0xff] (%p29_p4), %v201_v1  ;;  %v205_v3 = vld [vmem:[%s1035_s26 + $0x18] sm:$0xff] (%p29_p4)  ;;  %v207_v4 = vld [vmem:[%s1035_s26 + $0x40] sm:$0xff] (%p29_p4) }
  0x16   : > { %204 = vst [vmem:[%s138_s27 + $0x10] sm:$0xff] (%p29_p4), %v203_v2  ;;  %v209_v5 = vld [vmem:[%s1035_s26 + $0x48] sm:$0xff] (%p29_p4)  ;;  %206 = vst [vmem:[%s138_s27 + $0x18] sm:$0xff] (%p29_p4), %v205_v3  ;;  %v211_v6 = vld [vmem:[%s1035_s26 + $0x50] sm:$0xff] (%p29_p4) }
  0x17   : > { %208 = vst [vmem:[%s138_s27 + $0x20] sm:$0xff] (%p29_p4), %v207_v4  ;;  %210 = vst [vmem:[%s138_s27 + $0x28] sm:$0xff] (%p29_p4), %v209_v5  ;;  %v213_v7 = vld [vmem:[%s1035_s26 + $0x58] sm:$0xff] (%p29_p4)  ;;  %v215_v8 = vld [vmem:[%s1035_s26 + $0x80] sm:$0xff] (%p29_p4) }
  0x18   : > { %212 = vst [vmem:[%s138_s27 + $0x30] sm:$0xff] %v211_v6  ;;  %214 = vst [vmem:[%s138_s27 + $0x38] sm:$0xff] %v213_v7  ;;  %v217_v9 = vld [vmem:[%s1035_s26 + $0x88] sm:$0xff]  ;;  %v219_v10 = vld [vmem:[%s1035_s26 + $0x90] sm:$0xff] }
  0x19   : > { %216 = vst [vmem:[%s138_s27 + $0x40] sm:$0xff] %v215_v8  ;;  %v221_v11 = vld [vmem:[%s1035_s26 + $0x98] sm:$0xff]  ;;  %218 = vst [vmem:[%s138_s27 + $0x48] sm:$0xff] %v217_v9  ;;  %v223_v12 = vld [vmem:[%s1035_s26 + $0xc0] sm:$0xff] }
  0x1a   : > { %220 = vst [vmem:[%s138_s27 + $0x50] sm:$0xff] %v219_v10  ;;  %222 = vst [vmem:[%s138_s27 + $0x58] sm:$0xff] %v221_v11  ;;  %v225_v13 = vld [vmem:[%s1035_s26 + $0xc8] sm:$0xff]  ;;  %v227_v14 = vld [vmem:[%s1035_s26 + $0xd0] sm:$0xff] }
  0x1b   : > { %224 = vst [vmem:[%s138_s27 + $0x60] sm:$0xff] %v223_v12  ;;  %226 = vst [vmem:[%s138_s27 + $0x68] sm:$0xff] %v225_v13  ;;  %v229_v15 = vld [vmem:[%s1035_s26 + $0xd8] sm:$0xff] }
  0x1c   : > { %228 = vst [vmem:[%s138_s27 + $0x70] sm:$0xff] %v227_v14  ;;  %230 = vst [vmem:[%s138_s27 + $0x78] sm:$0xff] %v229_v15 }
  0x1d PF: > { %p868_p7 = scmp.ge.s32.totalorder %s971_s14, 1  ;;  %p253_p8 = scmp.lt.s32.totalorder %s971_s14, 3 }
  0x1f   : > { %p254_p9 = pnand %p868_p7, %p253_p8 }
  0x20   : > { %s260_s28 = sand.u32 (!%p254_p9), 1, %s963_s12   ;;  %vm322_vm0 = vcmask (!%p254_p9), 261120   ;;  %s871_s4 = sshll.u32 (!%p254_p9), %s1010_s15, 2  ;;  %vm655_vm1 = vcmask (!%p254_p9), 257024  }
  0x21   : > { %257 = sbr.rel (%p254_p9) target bundleno = 554 (0x22a), region = 66  ;;  %s869_s29 = sshll.u32 (!%p254_p9), %s260_s28, 7 }
  0x22   : > { %s1058_s30 = scalar_lea.vmem (!%p254_p9), [#allocation2], %s869_s29  ;;  %p294_p10 = scmp.lt.s32.totalorder (!%p254_p9), %s871_s4, 7 }
  0x23   : > { %v1061_v16 = vld [vmem:[%s1058_s30 + $0x10] sm:$0xff] (!%p254_p9)  ;;  %v1064_v17 = vld [vmem:[%s1058_s30] sm:$0xff] (!%p254_p9)  ;;  %v1067_v18 = vld [vmem:[%s1058_s30 + $0x18] sm:$0xff] (!%p254_p9)  ;;  %s870_s14 = sshll.u32 (!%p254_p9), %s260_s28, 6 }
  0x24   : > { %v329_v19 = vsel (!%p254_p9), %vm322_vm0, %v1061_v16, 0.0  ;;  %v323_v20 = vsel (!%p254_p9), %vm322_vm0, %v1064_v17, 0.0  ;;  %v1074_v21 = vld [vmem:[%s1058_s30 + $0x8] sm:$0xff] (!%p254_p9)  ;;  %v332_v22 = vsel (!%p254_p9), %vm322_vm0, %v1067_v18, 0.0  ;;  %v1084_v25 = vld [vmem:[%s1058_s30 + $0x20] sm:$0xff] (!%p254_p9)  ;;  %v1091_v28 = vld [vmem:[%s1058_s30 + $0x38] sm:$0xff] (!%p254_p9) }
  0x25   : > { %330 = vadd.xlane.f32.xlu1 (!%p254_p9), %v329_v19  ;;  %324 = vadd.xlane.f32.xlu0 (!%p254_p9), %v323_v20  ;;  %v326_v23 = vsel (!%p254_p9), %vm322_vm0, %v1074_v21, 0.0  ;;  %v1081_v24 = vld [vmem:[%s1058_s30 + $0x28] sm:$0xff] (!%p254_p9)  ;;  %v335_v27 = vsel (!%p254_p9), %vm322_vm0, %v1084_v25, 0.0  ;;  %v1094_v29 = vld [vmem:[%s1058_s30 + $0x30] sm:$0xff] (!%p254_p9)  ;;  %v344_v30 = vsel (!%p254_p9), %vm322_vm0, %v1091_v28, 0.0  ;;  %v1104_v33 = vld [vmem:[%s1058_s30 + $0x40] sm:$0xff] (!%p254_p9) }
  0x26   : > { %v338_v26 = vsel (!%p254_p9), %vm322_vm0, %v1081_v24, 0.0  ;;  %v341_v31 = vsel (!%p254_p9), %vm322_vm0, %v1094_v29, 0.0  ;;  %v1101_v32 = vld [vmem:[%s1058_s30 + $0x48] sm:$0xff] (!%p254_p9)  ;;  %v347_v35 = vsel (!%p254_p9), %vm322_vm0, %v1104_v33, 0.0  ;;  %v1111_v36 = vld [vmem:[%s1058_s30 + $0x58] sm:$0xff] (!%p254_p9)  ;;  %v1114_v37 = vld [vmem:[%s1058_s30 + $0x50] sm:$0xff] (!%p254_p9) }
  0x27   : > { %v350_v34 = vsel (!%p254_p9), %vm322_vm0, %v1101_v32, 0.0  ;;  %v356_v38 = vsel (!%p254_p9), %vm322_vm0, %v1111_v36, 0.0  ;;  %v353_v39 = vsel (!%p254_p9), %vm322_vm0, %v1114_v37, 0.0  ;;  %v1121_v40 = vld [vmem:[%s1058_s30 + $0x68] sm:$0xff] (!%p254_p9)  ;;  %v1124_v41 = vld [vmem:[%s1058_s30 + $0x60] sm:$0xff] (!%p254_p9)  ;;  %v1131_v44 = vld [vmem:[%s1058_s30 + $0x78] sm:$0xff] (!%p254_p9) }
  0x28   : > { %v362_v42 = vsel %vm322_vm0, %v1121_v40, 0.0  ;;  %v359_v43 = vsel %vm322_vm0, %v1124_v41, 0.0  ;;  %v1134_v45 = vld [vmem:[%s1058_s30 + $0x70] sm:$0xff]  ;;  %v368_v46 = vsel %vm322_vm0, %v1131_v44, 0.0  ;;  %s1341_s4 = smov (!%p294_p10, %s871_s4), 7  ;;  %s1266_s12 = scalar_lea.vmem [#allocation3], %s870_s14 }
  0x29   : > { %333 = vadd.xlane.f32.xlu1 %v332_v22  ;;  %327 = vadd.xlane.f32.xlu0 %v326_v23  ;;  %v365_v47 = vsel %vm322_vm0, %v1134_v45, 0.0  ;;  %s872_s5 = sshll.u32 %s1341_s4, 3  ;;  %s913_s17 = sshll.u32 (%p1025_p5), %s1010_s15, 4 }
  0x2a   : > { %s1245_s8 = scalar_lea.vmem %s1334_s2, %s872_s5  ;;  %s297_s11 = scalar_lea.vmem %s1333_s1, %s872_s5 }
  0x2b   : > { %s681_s22 = scalar_lea.vmem (%p1025_p5), %s1335_s3, %s913_s17 }
  0x2d   : > { %339 = vadd.xlane.f32.xlu1 %v338_v26  ;;  %336 = vadd.xlane.f32.xlu0 %v335_v27 }
  0x31   : > { %345 = vadd.xlane.f32.xlu1 %v344_v30  ;;  %342 = vadd.xlane.f32.xlu0 %v341_v31 }
  0x35   : > { %351 = vadd.xlane.f32.xlu1 %v350_v34  ;;  %348 = vadd.xlane.f32.xlu0 %v347_v35 }
  0x39   : > { %357 = vadd.xlane.f32.xlu1 %v356_v38  ;;  %354 = vadd.xlane.f32.xlu0 %v353_v39 }
  0x3d   : > { %363 = vadd.xlane.f32.xlu1 %v362_v42  ;;  %360 = vadd.xlane.f32.xlu0 %v359_v43 }
  0x41   : > { %369 = vadd.xlane.f32.xlu1 %v368_v46  ;;  %366 = vadd.xlane.f32.xlu0 %v365_v47 }
  0xb2   : > { %v331_v48 = vpop.xlane.xlu1 %330  ;;  %v325_v49 = vpop.xlane.xlu0 %324 }
  0xb6   : > { %v334_v50 = vpop.xlane.xlu1 %333  ;;  %v328_v51 = vpop.xlane.xlu0 %327 }
  0xba   : > { %v340_v52 = vpop.xlane.xlu1 %339  ;;  %v337_v53 = vpop.xlane.xlu0 %336 }
  0xbb   : > { %v374_v60 = vadd.f32 %v340_v52, %v328_v51  ;;  %v371_v61 = vadd.f32 %v337_v53, %v325_v49 }
  0xbe   : > { %v346_v54 = vpop.xlane.xlu1 %345  ;;  %v343_v55 = vpop.xlane.xlu0 %342 }
  0xbf   : > { %v380_v2 = vadd.f32 %v346_v54, %v334_v50  ;;  %v377_v3 = vadd.f32 %v343_v55, %v331_v48 }
  0xc2   : > { %v352_v56 = vpop.xlane.xlu1 %351  ;;  %v349_v57 = vpop.xlane.xlu0 %348 }
  0xc3   : > { %v375_v62 = vadd.f32 %v374_v60, %v352_v56  ;;  %v372_v63 = vadd.f32 %v371_v61, %v349_v57 }
  0xc6   : > { %v358_v58 = vpop.xlane.xlu1 %357  ;;  %v355_v59 = vpop.xlane.xlu0 %354 }
  0xc7   : > { %v381_v6 = vadd.f32 %v380_v2, %v358_v58  ;;  %v378_v7 = vadd.f32 %v377_v3, %v355_v59  ;;  %v536_v2 = vld [vmem:[%s1245_s8 + $0x8] sm:$0xff]  ;;  %v537_v3 = vld [vmem:[%s1245_s8 + $0x10] sm:$0xff] }
  0xca   : > { %v364_v0 = vpop.xlane.xlu1 %363  ;;  %v361_v1 = vpop.xlane.xlu0 %360 }
  0xcb   : > { %v376_v4 = vadd.f32 %v375_v62, %v364_v0  ;;  %v373_v5 = vadd.f32 %v372_v63, %v361_v1  ;;  %v535_v1 = vld [vmem:[%s1245_s8] sm:$0xff] }
  0xcd   : > { %v384_v8 = vmul.f32 0.0078125, %v376_v4  ;;  %v383_v9 = vmul.f32 0.0078125, %v373_v5 }
  0xce   : > { %v370_v10 = vpop.xlane.xlu1 %369  ;;  %v367_v11 = vpop.xlane.xlu0 %366 }
  0xcf   : > { %v382_v12 = vadd.f32 %v381_v6, %v370_v10  ;;  %v379_v13 = vadd.f32 %v378_v7, %v367_v11  ;;  %v1141_v14 = vsub.f32 %v1074_v21, %v384_v8  ;;  %v1144_v15 = vsub.f32 %v1064_v17, %v383_v9 }
  0xd0   : > { %v1151_v26 = vsub.f32 %v1081_v24, %v384_v8  ;;  %v1154_v27 = vsub.f32 %v1084_v25, %v383_v9  ;;  %v1181_v42 = vsub.f32 %v1101_v32, %v384_v8  ;;  %v1184_v43 = vsub.f32 %v1104_v33, %v383_v9 }
  0xd1   : > { %v386_v19 = vmul.f32 0.0078125, %v382_v12  ;;  %v385_v20 = vmul.f32 0.0078125, %v379_v13  ;;  %v404_v22 = vmul.f32 %v1141_v14, %v1141_v14  ;;  %v403_v23 = vmul.f32 %v1144_v15, %v1144_v15 }
  0xd2   : > { %v408_v25 = vmul.f32 %v1151_v26, %v1151_v26  ;;  %v407_v35 = vmul.f32 %v1154_v27, %v1154_v27  ;;  %v411_v32 = vmul.f32 %v1184_v43, %v1184_v43  ;;  %v1205_v52 = vsub.f32 %v1121_v40, %v384_v8 }
  0xd3   : > { %v422_v21 = vsel %vm322_vm0, %v404_v22, 0.0  ;;  %v419_v30 = vsel %vm322_vm0, %v403_v23, 0.0  ;;  %v1159_v17 = vsub.f32 %v1067_v18, %v386_v19  ;;  %v1162_v31 = vsub.f32 %v1061_v16, %v385_v20 }
  0xd4   : > { %423 = vadd.xlane.f32.xlu1 %v422_v21  ;;  %420 = vadd.xlane.f32.xlu0 %v419_v30  ;;  %v1175_v16 = vsub.f32 %v1091_v28, %v386_v19  ;;  %v1178_v39 = vsub.f32 %v1094_v29, %v385_v20  ;;  %v434_v46 = vsel %vm322_vm0, %v408_v25, 0.0  ;;  %v431_v47 = vsel %vm322_vm0, %v407_v35, 0.0 }
  0xd5   : > { %v406_v34 = vmul.f32 %v1159_v17, %v1159_v17  ;;  %v405_v24 = vmul.f32 %v1162_v31, %v1162_v31  ;;  %v412_v29 = vmul.f32 %v1181_v42, %v1181_v42  ;;  %v1199_v50 = vsub.f32 %v1111_v36, %v386_v19 }
  0xd6   : > { %v410_v48 = vmul.f32 %v1175_v16, %v1175_v16  ;;  %v409_v28 = vmul.f32 %v1178_v39, %v1178_v39  ;;  %v1202_v51 = vsub.f32 %v1114_v37, %v385_v20  ;;  %v1208_v53 = vsub.f32 %v1124_v41, %v383_v9 }
  0xd7   : > { %v428_v18 = vsel %vm322_vm0, %v406_v34, 0.0  ;;  %v425_v38 = vsel %vm322_vm0, %v405_v24, 0.0  ;;  %v446_v54 = vsel %vm322_vm0, %v412_v29, 0.0  ;;  %v443_v55 = vsel %vm322_vm0, %v411_v32, 0.0 }
  0xd8   : > { %429 = vadd.xlane.f32.xlu1 %v428_v18  ;;  %426 = vadd.xlane.f32.xlu0 %v425_v38  ;;  %v440_v33 = vsel %vm322_vm0, %v410_v48, 0.0  ;;  %v437_v49 = vsel %vm322_vm0, %v409_v28, 0.0  ;;  %v414_v56 = vmul.f32 %v1199_v50, %v1199_v50  ;;  %v413_v36 = vmul.f32 %v1202_v51, %v1202_v51 }
  0xd9   : > { %v416_v37 = vmul.f32 %v1205_v52, %v1205_v52  ;;  %v415_v40 = vmul.f32 %v1208_v53, %v1208_v53  ;;  %v1223_v58 = vsub.f32 %v1131_v44, %v386_v19  ;;  %v1226_v59 = vsub.f32 %v1134_v45, %v385_v20 }
  0xda   : > { %v452_v41 = vsel %vm322_vm0, %v414_v56, 0.0  ;;  %v449_v57 = vsel %vm322_vm0, %v413_v36, 0.0  ;;  %v973_v45 = vmov 0  }
  0xdb   : > { %v458_v60 = vsel %vm322_vm0, %v416_v37, 0.0  ;;  %v455_v61 = vsel %vm322_vm0, %v415_v40, 0.0  ;;  %v418_v62 = vmul.f32 %v1223_v58, %v1223_v58  ;;  %v417_v63 = vmul.f32 %v1226_v59, %v1226_v59  ;;  %940 = vset.pattern.permute.xlu1 %v973_v45  ;;  %939 = vset.pattern.permute.xlu0 %v973_v45 }
  0xdc   : > { %435 = vadd.xlane.f32.xlu1 %v434_v46  ;;  %432 = vadd.xlane.f32.xlu0 %v431_v47 }
  0xdd   : > { %v464_v44 = vsel %vm322_vm0, %v418_v62, 0.0  ;;  %v461_v0 = vsel %vm322_vm0, %v417_v63, 0.0 }
  0xe0   : > { %441 = vadd.xlane.f32.xlu1 %v440_v33  ;;  %438 = vadd.xlane.f32.xlu0 %v437_v49 }
  0xe4   : > { %447 = vadd.xlane.f32.xlu1 %v446_v54  ;;  %444 = vadd.xlane.f32.xlu0 %v443_v55 }
  0xe8   : > { %453 = vadd.xlane.f32.xlu1 %v452_v41  ;;  %450 = vadd.xlane.f32.xlu0 %v449_v57  ;;  %v484_v41 = vld [vmem:[%s297_s11 + $0x8] sm:$0xff]  ;;  %v483_v57 = vld [vmem:[%s297_s11] sm:$0xff] }
  0xec   : > { %459 = vadd.xlane.f32.xlu1 %v458_v60  ;;  %456 = vadd.xlane.f32.xlu0 %v455_v61 }
  0xf0   : > { %465 = vadd.xlane.f32.xlu1 %v464_v44  ;;  %462 = vadd.xlane.f32.xlu0 %v461_v0  ;;  %v485_v44 = vld [vmem:[%s297_s11 + $0x10] sm:$0xff] }
 0x101   : > { %541 = vperm.xlu1 %940, %v535_v1  }
 0x105   : > { %546 = vperm.xlu1 %940, %v536_v2   ;;  %v486_v2 = vld [vmem:[%s297_s11 + $0x18] sm:$0xff] }
 0x109   : > { %551 = vperm.xlu1 %940, %v537_v3  }
 0x161   : > { %v424_v4 = vpop.xlane.xlu1 %423  ;;  %v421_v5 = vpop.xlane.xlu0 %420 }
 0x165   : > { %v430_v6 = vpop.xlane.xlu1 %429  ;;  %v427_v7 = vpop.xlane.xlu0 %426 }
 0x169   : > { %v436_v8 = vpop.xlane.xlu1 %435  ;;  %v433_v9 = vpop.xlane.xlu0 %432 }
 0x16a   : > { %v470_v22 = vadd.f32 %v436_v8, %v424_v4  ;;  %v467_v23 = vadd.f32 %v433_v9, %v421_v5  ;;  %v538_v4 = vld [vmem:[%s1245_s8 + $0x18] sm:$0xff] }
 0x16d   : > { %v442_v10 = vpop.xlane.xlu1 %441  ;;  %v439_v11 = vpop.xlane.xlu0 %438 }
 0x16e   : > { %v476_v25 = vadd.f32 %v442_v10, %v430_v6  ;;  %v473_v35 = vadd.f32 %v439_v11, %v427_v7 }
 0x171   : > { %v448_v12 = vpop.xlane.xlu1 %447  ;;  %v445_v13 = vpop.xlane.xlu0 %444 }
 0x172   : > { %v471_v21 = vadd.f32 %v470_v22, %v448_v12  ;;  %v468_v30 = vadd.f32 %v467_v23, %v445_v13 }
 0x175   : > { %v454_v19 = vpop.xlane.xlu1 %453  ;;  %v451_v20 = vpop.xlane.xlu0 %450 }
 0x176   : > { %v477_v46 = vadd.f32 %v476_v25, %v454_v19  ;;  %v474_v47 = vadd.f32 %v473_v35, %v451_v20 }
 0x179   : > { %v460_v34 = vpop.xlane.xlu1 %459  ;;  %v457_v24 = vpop.xlane.xlu0 %456 }
 0x17a   : > { %v472_v18 = vadd.f32 %v471_v21, %v460_v34  ;;  %v469_v38 = vadd.f32 %v468_v30, %v457_v24 }
 0x17c   : > { %v480_v48 = vmul.f32 0.0078125, %v472_v18  ;;  %v479_v28 = vmul.f32 0.0078125, %v469_v38 }
 0x17d   : > { %v466_v29 = vpop.xlane.xlu1 %465  ;;  %v463_v32 = vpop.xlane.xlu0 %462 }
 0x17e   : > { %v488_v33 = vadd.f32 1e-05, %v480_v48  ;;  %v487_v49 = vadd.f32 1e-05, %v479_v28  ;;  %v478_v54 = vadd.f32 %v477_v46, %v466_v29  ;;  %v475_v55 = vadd.f32 %v474_v47, %v463_v32 }
 0x180   : > { %941 = vrsqrt.f32 %v488_v33  ;;  %v482_v56 = vmul.f32 0.0078125, %v478_v54  ;;  %v481_v36 = vmul.f32 0.0078125, %v475_v55 }
 0x181   : > { %943 = vrsqrt.f32 %v487_v49  ;;  %v542_v5 = vpop.permute.xlu1 %541 }
 0x182   : > { %v489_v37 = vadd.f32 1e-05, %v481_v36  ;;  %v490_v40 = vadd.f32 1e-05, %v482_v56 }
 0x184   : > { %945 = vrsqrt.f32 %v489_v37 }
 0x185   : > { %947 = vrsqrt.f32 %v490_v40  ;;  %v547_v6 = vpop.permute.xlu1 %546 }
 0x189   : > { %v552_v7 = vpop.permute.xlu1 %551 }
 0x18a   : > { %v942_v60 = vpop.eup %941 }
 0x18b   : > { %v944_v61 = vpop.eup %943  ;;  %v496_v62 = vmul.f32 %v942_v60, %v484_v41 }
 0x18c   : > { %v495_v63 = vmul.f32 %v944_v61, %v483_v57 }
 0x18d   : > { %506 = vperm.xlu1 %940, %v496_v62  }
 0x18e   : > { %501 = vperm.xlu0 %939, %v495_v63   ;;  %v946_v0 = vpop.eup %945 }
 0x18f   : > { %v497_v45 = vmul.f32 %v946_v0, %v485_v44  ;;  %v948_v1 = vpop.eup %947 }
 0x190   : > { %v498_v3 = vmul.f32 %v948_v1, %v486_v2 }
 0x191   : > { %511 = vperm.xlu1 %940, %v497_v45  }
 0x195   : > { %516 = vperm.xlu1 %940, %v498_v3  }
 0x199   : > { %556 = vperm.xlu1 %940, %v538_v4  }
 0x20c   : > { %v507_v8 = vpop.permute.xlu1 %506 }
 0x20d   : > { %v520_v9 = vmul.f32 %v507_v8, %v1141_v14  ;;  %v524_v10 = vmul.f32 %v507_v8, %v1151_v26  ;;  %v528_v11 = vmul.f32 %v507_v8, %v1181_v42  ;;  %v532_v12 = vmul.f32 %v507_v8, %v1205_v52  ;;  %v502_v13 = vpop.permute.xlu0 %501 }
 0x20e   : > { %v519_v19 = vmul.f32 %v502_v13, %v1144_v15  ;;  %v523_v20 = vmul.f32 %v502_v13, %v1154_v27  ;;  %v527_v22 = vmul.f32 %v502_v13, %v1184_v43  ;;  %v531_v23 = vmul.f32 %v502_v13, %v1208_v53 }
 0x20f   : > { %v560_v21 = vadd.f32 %v547_v6, %v520_v9  ;;  %v564_v30 = vadd.f32 %v547_v6, %v524_v10  ;;  %v568_v14 = vadd.f32 %v547_v6, %v528_v11  ;;  %v572_v34 = vadd.f32 %v547_v6, %v532_v12 }
 0x210   : > { %v559_v26 = vadd.f32 %v542_v5, %v519_v19  ;;  %v563_v24 = vadd.f32 %v542_v5, %v523_v20  ;;  %v567_v42 = vadd.f32 %v542_v5, %v527_v22  ;;  %v571_v25 = vadd.f32 %v542_v5, %v531_v23  ;;  %v512_v38 = vpop.permute.xlu1 %511 }
 0x211   : > { %v576_v52 = vmax.f32 %v560_v21, 0.0  ;;  %v580_v35 = vmax.f32 %v564_v30, 0.0  ;;  %v584_v18 = vmax.f32 %v568_v14, 0.0  ;;  %v588_v15 = vmax.f32 %v572_v34, 0.0 }
 0x212   : > { %v575_v27 = vmax.f32 %v559_v26, 0.0  ;;  %v579_v46 = vmax.f32 %v563_v24, 0.0  ;;  %v583_v43 = vmax.f32 %v567_v42, 0.0  ;;  %v587_v47 = vmax.f32 %v571_v25, 0.0 }
 0x213   : > { %v898_v53 = vpack.c.bf16 %v576_v52, %v576_v52  ;;  %v902_v48 = vpack.c.bf16 %v580_v35, %v580_v35  ;;  %v906_v28 = vpack.c.bf16 %v584_v18, %v584_v18  ;;  %v910_v29 = vpack.c.bf16 %v588_v15, %v588_v15 }
 0x214   : > { %v897_v32 = vpack.c.bf16 %v575_v27, %v575_v27  ;;  %v901_v33 = vpack.c.bf16 %v579_v46, %v579_v46  ;;  %v905_v49 = vpack.c.bf16 %v583_v43, %v583_v43  ;;  %v909_v54 = vpack.c.bf16 %v587_v47, %v587_v47  ;;  %v517_v40 = vpop.permute.xlu1 %516 }
 0x215   : > { %657 = vst.msk [vmem:[%s1266_s12 + $0x4] sm:$0xf] %vm655_vm1, %v898_v53  ;;  %661 = vst.msk [vmem:[%s1266_s12 + $0x14] sm:$0xf] %vm655_vm1, %v902_v48  ;;  %v521_v55 = vmul.f32 %v512_v38, %v1162_v31  ;;  %v525_v56 = vmul.f32 %v512_v38, %v1178_v39  ;;  %v529_v36 = vmul.f32 %v512_v38, %v1202_v51 }
 0x216   : > { %665 = vst.msk [vmem:[%s1266_s12 + $0x24] sm:$0xf] %vm655_vm1, %v906_v28  ;;  %669 = vst.msk [vmem:[%s1266_s12 + $0x34] sm:$0xf] %vm655_vm1, %v910_v29  ;;  %v533_v37 = vmul.f32 %v512_v38, %v1226_v59  ;;  %v522_v31 = vmul.f32 %v517_v40, %v1159_v17  ;;  %v526_v39 = vmul.f32 %v517_v40, %v1175_v16 }
 0x217   : > { %656 = vst.msk [vmem:[%s1266_s12] sm:$0xf] %vm655_vm1, %v897_v32  ;;  %660 = vst.msk [vmem:[%s1266_s12 + $0x10] sm:$0xf] %vm655_vm1, %v901_v33  ;;  %v561_v41 = vadd.f32 %v552_v7, %v521_v55  ;;  %v565_v57 = vadd.f32 %v552_v7, %v525_v56  ;;  %v569_v60 = vadd.f32 %v552_v7, %v529_v36 }
 0x218   : > { %664 = vst.msk [vmem:[%s1266_s12 + $0x20] sm:$0xf] %vm655_vm1, %v905_v49  ;;  %668 = vst.msk [vmem:[%s1266_s12 + $0x30] sm:$0xf] %vm655_vm1, %v909_v54  ;;  %v573_v61 = vadd.f32 %v552_v7, %v533_v37  ;;  %v530_v51 = vmul.f32 %v517_v40, %v1199_v50  ;;  %v534_v59 = vmul.f32 %v517_v40, %v1223_v58  ;;  %v557_v45 = vpop.permute.xlu1 %556 }
 0x219   : > { %v577_v62 = vmax.f32 %v561_v41, 0.0  ;;  %v581_v63 = vmax.f32 %v565_v57, 0.0  ;;  %v585_v44 = vmax.f32 %v569_v60, 0.0  ;;  %v562_v1 = vadd.f32 %v557_v45, %v522_v31 }
 0x21a   : > { %v589_v0 = vmax.f32 %v573_v61, 0.0  ;;  %v566_v2 = vadd.f32 %v557_v45, %v526_v39  ;;  %v570_v3 = vadd.f32 %v557_v45, %v530_v51  ;;  %v574_v4 = vadd.f32 %v557_v45, %v534_v59 }
 0x21b   : > { %v899_v17 = vpack.c.bf16 %v577_v62, %v577_v62  ;;  %v903_v16 = vpack.c.bf16 %v581_v63, %v581_v63  ;;  %v907_v50 = vpack.c.bf16 %v585_v44, %v585_v44  ;;  %v578_v5 = vmax.f32 %v562_v1, 0.0  ;;  %678 = sbr.rel (!%p1025_p5) target bundleno = 554 (0x22a), region = 74 }
 0x21c   : > { %v911_v58 = vpack.c.bf16 %v589_v0, %v589_v0  ;;  %v582_v6 = vmax.f32 %v566_v2, 0.0  ;;  %v586_v7 = vmax.f32 %v570_v3, 0.0  ;;  %v590_v8 = vmax.f32 %v574_v4, 0.0 }
 0x21d   : > { %658 = vst.msk [vmem:[%s1266_s12 + $0x8] sm:$0xf] %vm655_vm1, %v899_v17  ;;  %662 = vst.msk [vmem:[%s1266_s12 + $0x18] sm:$0xf] %vm655_vm1, %v903_v16  ;;  %v900_v9 = vpack.c.bf16 %v578_v5, %v578_v5 }
 0x21e   : > { %666 = vst.msk [vmem:[%s1266_s12 + $0x28] sm:$0xf] %vm655_vm1, %v907_v50  ;;  %670 = vst.msk [vmem:[%s1266_s12 + $0x38] sm:$0xf] %vm655_vm1, %v911_v58  ;;  %v904_v10 = vpack.c.bf16 %v582_v6, %v582_v6  ;;  %v908_v11 = vpack.c.bf16 %v586_v7, %v586_v7  ;;  %v912_v12 = vpack.c.bf16 %v590_v8, %v590_v8  ;;  %v697_v13 = vld [vmem:[%s1266_s12] sm:$0xff] (%p1025_p5)   ;;  %v705_v20 = vld [vmem:[%s1266_s12 + $0x10] sm:$0xff] (%p1025_p5)  }
 0x21f   : > { %659 = vst.msk [vmem:[%s1266_s12 + $0xc] sm:$0xf] %vm655_vm1, %v900_v9  ;;  %v713_v23 = vld [vmem:[%s1266_s12 + $0x20] sm:$0xff] (%p1025_p5)   ;;  %698 = vst [vmem:[%s681_s22] sm:$0xff] (%p1025_p5), %v697_v13   ;;  %v721_v30 = vld [vmem:[%s1266_s12 + $0x30] sm:$0xff] (%p1025_p5)  }
 0x220   : > { %663 = vst.msk [vmem:[%s1266_s12 + $0x1c] sm:$0xf] %vm655_vm1, %v904_v10  ;;  %667 = vst.msk [vmem:[%s1266_s12 + $0x2c] sm:$0xf] %vm655_vm1, %v908_v11 }
 0x221   : > { %671 = vst.msk [vmem:[%s1266_s12 + $0x3c] sm:$0xf] %vm655_vm1, %v912_v12  ;;  %706 = vst [vmem:[%s681_s22 + $0x20] sm:$0xff] (%p1025_p5), %v705_v20  }
 0x222   : > { %714 = vst [vmem:[%s681_s22 + $0x40] sm:$0xff] %v713_v23   ;;  %722 = vst [vmem:[%s681_s22 + $0x60] sm:$0xff] %v721_v30  }
 0x226   : > { %v701_v19 = vld [vmem:[%s1266_s12 + $0x8] sm:$0xff]  }
 0x227   : > { %v709_v22 = vld [vmem:[%s1266_s12 + $0x18] sm:$0xff]   ;;  %v717_v21 = vld [vmem:[%s1266_s12 + $0x28] sm:$0xff]   ;;  %702 = vst [vmem:[%s681_s22 + $0x8] sm:$0xff] %v701_v19  }
 0x228   : > { %710 = vst [vmem:[%s681_s22 + $0x28] sm:$0xff] %v709_v22   ;;  %718 = vst [vmem:[%s681_s22 + $0x48] sm:$0xff] %v717_v21   ;;  %v725_v14 = vld [vmem:[%s1266_s12 + $0x38] sm:$0xff]  }
 0x229   : > { %726 = vst [vmem:[%s681_s22 + $0x68] sm:$0xff] %v725_v14  }
 0x22a PF: > { %p10_p11 = scmp.ge.s32.totalorder %s1013_s16, 4   ;;  %s1337_s12 = smov %s967_s13 }
 0x22b   : > { %s1338_s13 = smov %s1023_s19  ;;  %s1339_s14 = smov %s1013_s16 }
 0x22c   :  { %12 = sbr.rel (!%p10_p11) target bundleno = 2 (0x2), region = 152 }

// kernel: generator_forward.13
= control target key start
LH: loop header
LB: loop body
LE: loop exit
PB: predicated region body
PF: predicated region fallthrough
CT: control target
= control target key end

     0   :  { %7 = vsyncpa [#allocation3], 0  ;;  %s944_s0 = inlined_call_operand.hbm [shape: bf16[4,32,256], index: 0, kind: input, shape index: {}]   ;;  %s945_s1 = inlined_call_operand.vmem [shape: bf16[4,256,128], index: 1, kind: input, shape index: {}]   ;;  %s946_s2 = inlined_call_operand.vmem [shape: f32[4,32,128], index: 2, kind: output, shape index: {}]  }
   0x1   :  { %9 = vsyncpa [#allocation3 + $0x1], 0  ;;  %s789_s9 = smov 0   ;;  %s791_s10 = smov 0  }
   0x2   :  { %s793_s11 = smov 0   ;;  %s795_s12 = smov 0  }
   0x3   :  { %s797_s13 = smov 0   ;;  %s799_s14 = smov 0  }
   0x4 LB: > { %s528_s15 = sadd.s32 4294967295, %s769_s14   ;;  %s27_s16 = sadd.s32 1, %s765_s13  ;;  %s769_s14 = sphi %s799_s14, %s15_s14   ;;  %s765_s13 = sphi %s797_s13, %s954_s13   ;;  %s761_s12 = sphi %s795_s12, %s953_s12   ;;  %s757_s11 = sphi %s793_s11, %s952_s11   ;;  %s753_s10 = sphi %s791_s10, %s951_s10   ;;  %s749_s9 = sphi %s789_s9, %s950_s9  }
   0x5   : > { %p29_p0 = scmp.ge.s32.totalorder %s27_s16, 4  ;;  %s34_s17 = sadd.s32 1, %s757_s11 }
   0x6   : > { %p41_p1 = scmp.ne.s32.totalorder %s757_s11, %s753_s10  ;;  %p42_p2 = scmp.eq.s32.totalorder %s769_s14, 0 }
   0x7   : > { %s956_s16 = smov (%p29_p0, %s27_s16), 0  ;;  %p47_p4 = scmp.ne.s32.totalorder %s753_s10, %s749_s9 }
   0x8   : > { %p825_p3 = por %p42_p2, %p41_p1  ;;  %s31_s19 = ssub.s32 %s765_s13, %s956_s16 }
   0x9   : > { %p48_p5 = scmp.eq.s32.totalorder %s528_s15, 0  ;;  %p32_p6 = scmp.eq.s32.totalorder %s31_s19, 0 }
   0xa   : > { %p616_p8 = scmp.lt.s32.totalorder %s769_s14, 4  ;;  %s127_s22 = sand.u32 1, %s757_s11  }
   0xb   : > { %p832_p7 = por %p48_p5, %p47_p4  ;;  %s563_s23 = sshll.u32 %s765_s13, 9 }
   0xc   : > { %s838_s21 = scalar_select %p32_p6, %s757_s11, %s34_s17  }
   0xd   : > { %s532_s24 = sshll.u32 %s127_s22, 5  ;;  %s845_s27 = scalar_lea.hbm %s944_s0, %s563_s23 }
   0xe   : > { %s131_s28 = scalar_lea.vmem [#allocation2], %s532_s24  ;;  %p849_p9 = pnand %p616_p8, %p825_p3 }
   0xf   : > { %s138_s29 = sshll.u32 %s131_s28, 4  ;;  %s855_s3 = scalar_lea.sflag [#allocation3], %s127_s22  ;;  %s853_s29 = int_to_ptr.vmem [resolvable:$true] %s138_s29 }
  0x10   : > { %s689_s4 = scalar_lea.hbm %s845_s27, 512  ;;  %p691_p11 = pneg %p849_p9 }
  0x11   : > { %p690_p10 = scmp.ne.s32.totalorder %s845_s27, %s689_s4  ;;  %s694_s7 = scalar_lea.hbm %s944_s0, 2048 }
  0x12   : > { %p695_p0 = scmp.lt.u32.totalorder %s845_s27, %s944_s0  ;;  %p696_p1 = scmp.lt.u32.totalorder %s694_s7, %s689_s4 }
  0x13   : > { %p692_p12 = pnand %p691_p11, %p690_p10  ;;  %p698_p3 = scmp.lt.u32.totalorder %s689_s4, %s845_s27 }
  0x14   : > { %p697_p2 = por %p696_p1, %p695_p0 }
  0x15   : > { %p693_p13 = pneg %p692_p12 }
  0x16   : > { %p699_p4 = por %p698_p3, %p697_p2 }
  0x18   : > { %p700_p5 = pnand %p699_p4, %p693_p13 }
  0x1a   : > { %703 = shalt.err (!%p700_p5)
}
  0x1b   : > { %s704_s15 = scalar_lea.vmem %s853_s29, 512  ;;  %s771_s17 = smov [#allocation2]  }
  0x1c   : > { %p705_p6 = scmp.ne.s32.totalorder %s853_s29, %s704_s15  ;;  %s709_s18 = sshll.u32 %s771_s17, 4  ;;  %s710_s18 = int_to_ptr.vmem [resolvable:$false] %s709_s18 }
  0x1d   : > { %s711_s19 = scalar_lea.vmem %s710_s18, 1024  ;;  %p712_p12 = scmp.lt.s32.totalorder %s853_s29, %s710_s18 }
  0x1e   : > { %p707_p8 = pnand %p705_p6, %p691_p11  ;;  %p713_p0 = scmp.lt.s32.totalorder %s711_s19, %s704_s15 }
  0x20   : > { %p708_p10 = pneg %p707_p8  ;;  %p714_p1 = por %p713_p0, %p712_p12 }
  0x22   : > { %p715_p2 = pnand %p714_p1, %p708_p10 }
  0x24   : > { %718 = shalt.err (!%p715_p2)
}
  0x25   : > { %s772_s22 = smov 128   ;;  %s773_s23 = smov 8  }
  0x26   : > { %615 = dma.hbm_to_vmem [thread:$0]  (!%p849_p9), %s845_s27, 512, %s853_s29, %s855_s3, %s772_s22, %s772_s22, %s773_s23  }
  0x27   : > { %p535_p11 = scmp.ge.s32.totalorder %s769_s14, 1  ;;  %p157_p13 = scmp.lt.s32.totalorder %s769_s14, 5 }
  0x29   : > { %p158_p3 = pnand %p535_p11, %p157_p13 }
  0x2a   : > { %s163_s24 = sand.u32 (!%p158_p3), 1, %s753_s10  }
  0x2b   : > { %161 = sbr.rel (%p158_p3) target bundleno = 307 (0x133), region = 28  ;;  %s536_s25 = sshll.u32 (!%p158_p3), %s163_s24, 5 }
  0x2c   : > { %s164_s26 = scalar_lea.sflag (!%p158_p3), [#allocation3], %s163_s24  ;;  %s886_s28 = scalar_lea.vmem (!%p158_p3), [#allocation2], %s536_s25 }
  0x32   : > { %744 = dma.done.wait (%p832_p7), %s164_s26, 512  }
  0x33   : > { %746 = vsyncadd (%p832_p7), %s164_s26, 4294966784  ;;  %p199_p4 = scmp.lt.s32.totalorder %s761_s12, 3  ;;  %v685_v11 = vld [vmem:[%s886_s28 + $0x4] ss:$8 sps:$4 sm:$0xff]   ;;  %v688_v12 = vld [vmem:[%s886_s28 + $0x14] ss:$8 sps:$4 sm:$0xff]  }
  0x34   : > { %400 = vmatprep.mubr.bf16.mxu0 %v685_v11  ;;  %408 = vmatprep.mubr.bf16.mxu1 %v688_v12  ;;  %v683_v18 = vld [vmem:[%s886_s28] ss:$8 sps:$4 sm:$0xff]   ;;  %v686_v19 = vld [vmem:[%s886_s28 + $0x10] ss:$8 sps:$4 sm:$0xff]  }
  0x35   : > { %s958_s12 = smov (!%p199_p4, %s761_s12), 3 }
  0x36   : > { %s564_s27 = sshll.u32 %s958_s12, 7  ;;  %s565_s20 = sshll.u32 %s958_s12, 5 }
  0x37   : > { %s900_s3 = scalar_lea.vmem %s945_s1, %s564_s27  ;;  %s214_s6 = scalar_lea.vmem %s946_s2, %s565_s20 }
  0x38   : > { %v667_v0 = vld [vmem:[%s900_s3 + $0x40] sm:$0xff]   ;;  %v669_v2 = vld [vmem:[%s900_s3 + $0x48] sm:$0xff]   ;;  %v671_v4 = vld [vmem:[%s900_s3 + $0x50] sm:$0xff]  }
  0x39   : > { %v668_v1 = vld [vmem:[%s900_s3] sm:$0xff]   ;;  %566 = vmatprep.subr.bf16.mxu0 %v667_v0  ;;  %594 = vmatprep.subr.bf16.mxu1 %v667_v0  ;;  %v670_v3 = vld [vmem:[%s900_s3 + $0x8] sm:$0xff]   ;;  %v672_v5 = vld [vmem:[%s900_s3 + $0x10] sm:$0xff]  }
  0x3a   : > { %567 = vmatpush3.bf16.msra.mxu0 %v668_v1  ;;  %602 = vmatpush3.bf16.msra.mxu1 %v668_v1  ;;  %v673_v6 = vld [vmem:[%s900_s3 + $0x58] sm:$0xff]   ;;  %v675_v8 = vld [vmem:[%s900_s3 + $0x60] sm:$0xff]   ;;  %v677_v10 = vld [vmem:[%s900_s3 + $0x68] sm:$0xff]  }
  0x3b   : > { %568 = vmatprep.subr.bf16.mxu0 %v669_v2  ;;  %595 = vmatprep.subr.bf16.mxu1 %v669_v2  ;;  %v674_v7 = vld [vmem:[%s900_s3 + $0x18] sm:$0xff]   ;;  %v676_v9 = vld [vmem:[%s900_s3 + $0x20] sm:$0xff]   ;;  %v678_v13 = vld [vmem:[%s900_s3 + $0x28] sm:$0xff]  }
  0x3c   : > { %v679_v14 = vld [vmem:[%s900_s3 + $0x70] sm:$0xff]   ;;  %v681_v16 = vld [vmem:[%s900_s3 + $0x78] sm:$0xff]  }
  0x3d   : > { %v680_v15 = vld [vmem:[%s900_s3 + $0x30] sm:$0xff]   ;;  %v682_v17 = vld [vmem:[%s900_s3 + $0x38] sm:$0xff]  }
  0x3e   : > { %569 = vmatpush3.bf16.msra.mxu0 %v670_v3  ;;  %603 = vmatpush3.bf16.msra.mxu1 %v670_v3 }
  0x3f   : > { %570 = vmatprep.subr.bf16.mxu0 %v671_v4  ;;  %596 = vmatprep.subr.bf16.mxu1 %v671_v4 }
  0x42   : > { %571 = vmatpush3.bf16.msra.mxu0 %v672_v5  ;;  %604 = vmatpush3.bf16.msra.mxu1 %v672_v5 }
  0x43   : > { %572 = vmatprep.subr.bf16.mxu0 %v673_v6  ;;  %597 = vmatprep.subr.bf16.mxu1 %v673_v6 }
  0x46   : > { %573 = vmatpush3.bf16.msra.mxu0 %v674_v7  ;;  %605 = vmatpush3.bf16.msra.mxu1 %v674_v7 }
  0x47   : > { %574 = vmatprep.subr.bf16.mxu0 %v675_v8  ;;  %598 = vmatprep.subr.bf16.mxu1 %v675_v8 }
  0x4a   : > { %575 = vmatpush3.bf16.msra.mxu0 %v676_v9  ;;  %606 = vmatpush3.bf16.msra.mxu1 %v676_v9 }
  0x4b   : > { %576 = vmatprep.subr.bf16.mxu0 %v677_v10  ;;  %599 = vmatprep.subr.bf16.mxu1 %v677_v10 }
  0x4e   : > { %577 = vmatpush3.bf16.msra.mxu0 %v678_v13  ;;  %607 = vmatpush3.bf16.msra.mxu1 %v678_v13 }
  0x4f   : > { %578 = vmatprep.subr.bf16.mxu0 %v679_v14  ;;  %600 = vmatprep.subr.bf16.mxu1 %v679_v14 }
  0x52   : > { %579 = vmatpush3.bf16.msra.mxu0 %v680_v15  ;;  %608 = vmatpush3.bf16.msra.mxu1 %v680_v15 }
  0x53   : > { %580 = vmatprep.subr.bf16.mxu0 %v681_v16  ;;  %601 = vmatprep.subr.bf16.mxu1 %v681_v16 }
  0x56   : > { %581 = vmatpush3.bf16.msra.mxu0 %v682_v17  ;;  %609 = vmatpush3.bf16.msra.mxu1 %v682_v17 }
  0x59   : > { %401 = vmatmul.mubr.bf16.vlgmr.msra.gmra.mrb[0].mxu0 %v683_v18  ;;  %409 = vmatmul.mubr.bf16.vlgmr.msra.gmra.mrb[0].mxu1 %v686_v19 }
 0x12c   : > { %v582_v20 = vpop.f32.mrb[0].mxu0  ;;  %v588_v21 = vpop.f32.mrb[0].mxu1 }
 0x12d   : > { %v583_v22 = vpop.f32.mrb[1].mxu0  ;;  %v589_v23 = vpop.f32.mrb[1].mxu1 }
 0x12e   : > { %v584_v24 = vadd.f32 %v583_v22, %v582_v20  ;;  %v590_v25 = vadd.f32 %v589_v23, %v588_v21  ;;  %v585_v26 = vpop.f32.mrb[2].mxu0  ;;  %v591_v27 = vpop.f32.mrb[2].mxu1 }
 0x12f   : > { %v586_v28 = vpop.f32.mrb[3].mxu0  ;;  %v592_v29 = vpop.f32.mrb[3].mxu1 }
 0x130   : > { %417 = vst [vmem:[%s214_s6] sm:$0xff] %v584_v24  ;;  %419 = vst [vmem:[%s214_s6 + $0x10] sm:$0xff] %v590_v25  ;;  %v587_v30 = vadd.f32 %v586_v28, %v585_v26  ;;  %v593_v31 = vadd.f32 %v592_v29, %v591_v27 }
 0x132   : > { %418 = vst [vmem:[%s214_s6 + $0x8] sm:$0xff] %v587_v30  ;;  %420 = vst [vmem:[%s214_s6 + $0x18] sm:$0xff] %v593_v31 }
 0x133 PF: > { %s15_s14 = sadd.s32 1, %s769_s14   ;;  %s950_s9 = smov %s753_s10 }
 0x134   : > { %p12_p7 = scmp.ge.s32.totalorder %s15_s14, 6   ;;  %s951_s10 = smov %s757_s11 }
 0x135   : > { %s952_s11 = smov %s838_s21  ;;  %s953_s12 = smov %s765_s13 }
 0x136   : > { %s954_s13 = smov %s956_s16  ;;  %14 = sbr.rel (!%p12_p7) target bundleno = 4 (0x4), region = 71 }
 0x13d   :  { %448 = vsyncpa [#allocation3], 1 }
 0x13e   :  { %450 = vsyncpa [#allocation3 + $0x1], 1 }

// kernel: generator_forward.14
= control target key start
LH: loop header
LB: loop body
LE: loop exit
PB: predicated region body
PF: predicated region fallthrough
CT: control target
= control target key end

     0   :  { %s733_s12 = smov 0   ;;  %s735_s13 = smov 0   ;;  %s833_s0 = inlined_call_operand.vmem [shape: f32[4,32,128], index: 0, kind: input, shape index: {}]   ;;  %s834_s1 = inlined_call_operand.vmem [shape: f32[1,32,1], index: 1, kind: input, shape index: {}]   ;;  %s835_s2 = inlined_call_operand.vmem [shape: f32[1,32,1], index: 2, kind: input, shape index: {}]   ;;  %s836_s3 = inlined_call_operand.vmem [shape: bf16[4,32,128], index: 3, kind: output, shape index: {}]  }
   0x1   :  { %s737_s14 = smov 0  }
   0x2 LB: > { %s749_s15 = sadd.s32 4294967295, %s710_s14   ;;  %s752_s16 = sadd.s32 1, %s710_s14   ;;  %s710_s14 = sphi %s737_s14, %s840_s14   ;;  %s706_s13 = sphi %s735_s13, %s839_s13   ;;  %s702_s12 = sphi %s733_s12, %s838_s12  }
   0x3   : > { %s17_s17 = ssub.s32 %s710_s14, %s752_s16  ;;  %s20_s18 = sadd.s32 1, %s706_s13 }
   0x4   : > { %p18_p0 = scmp.eq.s32.totalorder %s17_s17, 0  ;;  %p27_p1 = scmp.ne.s32.totalorder %s706_s13, %s702_s12 }
   0x5   : > { %p28_p2 = scmp.eq.s32.totalorder %s710_s14, 0  ;;  %p109_p3 = scmp.eq.s32.totalorder %s749_s15, 1 }
   0x6   : > { %s762_s19 = scalar_select %p18_p0, %s706_s13, %s20_s18  }
   0x7   : > { %p29_p4 = por %p28_p2, %p27_p1  ;;  %p764_p5 = por %p109_p3, %p27_p1 }
   0x8   : > { %p600_p6 = scmp.ge.s32.totalorder %s710_s14, 2 }
   0xa   : > { %131 = sbr.rel (%p600_p6) target bundleno = 25 (0x19), region = 16 }
  0x11   : > { %134 = sbr.rel (!%p29_p4) target bundleno = 25 (0x19), region = 20  ;;  %s136_s21 = sand.u32 (%p29_p4), 1, %s706_s13  }
  0x12   : > { %s624_s22 = sshll.u32 (%p29_p4), %s710_s14, 4  ;;  %s601_s23 = sshll.u32 (%p29_p4), %s136_s21, 6 }
  0x13   : > { %s141_s26 = scalar_lea.vmem (%p29_p4), %s833_s0, %s624_s22  ;;  %s138_s27 = scalar_lea.vmem (%p29_p4), [#allocation2], %s601_s23 }
  0x14   : > { %v183_v0 = vld [vmem:[%s141_s26] sm:$0xff] (%p29_p4)  ;;  %v185_v1 = vld [vmem:[%s141_s26 + $0x8] sm:$0xff] (%p29_p4) }
  0x15   : > { %v187_v2 = vld [vmem:[%s141_s26 + $0x20] sm:$0xff] (%p29_p4)  ;;  %184 = vst [vmem:[%s138_s27] sm:$0xff] (%p29_p4), %v183_v0  ;;  %186 = vst [vmem:[%s138_s27 + $0x8] sm:$0xff] (%p29_p4), %v185_v1  ;;  %v189_v3 = vld [vmem:[%s141_s26 + $0x28] sm:$0xff] (%p29_p4) }
  0x16   : > { %188 = vst [vmem:[%s138_s27 + $0x10] sm:$0xff] (%p29_p4), %v187_v2  ;;  %v191_v4 = vld [vmem:[%s141_s26 + $0x40] sm:$0xff] (%p29_p4)  ;;  %v193_v5 = vld [vmem:[%s141_s26 + $0x48] sm:$0xff] (%p29_p4)  ;;  %190 = vst [vmem:[%s138_s27 + $0x18] sm:$0xff] (%p29_p4), %v189_v3 }
  0x17   : > { %192 = vst [vmem:[%s138_s27 + $0x20] sm:$0xff] (%p29_p4), %v191_v4  ;;  %194 = vst [vmem:[%s138_s27 + $0x28] sm:$0xff] (%p29_p4), %v193_v5  ;;  %v195_v6 = vld [vmem:[%s141_s26 + $0x60] sm:$0xff] (%p29_p4)  ;;  %v197_v7 = vld [vmem:[%s141_s26 + $0x68] sm:$0xff] (%p29_p4) }
  0x18   : > { %196 = vst [vmem:[%s138_s27 + $0x30] sm:$0xff] %v195_v6  ;;  %198 = vst [vmem:[%s138_s27 + $0x38] sm:$0xff] %v197_v7 }
  0x19 PF: > { %p604_p7 = scmp.ge.s32.totalorder %s710_s14, 1  ;;  %p221_p8 = scmp.lt.s32.totalorder %s710_s14, 3 }
  0x1b   : > { %p222_p9 = pnand %p604_p7, %p221_p8 }
  0x1c   : > { %s228_s28 = sand.u32 (!%p222_p9), 1, %s702_s12   ;;  %s607_s4 = sshll.u32 (!%p222_p9), %s749_s15, 1  ;;  %v712_v48 = vmov (!%p222_p9), 0  }
  0x1d   : > { %225 = sbr.rel (%p222_p9) target bundleno = 515 (0x203), region = 66  ;;  %s605_s29 = sshll.u32 (!%p222_p9), %s228_s28, 6  ;;  %683 = vset.pattern.permute.xlu1 (!%p222_p9), %v712_v48  ;;  %682 = vset.pattern.permute.xlu0 (!%p222_p9), %v712_v48 }
  0x1e   : > { %s230_s30 = scalar_lea.vmem (!%p222_p9), [#allocation2], %s605_s29  ;;  %p262_p10 = scmp.lt.s32.totalorder (!%p222_p9), %s607_s4, 3 }
  0x1f   : > { %v276_v8 = vld [vmem:[%s230_s30 + $0x10] sm:$0xff] (!%p222_p9)  ;;  %v274_v9 = vld [vmem:[%s230_s30] sm:$0xff] (!%p222_p9)  ;;  %v277_v10 = vld [vmem:[%s230_s30 + $0x18] sm:$0xff] (!%p222_p9)  ;;  %s606_s14 = sshll.u32 (!%p222_p9), %s228_s28, 5 }
  0x20   : > { %286 = vadd.xlane.f32.xlu1 (!%p222_p9), %v276_v8  ;;  %282 = vadd.xlane.f32.xlu0 (!%p222_p9), %v274_v9  ;;  %v275_v11 = vld [vmem:[%s230_s30 + $0x8] sm:$0xff] (!%p222_p9)  ;;  %v278_v13 = vld [vmem:[%s230_s30 + $0x20] sm:$0xff] (!%p222_p9)  ;;  %v281_v14 = vld [vmem:[%s230_s30 + $0x38] sm:$0xff] (!%p222_p9)  ;;  %s259_s17 = scalar_lea.vmem (!%p222_p9), [#allocation3], %s606_s14 }
  0x21   : > { %v279_v12 = vld [vmem:[%s230_s30 + $0x28] sm:$0xff] (!%p222_p9)  ;;  %v280_v15 = vld [vmem:[%s230_s30 + $0x30] sm:$0xff] (!%p222_p9) }
  0x24   : > { %288 = vadd.xlane.f32.xlu1 %v277_v10  ;;  %284 = vadd.xlane.f32.xlu0 %v275_v11  ;;  %s842_s4 = smov (!%p262_p10, %s607_s4), 3  ;;  %s633_s12 = sshll.u32 (%p764_p5), %s749_s15, 3 }
  0x25   : > { %s608_s5 = sshll.u32 %s842_s4, 3  ;;  %s449_s22 = scalar_lea.vmem (%p764_p5), %s836_s3, %s633_s12 }
  0x26   : > { %s803_s8 = scalar_lea.vmem %s835_s2, %s608_s5  ;;  %s265_s11 = scalar_lea.vmem %s834_s1, %s608_s5 }
  0x27   : > { %v372_v49 = vld [vmem:[%s803_s8] sm:$0xff]  ;;  %v347_v4 = vld [vmem:[%s265_s11 + $0x8] sm:$0xff] }
  0x28   : > { %292 = vadd.xlane.f32.xlu1 %v279_v12  ;;  %290 = vadd.xlane.f32.xlu0 %v278_v13  ;;  %v346_v5 = vld [vmem:[%s265_s11] sm:$0xff] }
  0x2c   : > { %296 = vadd.xlane.f32.xlu1 %v281_v14  ;;  %294 = vadd.xlane.f32.xlu0 %v280_v15 }
  0xad   : > { %v287_v16 = vpop.xlane.xlu1 %286  ;;  %v283_v17 = vpop.xlane.xlu0 %282 }
  0xae   : > { %v298_v22 = vadd.f32 %v287_v16, %v283_v17 }
  0xb1   : > { %v289_v18 = vpop.xlane.xlu1 %288  ;;  %v285_v19 = vpop.xlane.xlu0 %284 }
  0xb2   : > { %v301_v23 = vadd.f32 %v289_v18, %v285_v19 }
  0xb5   : > { %v293_v20 = vpop.xlane.xlu1 %292  ;;  %v291_v21 = vpop.xlane.xlu0 %290 }
  0xb6   : > { %v302_v24 = vadd.f32 %v301_v23, %v293_v20  ;;  %v299_v25 = vadd.f32 %v298_v22, %v291_v21 }
  0xb9   : > { %v297_v26 = vpop.xlane.xlu1 %296  ;;  %v295_v27 = vpop.xlane.xlu0 %294 }
  0xba   : > { %v303_v28 = vadd.f32 %v302_v24, %v297_v26  ;;  %v300_v29 = vadd.f32 %v299_v25, %v295_v27 }
  0xbc   : > { %v305_v30 = vmul.f32 0.001953125, %v303_v28  ;;  %v304_v31 = vmul.f32 0.001953125, %v300_v29 }
  0xbe   : > { %v779_v32 = vsub.f32 %v275_v11, %v305_v30  ;;  %v781_v33 = vsub.f32 %v274_v9, %v304_v31  ;;  %v787_v36 = vsub.f32 %v277_v10, %v305_v30  ;;  %v789_v37 = vsub.f32 %v276_v8, %v304_v31  ;;  %v373_v10 = vld [vmem:[%s803_s8 + $0x8] sm:$0xff] }
  0xbf   : > { %v795_v40 = vsub.f32 %v279_v12, %v305_v30  ;;  %v310_v41 = vsub.f32 %v278_v13, %v304_v31  ;;  %v313_v44 = vsub.f32 %v281_v14, %v305_v30  ;;  %v312_v45 = vsub.f32 %v280_v15, %v304_v31 }
  0xc0   : > { %v315_v34 = vmul.f32 %v779_v32, %v779_v32  ;;  %v314_v35 = vmul.f32 %v781_v33, %v781_v33  ;;  %v317_v38 = vmul.f32 %v787_v36, %v787_v36  ;;  %v316_v39 = vmul.f32 %v789_v37, %v789_v37 }
  0xc1   : > { %v319_v42 = vmul.f32 %v795_v40, %v795_v40  ;;  %v318_v43 = vmul.f32 %v310_v41, %v310_v41  ;;  %v321_v46 = vmul.f32 %v313_v44, %v313_v44  ;;  %v320_v47 = vmul.f32 %v312_v45, %v312_v45 }
  0xc2   : > { %324 = vadd.xlane.f32.xlu1 %v315_v34  ;;  %322 = vadd.xlane.f32.xlu0 %v314_v35 }
  0xc6   : > { %328 = vadd.xlane.f32.xlu1 %v317_v38  ;;  %326 = vadd.xlane.f32.xlu0 %v316_v39 }
  0xca   : > { %332 = vadd.xlane.f32.xlu1 %v319_v42  ;;  %330 = vadd.xlane.f32.xlu0 %v318_v43 }
  0xce   : > { %336 = vadd.xlane.f32.xlu1 %v321_v46  ;;  %334 = vadd.xlane.f32.xlu0 %v320_v47 }
  0xdf   : > { %376 = vperm.xlu1 %683, %v372_v49  }
 0x14f   : > { %v325_v50 = vpop.xlane.xlu1 %324  ;;  %v323_v51 = vpop.xlane.xlu0 %322 }
 0x153   : > { %v329_v52 = vpop.xlane.xlu1 %328  ;;  %v327_v53 = vpop.xlane.xlu0 %326 }
 0x154   : > { %v341_v56 = vadd.f32 %v329_v52, %v325_v50  ;;  %v338_v57 = vadd.f32 %v327_v53, %v323_v51 }
 0x157   : > { %v333_v54 = vpop.xlane.xlu1 %332  ;;  %v331_v55 = vpop.xlane.xlu0 %330 }
 0x158   : > { %v342_v58 = vadd.f32 %v341_v56, %v333_v54  ;;  %v339_v59 = vadd.f32 %v338_v57, %v331_v55 }
 0x15b   : > { %v337_v60 = vpop.xlane.xlu1 %336  ;;  %v335_v61 = vpop.xlane.xlu0 %334 }
 0x15c   : > { %v343_v62 = vadd.f32 %v342_v58, %v337_v60  ;;  %v340_v63 = vadd.f32 %v339_v59, %v335_v61 }
 0x15e   : > { %v345_v0 = vmul.f32 0.001953125, %v343_v62  ;;  %v344_v1 = vmul.f32 0.001953125, %v340_v63 }
 0x15f   : > { %v377_v11 = vpop.permute.xlu1 %376 }
 0x160   : > { %v349_v2 = vadd.f32 1e-05, %v345_v0  ;;  %v348_v3 = vadd.f32 1e-05, %v344_v1 }
 0x162   : > { %684 = vrsqrt.f32 %v349_v2 }
 0x163   : > { %686 = vrsqrt.f32 %v348_v3 }
 0x16c   : > { %v685_v6 = vpop.eup %684 }
 0x16d   : > { %v687_v7 = vpop.eup %686  ;;  %v353_v8 = vmul.f32 %v685_v6, %v347_v4 }
 0x16e   : > { %v352_v9 = vmul.f32 %v687_v7, %v346_v5 }
 0x16f   : > { %361 = vperm.xlu1 %683, %v353_v8  }
 0x170   : > { %356 = vperm.xlu0 %682, %v352_v9  }
 0x173   : > { %381 = vperm.xlu1 %683, %v373_v10  }
 0x1ee   : > { %v362_v12 = vpop.permute.xlu1 %361 }
 0x1ef   : > { %v357_v13 = vpop.permute.xlu0 %356  ;;  %v365_v18 = vmul.f32 %v362_v12, %v779_v32  ;;  %v367_v19 = vmul.f32 %v362_v12, %v787_v36  ;;  %v369_v20 = vmul.f32 %v362_v12, %v795_v40  ;;  %v371_v21 = vmul.f32 %v362_v12, %v313_v44 }
 0x1f0   : > { %v364_v14 = vmul.f32 %v357_v13, %v781_v33  ;;  %v366_v15 = vmul.f32 %v357_v13, %v789_v37  ;;  %v368_v16 = vmul.f32 %v357_v13, %v310_v41  ;;  %v370_v17 = vmul.f32 %v357_v13, %v312_v45 }
 0x1f2   : > { %v384_v22 = vadd.f32 %v377_v11, %v364_v14  ;;  %v386_v23 = vadd.f32 %v377_v11, %v366_v15  ;;  %v388_v24 = vadd.f32 %v377_v11, %v368_v16  ;;  %v390_v25 = vadd.f32 %v377_v11, %v370_v17  ;;  %v382_v26 = vpop.permute.xlu1 %381 }
 0x1f3   : > { %v385_v27 = vadd.f32 %v382_v26, %v365_v18  ;;  %v387_v28 = vadd.f32 %v382_v26, %v367_v19  ;;  %v389_v29 = vadd.f32 %v382_v26, %v369_v20  ;;  %v391_v30 = vadd.f32 %v382_v26, %v371_v21 }
 0x1f4   : > { %v392_v31 = vmax.f32 %v384_v22, 0.0  ;;  %v394_v33 = vmax.f32 %v386_v23, 0.0  ;;  %v396_v34 = vmax.f32 %v388_v24, 0.0  ;;  %v398_v32 = vmax.f32 %v390_v25, 0.0  ;;  %446 = sbr.rel (!%p764_p5) target bundleno = 515 (0x203), region = 74 }
 0x1f5   : > { %v393_v35 = vmax.f32 %v385_v27, 0.0  ;;  %v395_v36 = vmax.f32 %v387_v28, 0.0  ;;  %v397_v37 = vmax.f32 %v389_v29, 0.0  ;;  %v399_v38 = vmax.f32 %v391_v30, 0.0 }
 0x1f7   : > { %v637_v39 = vpack.c.bf16 %v393_v35, %v392_v31  ;;  %v642_v40 = vpack.c.bf16 %v395_v36, %v394_v33  ;;  %v647_v41 = vpack.c.bf16 %v397_v37, %v396_v34  ;;  %v652_v42 = vpack.c.bf16 %v399_v38, %v398_v32 }
 0x1f9   : > { %638 = vst [vmem:[%s259_s17] sm:$0xff] %v637_v39   ;;  %654 = vst [vmem:[%s259_s17 + $0x8] sm:$0xff] %v642_v40  }
 0x1fa   : > { %655 = vst [vmem:[%s259_s17 + $0x10] sm:$0xff] %v647_v41   ;;  %656 = vst [vmem:[%s259_s17 + $0x18] sm:$0xff] %v652_v42  }
 0x200   : > { %v465_v43 = vld [vmem:[%s259_s17] sm:$0xff]   ;;  %v469_v44 = vld [vmem:[%s259_s17 + $0x8] sm:$0xff]  }
 0x201   : > { %v473_v45 = vld [vmem:[%s259_s17 + $0x10] sm:$0xff]   ;;  %v477_v46 = vld [vmem:[%s259_s17 + $0x18] sm:$0xff]   ;;  %466 = vst [vmem:[%s449_s22] sm:$0xff] %v465_v43   ;;  %470 = vst [vmem:[%s449_s22 + $0x10] sm:$0xff] %v469_v44  }
 0x202   : > { %474 = vst [vmem:[%s449_s22 + $0x20] sm:$0xff] %v473_v45   ;;  %478 = vst [vmem:[%s449_s22 + $0x30] sm:$0xff] %v477_v46  }
 0x203 PF: > { %p10_p11 = scmp.ge.s32.totalorder %s752_s16, 4   ;;  %s838_s12 = smov %s706_s13 }
 0x204   : > { %s839_s13 = smov %s762_s19  ;;  %s840_s14 = smov %s752_s16 }
 0x205   :  { %12 = sbr.rel (!%p10_p11) target bundleno = 2 (0x2), region = 152 }

// kernel: generator_forward.15
= control target key start
LH: loop header
LB: loop body
LE: loop exit
PB: predicated region body
PF: predicated region fallthrough
CT: control target
= control target key end

     0   :  { %s760_s9 = smov 0   ;;  %s762_s10 = smov 0   ;;  %s835_s0 = inlined_call_operand.vmem [shape: bf16[4,16,128], index: 0, kind: input, shape index: {}]   ;;  %s836_s1 = inlined_call_operand.vmem [shape: bf16[4,128,512], index: 1, kind: input, shape index: {}]   ;;  %s837_s2 = inlined_call_operand.vmem [shape: f32[4,16,512], index: 2, kind: output, shape index: {}]  }
   0x1   :  { %s764_s11 = smov 0  }
   0x2 LB: > { %s24_s12 = sadd.s32 1, %s738_s10  ;;  %p601_p0 = scmp.ge.s32.totalorder %s742_s11, 1  ;;  %s742_s11 = sphi %s764_s11, %s12_s11   ;;  %s738_s10 = sphi %s762_s10, %s839_s10   ;;  %s734_s9 = sphi %s760_s9, %s838_s9  }
   0x3   : > { %p26_p1 = scmp.ge.s32.totalorder %s24_s12, 4  ;;  %p143_p2 = scmp.lt.s32.totalorder %s742_s11, 5 }
   0x5   : > { %s841_s12 = smov (%p26_p1, %s24_s12), 0  ;;  %p144_p3 = pnand %p601_p0, %p143_p2 }
   0x6   : > { %p178_p4 = scmp.lt.s32.totalorder (!%p144_p3), %s734_s9, 3  ;;  %v744_v0 = vmov (!%p144_p3), 0  }
   0x7   : > { %147 = sbr.rel (%p144_p3) target bundleno = 266 (0x10a), region = 28  ;;  %436 = vmatprep.mubr.bf16.mxu0 (!%p144_p3), %v744_v0  ;;  %479 = vmatprep.mubr.bf16.mxu1 (!%p144_p3), %v744_v0 }
   0xe   : > { %s843_s9 = smov (!%p178_p4, %s734_s9), 3 }
   0xf   : > { %s644_s13 = sshll.u32 %s843_s9, 8  ;;  %s643_s17 = sshll.u32 %s843_s9, 3 }
  0x10   : > { %s784_s16 = scalar_lea.vmem %s836_s1, %s644_s13  ;;  %s182_s20 = scalar_lea.vmem %s835_s0, %s643_s17 }
  0x11   : > { %v671_v1 = vld [vmem:[%s784_s16 + $0x4] ss:$16 sps:$4 sm:$0xff]   ;;  %v673_v2 = vld [vmem:[%s784_s16 + $0xc] ss:$16 sps:$4 sm:$0xff]   ;;  %v675_v3 = vld [vmem:[%s784_s16] ss:$16 sps:$4 sm:$0xff]  }
  0x12   : > { %404 = vmatprep.subr.bf16.mxu0 %v671_v1  ;;  %v676_v4 = vld [vmem:[%s784_s16 + $0x8] ss:$16 sps:$4 sm:$0xff]   ;;  %447 = vmatprep.subr.bf16.mxu1 %v673_v2  ;;  %v677_v5 = vld [vmem:[%s784_s16 + $0x24] ss:$16 sps:$4 sm:$0xff]   ;;  %v679_v6 = vld [vmem:[%s784_s16 + $0x2c] ss:$16 sps:$4 sm:$0xff]  }
  0x13   : > { %405 = vmatpush1.bf16.msra.mxu0 %v675_v3  ;;  %448 = vmatpush1.bf16.msra.mxu1 %v676_v4  ;;  %v681_v7 = vld [vmem:[%s784_s16 + $0x20] ss:$16 sps:$4 sm:$0xff]   ;;  %v682_v8 = vld [vmem:[%s784_s16 + $0x28] ss:$16 sps:$4 sm:$0xff]   ;;  %v683_v9 = vld [vmem:[%s784_s16 + $0x44] ss:$16 sps:$4 sm:$0xff]  }
  0x14   : > { %406 = vmatprep.subr.bf16.mxu0 %v677_v5  ;;  %449 = vmatprep.subr.bf16.mxu1 %v679_v6  ;;  %v685_v10 = vld [vmem:[%s784_s16 + $0x4c] ss:$16 sps:$4 sm:$0xff]   ;;  %v687_v11 = vld [vmem:[%s784_s16 + $0x40] ss:$16 sps:$4 sm:$0xff]   ;;  %v688_v12 = vld [vmem:[%s784_s16 + $0x48] ss:$16 sps:$4 sm:$0xff]  }
  0x15   : > { %v689_v13 = vld [vmem:[%s784_s16 + $0x64] ss:$16 sps:$4 sm:$0xff]   ;;  %v691_v14 = vld [vmem:[%s784_s16 + $0x6c] ss:$16 sps:$4 sm:$0xff]   ;;  %v693_v15 = vld [vmem:[%s784_s16 + $0x60] ss:$16 sps:$4 sm:$0xff]  }
  0x16   : > { %v694_v16 = vld [vmem:[%s784_s16 + $0x68] ss:$16 sps:$4 sm:$0xff]   ;;  %v695_v17 = vld [vmem:[%s784_s16 + $0x84] ss:$16 sps:$4 sm:$0xff]   ;;  %v697_v18 = vld [vmem:[%s784_s16 + $0x8c] ss:$16 sps:$4 sm:$0xff]  }
  0x17   : > { %407 = vmatpush1.bf16.msra.mxu0 %v681_v7  ;;  %450 = vmatpush1.bf16.msra.mxu1 %v682_v8  ;;  %v699_v19 = vld [vmem:[%s784_s16 + $0x80] ss:$16 sps:$4 sm:$0xff]   ;;  %v700_v20 = vld [vmem:[%s784_s16 + $0x88] ss:$16 sps:$4 sm:$0xff]   ;;  %v701_v21 = vld [vmem:[%s784_s16 + $0xa4] ss:$16 sps:$4 sm:$0xff]  }
  0x18   : > { %408 = vmatprep.subr.bf16.mxu0 %v683_v9  ;;  %451 = vmatprep.subr.bf16.mxu1 %v685_v10  ;;  %v703_v22 = vld [vmem:[%s784_s16 + $0xac] ss:$16 sps:$4 sm:$0xff]   ;;  %v705_v23 = vld [vmem:[%s784_s16 + $0xa0] ss:$16 sps:$4 sm:$0xff]   ;;  %v706_v24 = vld [vmem:[%s784_s16 + $0xa8] ss:$16 sps:$4 sm:$0xff]  }
  0x19   : > { %v707_v25 = vld [vmem:[%s784_s16 + $0xc4] ss:$16 sps:$4 sm:$0xff]   ;;  %v709_v26 = vld [vmem:[%s784_s16 + $0xcc] ss:$16 sps:$4 sm:$0xff]   ;;  %v711_v27 = vld [vmem:[%s784_s16 + $0xc0] ss:$16 sps:$4 sm:$0xff]  }
  0x1a   : > { %v712_v28 = vld [vmem:[%s784_s16 + $0xc8] ss:$16 sps:$4 sm:$0xff]   ;;  %v713_v29 = vld [vmem:[%s784_s16 + $0xe4] ss:$16 sps:$4 sm:$0xff]   ;;  %v715_v30 = vld [vmem:[%s784_s16 + $0xec] ss:$16 sps:$4 sm:$0xff]  }
  0x1b   : > { %409 = vmatpush1.bf16.msra.mxu0 %v687_v11  ;;  %452 = vmatpush1.bf16.msra.mxu1 %v688_v12  ;;  %v717_v31 = vld [vmem:[%s784_s16 + $0xe0] ss:$16 sps:$4 sm:$0xff]   ;;  %v718_v32 = vld [vmem:[%s784_s16 + $0xe8] ss:$16 sps:$4 sm:$0xff]   ;;  %s645_s21 = sshll.u32 %s843_s9, 6 }
  0x1c   : > { %410 = vmatprep.subr.bf16.mxu0 %v689_v13  ;;  %453 = vmatprep.subr.bf16.mxu1 %v691_v14  ;;  %v719_v33 = vld [vmem:[%s182_s20] sm:$0xff]   ;;  %s201_s24 = scalar_lea.vmem %s837_s2, %s645_s21 }
  0x1f   : > { %411 = vmatpush1.bf16.msra.mxu0 %v693_v15  ;;  %454 = vmatpush1.bf16.msra.mxu1 %v694_v16 }
  0x20   : > { %412 = vmatprep.subr.bf16.mxu0 %v695_v17  ;;  %455 = vmatprep.subr.bf16.mxu1 %v697_v18 }
  0x23   : > { %413 = vmatpush1.bf16.msra.mxu0 %v699_v19  ;;  %456 = vmatpush1.bf16.msra.mxu1 %v700_v20 }
  0x24   : > { %414 = vmatprep.subr.bf16.mxu0 %v701_v21  ;;  %457 = vmatprep.subr.bf16.mxu1 %v703_v22 }
  0x27   : > { %415 = vmatpush1.bf16.msra.mxu0 %v705_v23  ;;  %458 = vmatpush1.bf16.msra.mxu1 %v706_v24 }
  0x28   : > { %416 = vmatprep.subr.bf16.mxu0 %v707_v25  ;;  %459 = vmatprep.subr.bf16.mxu1 %v709_v26 }
  0x2b   : > { %417 = vmatpush1.bf16.msra.mxu0 %v711_v27  ;;  %460 = vmatpush1.bf16.msra.mxu1 %v712_v28 }
  0x2c   : > { %418 = vmatprep.subr.bf16.mxu0 %v713_v29  ;;  %461 = vmatprep.subr.bf16.mxu1 %v715_v30 }
  0x2f   : > { %419 = vmatpush1.bf16.msra.mxu0 %v717_v31  ;;  %462 = vmatpush1.bf16.msra.mxu1 %v718_v32 }
  0x32   : > { %437 = vmatmul.mubr.bf16.vlgmr.msra.gmra.mrb[0].mxu0 %v719_v33  ;;  %480 = vmatmul.mubr.bf16.vlgmr.msra.gmra.mrb[0].mxu1 %v719_v33 }
 0x105   : > { %v438_v34 = vpop.f32.mrb[0].mxu0  ;;  %v481_v35 = vpop.f32.mrb[0].mxu1 }
 0x106   : > { %490 = vst [vmem:[%s201_s24] sm:$0xff] %v438_v34  ;;  %492 = vst [vmem:[%s201_s24 + $0x10] sm:$0xff] %v481_v35  ;;  %v440_v36 = vpop.f32.mrb[1].mxu0  ;;  %v483_v37 = vpop.f32.mrb[1].mxu1 }
 0x107   : > { %491 = vst [vmem:[%s201_s24 + $0x8] sm:$0xff] %v440_v36  ;;  %493 = vst [vmem:[%s201_s24 + $0x18] sm:$0xff] %v483_v37  ;;  %v442_v38 = vpop.f32.mrb[2].mxu0  ;;  %v485_v39 = vpop.f32.mrb[2].mxu1 }
 0x108   : > { %494 = vst [vmem:[%s201_s24 + $0x20] sm:$0xff] %v442_v38  ;;  %496 = vst [vmem:[%s201_s24 + $0x30] sm:$0xff] %v485_v39  ;;  %v444_v40 = vpop.f32.mrb[3].mxu0  ;;  %v487_v41 = vpop.f32.mrb[3].mxu1 }
 0x109   : > { %495 = vst [vmem:[%s201_s24 + $0x28] sm:$0xff] %v444_v40  ;;  %497 = vst [vmem:[%s201_s24 + $0x38] sm:$0xff] %v487_v41 }
 0x10a PF: > { %s12_s11 = sadd.s32 1, %s742_s11   ;;  %s838_s9 = smov %s738_s10 }
 0x10b   : > { %p9_p5 = scmp.ge.s32.totalorder %s12_s11, 6   ;;  %s839_s10 = smov %s841_s12 }
 0x10d   :  { %11 = sbr.rel (!%p9_p5) target bundleno = 2 (0x2), region = 61 }

// kernel: generator_forward.16
= control target key start
LH: loop header
LB: loop body
LE: loop exit
PB: predicated region body
PF: predicated region fallthrough
CT: control target
= control target key end

     0   :  { %s710_s12 = smov 0   ;;  %s712_s13 = smov 0   ;;  %s860_s0 = inlined_call_operand.vmem [shape: f32[4,16,512], index: 0, kind: input, shape index: {}]   ;;  %s861_s1 = inlined_call_operand.vmem [shape: f32[1,16,1], index: 1, kind: input, shape index: {}]   ;;  %s862_s2 = inlined_call_operand.vmem [shape: f32[1,16,1], index: 2, kind: input, shape index: {}]   ;;  %s863_s3 = inlined_call_operand.vmem [shape: bf16[4,16,512], index: 3, kind: output, shape index: {}]  }
   0x1   :  { %s714_s14 = smov 0  }
   0x2 LB: > { %s726_s15 = sadd.s32 4294967295, %s687_s14   ;;  %s729_s16 = sadd.s32 1, %s687_s14   ;;  %s687_s14 = sphi %s714_s14, %s867_s14   ;;  %s683_s13 = sphi %s712_s13, %s866_s13   ;;  %s679_s12 = sphi %s710_s12, %s865_s12  }
   0x3   : > { %s17_s17 = ssub.s32 %s687_s14, %s729_s16  ;;  %s20_s18 = sadd.s32 1, %s683_s13 }
   0x4   : > { %p18_p0 = scmp.eq.s32.totalorder %s17_s17, 0  ;;  %p27_p1 = scmp.ne.s32.totalorder %s683_s13, %s679_s12 }
   0x5   : > { %p28_p2 = scmp.eq.s32.totalorder %s687_s14, 0  ;;  %p109_p3 = scmp.eq.s32.totalorder %s726_s15, 1 }
   0x6   : > { %s739_s19 = scalar_select %p18_p0, %s683_s13, %s20_s18  }
   0x7   : > { %p29_p4 = por %p28_p2, %p27_p1  ;;  %p741_p5 = por %p109_p3, %p27_p1 }
   0x8   : > { %p604_p6 = scmp.ge.s32.totalorder %s687_s14, 2 }
   0xa   : > { %131 = sbr.rel (%p604_p6) target bundleno = 29 (0x1d), region = 16 }
  0x11   : > { %134 = sbr.rel (!%p29_p4) target bundleno = 29 (0x1d), region = 20  ;;  %s136_s21 = sand.u32 (%p29_p4), 1, %s683_s13  }
  0x12   : > { %s626_s22 = sshll.u32 (%p29_p4), %s687_s14, 5  ;;  %s605_s23 = sshll.u32 (%p29_p4), %s136_s21, 7 }
  0x13   : > { %s751_s26 = scalar_lea.vmem (%p29_p4), %s860_s0, %s626_s22  ;;  %s138_s27 = scalar_lea.vmem (%p29_p4), [#allocation2], %s605_s23 }
  0x14   : > { %v154_v0 = vld [vmem:[%s751_s26] sm:$0xff] (%p29_p4)  ;;  %v156_v1 = vld [vmem:[%s751_s26 + $0x8] sm:$0xff] (%p29_p4)  ;;  %v158_v2 = vld [vmem:[%s751_s26 + $0x10] sm:$0xff] (%p29_p4) }
  0x15   : > { %155 = vst [vmem:[%s138_s27] sm:$0xff] (%p29_p4), %v154_v0  ;;  %157 = vst [vmem:[%s138_s27 + $0x8] sm:$0xff] (%p29_p4), %v156_v1  ;;  %v160_v3 = vld [vmem:[%s751_s26 + $0x18] sm:$0xff] (%p29_p4)  ;;  %v162_v4 = vld [vmem:[%s751_s26 + $0x40] sm:$0xff] (%p29_p4) }
  0x16   : > { %159 = vst [vmem:[%s138_s27 + $0x10] sm:$0xff] (%p29_p4), %v158_v2  ;;  %v164_v5 = vld [vmem:[%s751_s26 + $0x48] sm:$0xff] (%p29_p4)  ;;  %161 = vst [vmem:[%s138_s27 + $0x18] sm:$0xff] (%p29_p4), %v160_v3  ;;  %v166_v6 = vld [vmem:[%s751_s26 + $0x50] sm:$0xff] (%p29_p4) }
  0x17   : > { %163 = vst [vmem:[%s138_s27 + $0x20] sm:$0xff] (%p29_p4), %v162_v4  ;;  %165 = vst [vmem:[%s138_s27 + $0x28] sm:$0xff] (%p29_p4), %v164_v5  ;;  %v168_v7 = vld [vmem:[%s751_s26 + $0x58] sm:$0xff] (%p29_p4)  ;;  %v170_v8 = vld [vmem:[%s751_s26 + $0x80] sm:$0xff] (%p29_p4) }
  0x18   : > { %167 = vst [vmem:[%s138_s27 + $0x30] sm:$0xff] %v166_v6  ;;  %169 = vst [vmem:[%s138_s27 + $0x38] sm:$0xff] %v168_v7  ;;  %v172_v9 = vld [vmem:[%s751_s26 + $0x88] sm:$0xff]  ;;  %v174_v10 = vld [vmem:[%s751_s26 + $0x90] sm:$0xff] }
  0x19   : > { %171 = vst [vmem:[%s138_s27 + $0x40] sm:$0xff] %v170_v8  ;;  %v176_v11 = vld [vmem:[%s751_s26 + $0x98] sm:$0xff]  ;;  %173 = vst [vmem:[%s138_s27 + $0x48] sm:$0xff] %v172_v9  ;;  %v178_v12 = vld [vmem:[%s751_s26 + $0xc0] sm:$0xff] }
  0x1a   : > { %175 = vst [vmem:[%s138_s27 + $0x50] sm:$0xff] %v174_v10  ;;  %177 = vst [vmem:[%s138_s27 + $0x58] sm:$0xff] %v176_v11  ;;  %v180_v13 = vld [vmem:[%s751_s26 + $0xc8] sm:$0xff]  ;;  %v182_v14 = vld [vmem:[%s751_s26 + $0xd0] sm:$0xff] }
  0x1b   : > { %179 = vst [vmem:[%s138_s27 + $0x60] sm:$0xff] %v178_v12  ;;  %181 = vst [vmem:[%s138_s27 + $0x68] sm:$0xff] %v180_v13  ;;  %v184_v15 = vld [vmem:[%s751_s26 + $0xd8] sm:$0xff] }
  0x1c   : > { %183 = vst [vmem:[%s138_s27 + $0x70] sm:$0xff] %v182_v14  ;;  %185 = vst [vmem:[%s138_s27 + $0x78] sm:$0xff] %v184_v15 }
  0x1d PF: > { %p608_p7 = scmp.ge.s32.totalorder %s687_s14, 1  ;;  %p204_p8 = scmp.lt.s32.totalorder %s687_s14, 3 }
  0x1f   : > { %p205_p9 = pnand %p608_p7, %p204_p8 }
  0x20   : > { %s211_s28 = sand.u32 (!%p205_p9), 1, %s679_s12   ;;  %p241_p10 = scmp.lt.s32.totalorder (!%p205_p9), %s726_s15, 1 }
  0x21   : > { %208 = sbr.rel (%p205_p9) target bundleno = 529 (0x211), region = 51  ;;  %s609_s29 = sshll.u32 (!%p205_p9), %s211_s28, 7 }
  0x22   : > { %s213_s30 = scalar_lea.vmem (!%p205_p9), [#allocation2], %s609_s29  ;;  %s610_s14 = sshll.u32 (!%p205_p9), %s211_s28, 6 }
  0x23   : > { %v249_v16 = vld [vmem:[%s213_s30] sm:$0xff] (!%p205_p9)  ;;  %v250_v17 = vld [vmem:[%s213_s30 + $0x8] sm:$0xff] (!%p205_p9)  ;;  %v251_v18 = vld [vmem:[%s213_s30 + $0x10] sm:$0xff] (!%p205_p9)  ;;  %s240_s12 = scalar_lea.vmem (!%p205_p9), [#allocation3], %s610_s14 }
  0x24   : > { %v265_v19 = vadd.f32 (!%p205_p9), %v250_v17, %v249_v16  ;;  %v257_v20 = vld [vmem:[%s213_s30 + $0x40] sm:$0xff] (!%p205_p9)  ;;  %v258_v21 = vld [vmem:[%s213_s30 + $0x48] sm:$0xff] (!%p205_p9)  ;;  %v252_v22 = vld [vmem:[%s213_s30 + $0x18] sm:$0xff] (!%p205_p9) }
  0x25   : > { %v259_v23 = vld [vmem:[%s213_s30 + $0x50] sm:$0xff] (!%p205_p9)  ;;  %v275_v24 = vadd.f32 (!%p205_p9), %v258_v21, %v257_v20  ;;  %v253_v25 = vld [vmem:[%s213_s30 + $0x20] sm:$0xff] (!%p205_p9)  ;;  %v260_v27 = vld [vmem:[%s213_s30 + $0x58] sm:$0xff] (!%p205_p9) }
  0x26   : > { %v266_v26 = vadd.f32 (!%p205_p9), %v265_v19, %v251_v18  ;;  %v254_v28 = vld [vmem:[%s213_s30 + $0x28] sm:$0xff] (!%p205_p9)  ;;  %v255_v29 = vld [vmem:[%s213_s30 + $0x30] sm:$0xff] (!%p205_p9)  ;;  %v261_v32 = vld [vmem:[%s213_s30 + $0x60] sm:$0xff] (!%p205_p9) }
  0x27   : > { %v276_v30 = vadd.f32 (!%p205_p9), %v275_v24, %v259_v23  ;;  %v270_v31 = vadd.f32 (!%p205_p9), %v254_v28, %v253_v25  ;;  %v262_v33 = vld [vmem:[%s213_s30 + $0x68] sm:$0xff] (!%p205_p9)  ;;  %v263_v34 = vld [vmem:[%s213_s30 + $0x70] sm:$0xff] (!%p205_p9)  ;;  %v256_v36 = vld [vmem:[%s213_s30 + $0x38] sm:$0xff] (!%p205_p9) }
  0x28   : > { %v267_v35 = vadd.f32 %v266_v26, %v252_v22  ;;  %v280_v37 = vadd.f32 %v262_v33, %v261_v32  ;;  %v264_v40 = vld [vmem:[%s213_s30 + $0x78] sm:$0xff]  ;;  %s242_s4 = scalar_select %p241_p10, %s726_s15, 1 }
  0x29   : > { %v277_v38 = vadd.f32 %v276_v30, %v260_v27  ;;  %v271_v39 = vadd.f32 %v270_v31, %v255_v29  ;;  %s635_s17 = sshll.u32 (%p741_p5), %s726_s15, 4 }
  0x2a   : > { %268 = vadd.xlane.f32.xlu0 %v267_v35  ;;  %v281_v41 = vadd.f32 %v280_v37, %v263_v34  ;;  %s611_s5 = sshll.u32 %s242_s4, 3  ;;  %s489_s22 = scalar_lea.vmem (%p741_p5), %s863_s3, %s635_s17 }
  0x2b   : > { %278 = vadd.xlane.f32.xlu1 %v277_v38  ;;  %v272_v42 = vadd.f32 %v271_v39, %v256_v36  ;;  %s248_s8 = scalar_lea.vmem %s862_s2, %s611_s5  ;;  %s244_s11 = scalar_lea.vmem %s861_s1, %s611_s5 }
  0x2c   : > { %v282_v43 = vadd.f32 %v281_v41, %v264_v40 }
  0x2e   : > { %273 = vadd.xlane.f32.xlu0 %v272_v42 }
  0x2f   : > { %283 = vadd.xlane.f32.xlu1 %v282_v43  ;;  %v345_v43 = vld [vmem:[%s244_s11] sm:$0xff] }
  0xb7   : > { %v269_v44 = vpop.xlane.xlu0 %268 }
  0xb8   : > { %v279_v45 = vpop.xlane.xlu1 %278 }
  0xbb   : > { %v274_v46 = vpop.xlane.xlu0 %273 }
  0xbc   : > { %v285_v47 = vadd.f32 %v274_v46, %v269_v44  ;;  %v284_v48 = vpop.xlane.xlu1 %283 }
  0xbe   : > { %v286_v49 = vadd.f32 %v285_v47, %v279_v45 }
  0xc0   : > { %v287_v50 = vadd.f32 %v286_v49, %v284_v48 }
  0xc2   : > { %v288_v51 = vmul.f32 0.00048828125, %v287_v50 }
  0xc4   : > { %v774_v52 = vsub.f32 %v253_v25, %v288_v51  ;;  %v776_v53 = vsub.f32 %v254_v28, %v288_v51  ;;  %v778_v54 = vsub.f32 %v255_v29, %v288_v51  ;;  %v780_v55 = vsub.f32 %v256_v36, %v288_v51 }
  0xc5   : > { %v782_v56 = vsub.f32 %v249_v16, %v288_v51  ;;  %v784_v57 = vsub.f32 %v250_v17, %v288_v51  ;;  %v786_v58 = vsub.f32 %v251_v18, %v288_v51  ;;  %v788_v59 = vsub.f32 %v252_v22, %v288_v51 }
  0xc6   : > { %v309_v60 = vmul.f32 %v774_v52, %v774_v52  ;;  %v310_v61 = vmul.f32 %v776_v53, %v776_v53  ;;  %v311_v62 = vmul.f32 %v778_v54, %v778_v54  ;;  %v312_v63 = vmul.f32 %v780_v55, %v780_v55 }
  0xc7   : > { %v305_v0 = vmul.f32 %v782_v56, %v782_v56  ;;  %v306_v1 = vmul.f32 %v784_v57, %v784_v57  ;;  %v307_v2 = vmul.f32 %v786_v58, %v786_v58  ;;  %v804_v4 = vsub.f32 %v261_v32, %v288_v51 }
  0xc8   : > { %v326_v3 = vadd.f32 %v310_v61, %v309_v60  ;;  %v806_v5 = vsub.f32 %v262_v33, %v288_v51  ;;  %v808_v6 = vsub.f32 %v263_v34, %v288_v51  ;;  %v308_v7 = vmul.f32 %v788_v59, %v788_v59  ;;  %v370_v33 = vld [vmem:[%s248_s8] sm:$0xff] }
  0xc9   : > { %v321_v8 = vadd.f32 %v306_v1, %v305_v0  ;;  %v297_v9 = vsub.f32 %v257_v20, %v288_v51  ;;  %v298_v10 = vsub.f32 %v258_v21, %v288_v51  ;;  %v812_v12 = vsub.f32 %v264_v40, %v288_v51 }
  0xca   : > { %v327_v11 = vadd.f32 %v326_v3, %v311_v62  ;;  %v317_v13 = vmul.f32 %v804_v4, %v804_v4  ;;  %v318_v14 = vmul.f32 %v806_v5, %v806_v5  ;;  %v319_v16 = vmul.f32 %v808_v6, %v808_v6 }
  0xcb   : > { %v322_v15 = vadd.f32 %v321_v8, %v307_v2  ;;  %v299_v17 = vsub.f32 %v259_v23, %v288_v51  ;;  %v300_v18 = vsub.f32 %v260_v27, %v288_v51  ;;  %v313_v24 = vmul.f32 %v297_v9, %v297_v9 }
  0xcc   : > { %v328_v19 = vadd.f32 %v327_v11, %v312_v63  ;;  %v336_v22 = vadd.f32 %v318_v14, %v317_v13  ;;  %v314_v20 = vmul.f32 %v298_v10, %v298_v10  ;;  %v320_v25 = vmul.f32 %v812_v12, %v812_v12 }
  0xcd   : > { %v323_v21 = vadd.f32 %v322_v15, %v308_v7  ;;  %v315_v28 = vmul.f32 %v299_v17, %v299_v17  ;;  %v316_v31 = vmul.f32 %v300_v18, %v300_v18  ;;  %v689_v27 = vmov 0  }
  0xce   : > { %329 = vadd.xlane.f32.xlu1 %v328_v19  ;;  %v337_v26 = vadd.f32 %v336_v22, %v319_v16  ;;  %v331_v29 = vadd.f32 %v314_v20, %v313_v24  ;;  %661 = vset.pattern.permute.xlu0 %v689_v27 }
  0xcf   : > { %324 = vadd.xlane.f32.xlu0 %v323_v21  ;;  %662 = vset.pattern.permute.xlu1 %v689_v27 }
  0xd0   : > { %v338_v30 = vadd.f32 %v337_v26, %v320_v25  ;;  %v332_v32 = vadd.f32 %v331_v29, %v315_v28 }
  0xd2   : > { %339 = vadd.xlane.f32.xlu1 %v338_v30  ;;  %v333_v23 = vadd.f32 %v332_v32, %v316_v31 }
  0xd4   : > { %334 = vadd.xlane.f32.xlu0 %v333_v23 }
  0xe3   : > { %373 = vperm.xlu1 %662, %v370_v33  }
 0x15b   : > { %v330_v35 = vpop.xlane.xlu1 %329 }
 0x15c   : > { %v325_v34 = vpop.xlane.xlu0 %324 }
 0x15d   : > { %v341_v36 = vadd.f32 %v330_v35, %v325_v34 }
 0x15f   : > { %v340_v39 = vpop.xlane.xlu1 %339 }
 0x161   : > { %v335_v37 = vpop.xlane.xlu0 %334 }
 0x162   : > { %v342_v38 = vadd.f32 %v341_v36, %v335_v37 }
 0x163   : > { %v374_v63 = vpop.permute.xlu1 %373 }
 0x164   : > { %v343_v40 = vadd.f32 %v342_v38, %v340_v39 }
 0x166   : > { %v344_v41 = vmul.f32 0.00048828125, %v343_v40 }
 0x168   : > { %v346_v42 = vadd.f32 1e-05, %v344_v41 }
 0x16a   : > { %663 = vrsqrt.f32 %v346_v42 }
 0x174   : > { %v664_v44 = vpop.eup %663 }
 0x175   : > { %v348_v45 = vmul.f32 %v664_v44, %v345_v43 }
 0x177   : > { %351 = vperm.xlu0 %661, %v348_v45  }
 0x1f6   : > { %v352_v46 = vpop.permute.xlu0 %351 }
 0x1f7   : > { %v354_v47 = vmul.f32 %v352_v46, %v782_v56  ;;  %v355_v48 = vmul.f32 %v352_v46, %v784_v57  ;;  %v356_v49 = vmul.f32 %v352_v46, %v786_v58  ;;  %v357_v50 = vmul.f32 %v352_v46, %v788_v59 }
 0x1f8   : > { %v358_v51 = vmul.f32 %v352_v46, %v774_v52  ;;  %v359_v60 = vmul.f32 %v352_v46, %v776_v53  ;;  %v360_v61 = vmul.f32 %v352_v46, %v778_v54  ;;  %v361_v62 = vmul.f32 %v352_v46, %v780_v55 }
 0x1f9   : > { %v362_v0 = vmul.f32 %v352_v46, %v297_v9  ;;  %v363_v1 = vmul.f32 %v352_v46, %v298_v10  ;;  %v364_v2 = vmul.f32 %v352_v46, %v299_v17  ;;  %v365_v3 = vmul.f32 %v352_v46, %v300_v18 }
 0x1fa   : > { %v366_v56 = vmul.f32 %v352_v46, %v804_v4  ;;  %v367_v57 = vmul.f32 %v352_v46, %v806_v5  ;;  %v368_v58 = vmul.f32 %v352_v46, %v808_v6  ;;  %v369_v59 = vmul.f32 %v352_v46, %v812_v12 }
 0x1fb   : > { %v376_v52 = vadd.f32 %v374_v63, %v354_v47  ;;  %v377_v53 = vadd.f32 %v374_v63, %v355_v48  ;;  %v378_v7 = vadd.f32 %v374_v63, %v356_v49  ;;  %v379_v54 = vadd.f32 %v374_v63, %v357_v50 }
 0x1fc   : > { %v380_v8 = vadd.f32 %v374_v63, %v358_v51  ;;  %v381_v55 = vadd.f32 %v374_v63, %v359_v60  ;;  %v382_v11 = vadd.f32 %v374_v63, %v360_v61  ;;  %v383_v9 = vadd.f32 %v374_v63, %v361_v62 }
 0x1fd   : > { %v384_v10 = vadd.f32 %v374_v63, %v362_v0  ;;  %v385_v13 = vadd.f32 %v374_v63, %v363_v1  ;;  %v386_v14 = vadd.f32 %v374_v63, %v364_v2  ;;  %v387_v15 = vadd.f32 %v374_v63, %v365_v3 }
 0x1fe   : > { %v388_v4 = vadd.f32 %v374_v63, %v366_v56  ;;  %v389_v16 = vadd.f32 %v374_v63, %v367_v57  ;;  %v390_v5 = vadd.f32 %v374_v63, %v368_v58  ;;  %v391_v17 = vadd.f32 %v374_v63, %v369_v59 }
 0x1ff   : > { %v392_v6 = vmax.f32 %v376_v52, 0.0  ;;  %v393_v12 = vmax.f32 %v377_v53, 0.0  ;;  %v394_v18 = vmax.f32 %v378_v7, 0.0  ;;  %v395_v19 = vmax.f32 %v379_v54, 0.0 }
 0x200   : > { %v396_v22 = vmax.f32 %v380_v8, 0.0  ;;  %v397_v24 = vmax.f32 %v381_v55, 0.0  ;;  %v398_v20 = vmax.f32 %v382_v11, 0.0  ;;  %v399_v21 = vmax.f32 %v383_v9, 0.0 }
 0x201   : > { %v400_v25 = vmax.f32 %v384_v10, 0.0  ;;  %v401_v26 = vmax.f32 %v385_v13, 0.0  ;;  %v402_v28 = vmax.f32 %v386_v14, 0.0  ;;  %v403_v29 = vmax.f32 %v387_v15, 0.0 }
 0x202   : > { %v404_v30 = vmax.f32 %v388_v4, 0.0  ;;  %v405_v31 = vmax.f32 %v389_v16, 0.0  ;;  %v406_v32 = vmax.f32 %v390_v5, 0.0  ;;  %v407_v23 = vmax.f32 %v391_v17, 0.0  ;;  %486 = sbr.rel (!%p741_p5) target bundleno = 529 (0x211), region = 59 }
 0x203   : > { %v627_v27 = vpack.c.bf16 %v393_v12, %v392_v6  ;;  %v628_v33 = vpack.c.bf16 %v395_v19, %v394_v18  ;;  %v629_v34 = vpack.c.bf16 %v397_v24, %v396_v22  ;;  %v630_v35 = vpack.c.bf16 %v399_v21, %v398_v20 }
 0x204   : > { %v631_v36 = vpack.c.bf16 %v401_v26, %v400_v25  ;;  %v632_v37 = vpack.c.bf16 %v403_v29, %v402_v28  ;;  %v633_v38 = vpack.c.bf16 %v405_v31, %v404_v30  ;;  %v634_v39 = vpack.c.bf16 %v407_v23, %v406_v32 }
 0x205   : > { %472 = vst [vmem:[%s240_s12] sm:$0xff] %v627_v27  ;;  %473 = vst [vmem:[%s240_s12 + $0x8] sm:$0xff] %v628_v33 }
 0x206   : > { %474 = vst [vmem:[%s240_s12 + $0x10] sm:$0xff] %v629_v34  ;;  %475 = vst [vmem:[%s240_s12 + $0x18] sm:$0xff] %v630_v35 }
 0x207   : > { %476 = vst [vmem:[%s240_s12 + $0x20] sm:$0xff] %v631_v36  ;;  %477 = vst [vmem:[%s240_s12 + $0x28] sm:$0xff] %v632_v37 }
 0x208   : > { %478 = vst [vmem:[%s240_s12 + $0x30] sm:$0xff] %v633_v38  ;;  %479 = vst [vmem:[%s240_s12 + $0x38] sm:$0xff] %v634_v39 }
 0x20c   : > { %v502_v40 = vld [vmem:[%s240_s12] sm:$0xff]  ;;  %v504_v41 = vld [vmem:[%s240_s12 + $0x8] sm:$0xff] }
 0x20d   : > { %v506_v42 = vld [vmem:[%s240_s12 + $0x10] sm:$0xff]  ;;  %v508_v43 = vld [vmem:[%s240_s12 + $0x18] sm:$0xff]  ;;  %503 = vst [vmem:[%s489_s22] sm:$0xff] %v502_v40  ;;  %505 = vst [vmem:[%s489_s22 + $0x8] sm:$0xff] %v504_v41 }
 0x20e   : > { %v510_v44 = vld [vmem:[%s240_s12 + $0x20] sm:$0xff]  ;;  %v512_v45 = vld [vmem:[%s240_s12 + $0x28] sm:$0xff]  ;;  %507 = vst [vmem:[%s489_s22 + $0x20] sm:$0xff] %v506_v42  ;;  %509 = vst [vmem:[%s489_s22 + $0x28] sm:$0xff] %v508_v43 }
 0x20f   : > { %511 = vst [vmem:[%s489_s22 + $0x40] sm:$0xff] %v510_v44  ;;  %513 = vst [vmem:[%s489_s22 + $0x48] sm:$0xff] %v512_v45  ;;  %v514_v46 = vld [vmem:[%s240_s12 + $0x30] sm:$0xff]  ;;  %v516_v47 = vld [vmem:[%s240_s12 + $0x38] sm:$0xff] }
 0x210   : > { %515 = vst [vmem:[%s489_s22 + $0x60] sm:$0xff] %v514_v46  ;;  %517 = vst [vmem:[%s489_s22 + $0x68] sm:$0xff] %v516_v47 }
 0x211 PF: > { %p10_p11 = scmp.ge.s32.totalorder %s729_s16, 4   ;;  %s865_s12 = smov %s683_s13 }
 0x212   : > { %s866_s13 = smov %s739_s19  ;;  %s867_s14 = smov %s729_s16 }
 0x213   :  { %12 = sbr.rel (!%p10_p11) target bundleno = 2 (0x2), region = 119 }

// kernel: generator_forward.17
= control target key start
LH: loop header
LB: loop body
LE: loop exit
PB: predicated region body
PF: predicated region fallthrough
CT: control target
= control target key end

     0   :  { %s737_s9 = smov 0   ;;  %s739_s10 = smov 0   ;;  %s870_s0 = inlined_call_operand.vmem [shape: bf16[4,3,64], index: 0, kind: input, shape index: {}]   ;;  %s871_s1 = inlined_call_operand.vmem [shape: bf16[4,64,2048], index: 1, kind: input, shape index: {}]   ;;  %s872_s2 = inlined_call_operand.vmem [shape: f32[4,3,2048], index: 2, kind: output, shape index: {}]  }
   0x1   :  { %s741_s11 = smov 0   ;;  %s743_s12 = smov 0  }
   0x2   :  { %s745_s13 = smov 0   ;;  %s747_s14 = smov 0  }
   0x3   :  { %s749_s15 = smov 0  }
   0x4 LB: > { %s21_s16 = sadd.s32 1, %s711_s13  ;;  %s24_s17 = sadd.s32 1, %s715_s14  ;;  %s719_s15 = sphi %s749_s15, %s12_s15   ;;  %s715_s14 = sphi %s747_s14, %s878_s14   ;;  %s711_s13 = sphi %s745_s13, %s877_s13   ;;  %s707_s12 = sphi %s743_s12, %s876_s12   ;;  %s703_s11 = sphi %s741_s11, %s875_s11   ;;  %s699_s10 = sphi %s739_s10, %s874_s10   ;;  %s695_s9 = sphi %s737_s9, %s873_s9  }
   0x5   : > { %p22_p0 = scmp.ge.s32.totalorder %s21_s16, 4  ;;  %p66_p1 = scmp.ne.s32.totalorder %s699_s10, %s695_s9 }
   0x6   : > { %p67_p2 = scmp.eq.s32.totalorder %s719_s15, 0  ;;  %s59_s21 = sadd.s32 1, %s699_s10 }
   0x7   : > { %s880_s16 = smov (%p22_p0, %s21_s16), 0  ;;  %s882_s17 = smov (!%p22_p0, %s24_s17), %s715_s14 }
   0x8   : > { %p68_p3 = por %p67_p2, %p66_p1  ;;  %p26_p4 = scmp.ge.s32.totalorder %s882_s17, 4 }
   0x9   : > { %s55_s18 = ssub.s32 %s711_s13, %s880_s16  ;;  %p545_p6 = scmp.ge.s32.totalorder %s719_s15, 16 }
   0xa   : > { %s884_s17 = smov (%p26_p4, %s882_s17), 0 }
   0xb   : > { %s54_s19 = ssub.s32 %s715_s14, %s884_s17  ;;  %120 = sbr.rel (%p545_p6) target bundleno = 33 (0x21), region = 16 }
   0xc   : > { %s56_s20 = sor.u32 %s55_s18, %s54_s19 }
   0xd   : > { %p57_p5 = scmp.eq.s32.totalorder %s56_s20, 0 }
   0xf   : > { %s788_s22 = scalar_select %p57_p5, %s699_s10, %s59_s21  }
  0x12   : > { %130 = sbr.rel (!%p68_p3) target bundleno = 33 (0x21), region = 24  ;;  %s132_s23 = sand.u32 (%p68_p3), 1, %s699_s10  }
  0x13   : > { %s547_s24 = sshll.u32 (%p68_p3), %s711_s13, 2  ;;  %s546_s25 = sshll.u32 (%p68_p3), %s132_s23, 7 }
  0x14   : > { %s548_s26 = sshll.u32 (%p68_p3), %s715_s14, 7  ;;  %s134_s4 = scalar_lea.vmem (%p68_p3), [#allocation2], %s546_s25 }
  0x15   : > { %s137_s27 = sadd.s32 (%p68_p3), %s548_s26, %s547_s24 }
  0x16   : > { %s549_s28 = sshll.u32 (%p68_p3), %s137_s27, 2 }
  0x17   : > { %s797_s3 = scalar_lea.vmem (%p68_p3), %s871_s1, %s549_s28 }
  0x18   : > { %v152_v0 = vld [vmem:[%s797_s3] sm:$0xff] (%p68_p3)  ;;  %v154_v1 = vld [vmem:[%s797_s3 + $0x8] sm:$0xff] (%p68_p3) }
  0x19   : > { %v156_v2 = vld [vmem:[%s797_s3 + $0x40] sm:$0xff]  ;;  %153 = vst [vmem:[%s134_s4] sm:$0xff] %v152_v0  ;;  %155 = vst [vmem:[%s134_s4 + $0x8] sm:$0xff] %v154_v1  ;;  %v158_v3 = vld [vmem:[%s797_s3 + $0x48] sm:$0xff] }
  0x1a   : > { %157 = vst [vmem:[%s134_s4 + $0x10] sm:$0xff] %v156_v2  ;;  %v160_v4 = vld [vmem:[%s797_s3 + $0x80] sm:$0xff]  ;;  %v162_v5 = vld [vmem:[%s797_s3 + $0x88] sm:$0xff]  ;;  %159 = vst [vmem:[%s134_s4 + $0x18] sm:$0xff] %v158_v3 }
  0x1b   : > { %161 = vst [vmem:[%s134_s4 + $0x20] sm:$0xff] %v160_v4  ;;  %163 = vst [vmem:[%s134_s4 + $0x28] sm:$0xff] %v162_v5  ;;  %v164_v6 = vld [vmem:[%s797_s3 + $0xc0] sm:$0xff]  ;;  %v166_v7 = vld [vmem:[%s797_s3 + $0xc8] sm:$0xff] }
  0x1c   : > { %v168_v8 = vld [vmem:[%s797_s3 + $0x100] sm:$0xff]  ;;  %165 = vst [vmem:[%s134_s4 + $0x30] sm:$0xff] %v164_v6  ;;  %167 = vst [vmem:[%s134_s4 + $0x38] sm:$0xff] %v166_v7  ;;  %v170_v9 = vld [vmem:[%s797_s3 + $0x108] sm:$0xff] }
  0x1d   : > { %169 = vst [vmem:[%s134_s4 + $0x40] sm:$0xff] %v168_v8  ;;  %v172_v10 = vld [vmem:[%s797_s3 + $0x140] sm:$0xff]  ;;  %v174_v11 = vld [vmem:[%s797_s3 + $0x148] sm:$0xff]  ;;  %171 = vst [vmem:[%s134_s4 + $0x48] sm:$0xff] %v170_v9 }
  0x1e   : > { %173 = vst [vmem:[%s134_s4 + $0x50] sm:$0xff] %v172_v10  ;;  %175 = vst [vmem:[%s134_s4 + $0x58] sm:$0xff] %v174_v11  ;;  %v176_v12 = vld [vmem:[%s797_s3 + $0x180] sm:$0xff]  ;;  %v178_v13 = vld [vmem:[%s797_s3 + $0x188] sm:$0xff] }
  0x1f   : > { %v180_v14 = vld [vmem:[%s797_s3 + $0x1c0] sm:$0xff]  ;;  %177 = vst [vmem:[%s134_s4 + $0x60] sm:$0xff] %v176_v12  ;;  %179 = vst [vmem:[%s134_s4 + $0x68] sm:$0xff] %v178_v13  ;;  %v182_v15 = vld [vmem:[%s797_s3 + $0x1c8] sm:$0xff] }
  0x20   : > { %181 = vst [vmem:[%s134_s4 + $0x70] sm:$0xff] %v180_v14  ;;  %183 = vst [vmem:[%s134_s4 + $0x78] sm:$0xff] %v182_v15 }
  0x21 PF: > { %p550_p7 = scmp.ge.s32.totalorder %s719_s15, 1  ;;  %p188_p8 = scmp.lt.s32.totalorder %s719_s15, 17 }
  0x23   : > { %p189_p9 = pnand %p550_p7, %p188_p8 }
  0x24   : > { %s195_s5 = sand.u32 (!%p189_p9), 1, %s695_s9   ;;  %v721_v16 = vmov (!%p189_p9), 0   ;;  %p224_p10 = scmp.lt.s32.totalorder (!%p189_p9), %s707_s12, 3  ;;  %vm337_vm0 = vcmask (!%p189_p9), 523264  }
  0x25   : > { %192 = sbr.rel (%p189_p9) target bundleno = 285 (0x11d), region = 47  ;;  %s551_s6 = sshll.u32 (!%p189_p9), %s195_s5, 7  ;;  %373 = vmatprep.mubr.bf16.mxu0 (!%p189_p9), %v721_v16  ;;  %414 = vmatprep.mubr.bf16.mxu1 (!%p189_p9), %v721_v16 }
  0x26   : > { %s818_s7 = scalar_lea.vmem (!%p189_p9), [#allocation2], %s551_s6  ;;  %s553_s20 = sshll.u32 (!%p189_p9), %s703_s11, 2 }
  0x27   : > { %v633_v17 = vld [vmem:[%s818_s7 + $0x4] ss:$16 sps:$4 sm:$0xff] (!%p189_p9)   ;;  %v635_v18 = vld [vmem:[%s818_s7 + $0xc] ss:$16 sps:$4 sm:$0xff] (!%p189_p9)   ;;  %v637_v19 = vld [vmem:[%s818_s7] ss:$16 sps:$4 sm:$0xff] (!%p189_p9)  }
  0x28   : > { %341 = vmatprep.subr.bf16.mxu0 (!%p189_p9), %v633_v17  ;;  %v638_v20 = vld [vmem:[%s818_s7 + $0x8] ss:$16 sps:$4 sm:$0xff] (!%p189_p9)   ;;  %382 = vmatprep.subr.bf16.mxu1 (!%p189_p9), %v635_v18  ;;  %v639_v21 = vld [vmem:[%s818_s7 + $0x24] ss:$16 sps:$4 sm:$0xff] (!%p189_p9)   ;;  %v641_v22 = vld [vmem:[%s818_s7 + $0x2c] ss:$16 sps:$4 sm:$0xff] (!%p189_p9)  }
  0x29   : > { %342 = vmatpush1.bf16.msra.mxu0 (!%p189_p9), %v637_v19  ;;  %383 = vmatpush1.bf16.msra.mxu1 (!%p189_p9), %v638_v20  ;;  %v643_v23 = vld [vmem:[%s818_s7 + $0x20] ss:$16 sps:$4 sm:$0xff] (!%p189_p9)   ;;  %v644_v24 = vld [vmem:[%s818_s7 + $0x28] ss:$16 sps:$4 sm:$0xff] (!%p189_p9)   ;;  %v645_v25 = vld [vmem:[%s818_s7 + $0x44] ss:$16 sps:$4 sm:$0xff] (!%p189_p9)  }
  0x2a   : > { %343 = vmatprep.subr.bf16.mxu0 (!%p189_p9), %v639_v21  ;;  %384 = vmatprep.subr.bf16.mxu1 (!%p189_p9), %v641_v22  ;;  %v647_v26 = vld [vmem:[%s818_s7 + $0x4c] ss:$16 sps:$4 sm:$0xff] (!%p189_p9)   ;;  %v649_v27 = vld [vmem:[%s818_s7 + $0x40] ss:$16 sps:$4 sm:$0xff] (!%p189_p9)   ;;  %v650_v28 = vld [vmem:[%s818_s7 + $0x48] ss:$16 sps:$4 sm:$0xff] (!%p189_p9)  }
  0x2b   : > { %v651_v29 = vld [vmem:[%s818_s7 + $0x64] ss:$16 sps:$4 sm:$0xff] (!%p189_p9)   ;;  %v653_v30 = vld [vmem:[%s818_s7 + $0x6c] ss:$16 sps:$4 sm:$0xff] (!%p189_p9)   ;;  %v655_v31 = vld [vmem:[%s818_s7 + $0x60] ss:$16 sps:$4 sm:$0xff] (!%p189_p9)  }
  0x2c   : > { %s886_s12 = smov (!%p224_p10, %s707_s12), 3  ;;  %v656_v32 = vld [vmem:[%s818_s7 + $0x68] ss:$16 sps:$4 sm:$0xff]   ;;  %p232_p11 = scmp.lt.s32.totalorder %s553_s20, 15 }
  0x2d   : > { %344 = vmatpush1.bf16.msra.mxu0 %v643_v23  ;;  %385 = vmatpush1.bf16.msra.mxu1 %v644_v24  ;;  %s552_s8 = sshll.u32 %s886_s12, 1  ;;  %s554_s21 = sshll.u32 %s886_s12, 4 }
  0x2e   : > { %345 = vmatprep.subr.bf16.mxu0 %v645_v25  ;;  %386 = vmatprep.subr.bf16.mxu1 %v647_v26  ;;  %s227_s19 = scalar_lea.vmem %s870_s0, %s552_s8  ;;  %s888_s20 = smov (!%p232_p11, %s553_s20), 15 }
  0x2f   : > { %v240_v33 = vld [vmem:[%s227_s19] sm:$0x3]  ;;  %s235_s23 = sadd.s32 %s554_s21, %s888_s20 }
  0x30   : > { %s555_s24 = sshll.u32 %s235_s23, 2 }
  0x31   : > { %346 = vmatpush1.bf16.msra.mxu0 %v649_v27  ;;  %387 = vmatpush1.bf16.msra.mxu1 %v650_v28  ;;  %s237_s26 = scalar_lea.vmem %s872_s2, %s555_s24 }
  0x32   : > { %347 = vmatprep.subr.bf16.mxu0 %v651_v29  ;;  %388 = vmatprep.subr.bf16.mxu1 %v653_v30 }
  0x35   : > { %348 = vmatpush1.bf16.msra.mxu0 %v655_v31  ;;  %389 = vmatpush1.bf16.msra.mxu1 %v656_v32 }
  0x38   : > { %572 = vmatmul.mubr.msk.bf16.vlgmr.msra.gmra.mrb[0].mxu0 %vm337_vm0, %v240_v33  ;;  %573 = vmatmul.mubr.msk.bf16.vlgmr.msra.gmra.mrb[0].mxu1 %vm337_vm0, %v240_v33 }
 0x10b   : > { %v375_v34 = vpop.f32.mrb[0].mxu0  ;;  %v416_v35 = vpop.f32.mrb[0].mxu1 }
 0x10c   : > { %657 = vtanh.f32 %v375_v34  ;;  %v377_v36 = vpop.f32.mrb[1].mxu0  ;;  %v418_v37 = vpop.f32.mrb[1].mxu1 }
 0x10d   : > { %659 = vtanh.f32 %v416_v35  ;;  %v379_v38 = vpop.f32.mrb[2].mxu0  ;;  %v420_v39 = vpop.f32.mrb[2].mxu1 }
 0x10e   : > { %661 = vtanh.f32 %v377_v36  ;;  %v380_v40 = vpop.f32.mrb[3].mxu0  ;;  %v421_v41 = vpop.f32.mrb[3].mxu1 }
 0x10f   : > { %663 = vtanh.f32 %v418_v37 }
 0x116   : > { %v658_v42 = vpop.eup %657 }
 0x117   : > { %v660_v43 = vpop.eup %659 }
 0x118   : > { %v662_v44 = vpop.eup %661 }
 0x119   : > { %v664_v45 = vpop.eup %663  ;;  %v431_v46 = vcombine.low %v658_v42, %v662_v44 }
 0x11a   : > { %v432_v47 = vcombine.low %v660_v43, %v664_v45 }
 0x11b   : > { %435 = vst [vmem:[%s237_s26] sm:$0x77] %v431_v46 }
 0x11c   : > { %436 = vst [vmem:[%s237_s26 + $0x8] sm:$0x77] %v432_v47 }
 0x11d PF: > { %s12_s15 = sadd.s32 1, %s719_s15   ;;  %s873_s9 = smov %s699_s10 }
 0x11e   : > { %p9_p12 = scmp.ge.s32.totalorder %s12_s15, 18   ;;  %s874_s10 = smov %s788_s22 }
 0x11f   : > { %s875_s11 = smov %s711_s13  ;;  %s876_s12 = smov %s715_s14 }
 0x120   : > { %s877_s13 = smov %s880_s16  ;;  %s878_s14 = smov %s884_s17 }
 0x121   :  { %11 = sbr.rel (!%p9_p12) target bundleno = 4 (0x4), region = 89 }

</bundles_post_ra>
